<compile_context>
chip_gen: v6e
topology: v6e:2x2x1
jax: 0.10.0
libtpu: 0.0.40
codegen_flags: <defaults>
</compile_context>

<pallas_src>
import math

import jax
import jax.numpy as jnp
from jax.experimental import pallas as pl
from jax.experimental.pallas import tpu as pltpu


# ---------------------------------------------------------------------------
# Kernel
# ---------------------------------------------------------------------------

def _make_sr_kernel(TT, HW_pad, inv_hw):
    """Builds the per-(N-block, T-chunk) kernel.

    Block layout (lane-dense):
      x_ref / out_ref : (Nb, C, TT * HW_pad)  f32
      w*_ref          : (2C, 4C)  fused [W_ih; W_hh] (PyTorch weights, T)
      b*_ref          : (1, 4C)   bias_ih + bias_hh
      h*/c* scratch   : (Nb, C)   LSTM state, carried across T-chunks
    """

    def kernel(x_ref, w0_ref, b0_ref, w1_ref, b1_ref, out_ref,
               h0s, c0s, h1s, c1s):
        Nb, C = h0s.shape

        # Start of the sequence for this batch block: zero initial state
        # (PyTorch nn.LSTM default).
        @pl.when(pl.program_id(1) == 0)
        def _():
            h0s[...] = jnp.zeros_like(h0s)
            c0s[...] = jnp.zeros_like(c0s)
            h1s[...] = jnp.zeros_like(h1s)
            c1s[...] = jnp.zeros_like(c1s)

        def cell(inp, h, c, w_ref, b_ref):
            # Fused gate matmul: [x, h] (Nb, 2C) @ [Wih; Whh] (2C, 4C) + b.
            zh = jnp.concatenate([inp, h], axis=1)
            g = jnp.dot(zh, w_ref[...],
                        preferred_element_type=jnp.float32) + b_ref[...]
            i = jax.nn.sigmoid(g[:, 0 * C:1 * C])
            f = jax.nn.sigmoid(g[:, 1 * C:2 * C])
            gg = jnp.tanh(g[:, 2 * C:3 * C])
            o = jax.nn.sigmoid(g[:, 3 * C:4 * C])
            c_new = f * c + i * gg
            h_new = o * jnp.tanh(c_new)
            return h_new, c_new

        h0 = h0s[...]
        c0 = c0s[...]
        h1 = h1s[...]
        c1 = c1s[...]

        # Fully static unroll over the T-chunk (TT is a small compile-time
        # constant).  All slice starts are static multiples of 128 lanes, so
        # every load/store is aligned and unmasked.
        for t in range(TT):
            sl = pl.ds(t * HW_pad, HW_pad)            # static, 128-aligned
            x_slab = x_ref[:, :, sl]                  # (Nb, C, HW_pad)
            # Spatial average pool; pad lanes are zero, so dividing by the
            # TRUE H*W reproduces avg_pool3d exactly.
            x_t = jnp.sum(x_slab, axis=-1) * inv_hw   # (Nb, C)
            h0, c0 = cell(x_t, h0, c0, w0_ref, b0_ref)
            h1, c1 = cell(h0, h1, c1, w1_ref, b1_ref)
            # x * sr for this timestep; lane-dense 128-wide stores.
            out_ref[:, :, sl] = (x_slab * h1[:, :, None]).astype(out_ref.dtype)

        h0s[...] = h0
        c0s[...] = c0
        h1s[...] = h1
        c1s[...] = c1

    return kernel


# ---------------------------------------------------------------------------
# Wrapper
# ---------------------------------------------------------------------------

def _vmem_capacity_bytes():
    """Per-core VMEM capacity; conservative (v7x-sized) fallback if unknown."""
    try:
        info = pltpu.get_tpu_info()
        cap = getattr(info, "vmem_capacity_bytes", None)
        if cap:
            return int(cap)
    except Exception:
        pass
    return 64 * 1024 * 1024


def _largest_divisor_leq(n, cap):
    cap = max(1, min(n, cap))
    for d in range(cap, 0, -1):
        if n % d == 0:
            return d
    return 1


def squeeze_and_recursion(x, params):
    """Squeeze_and_Recursion forward (gates=False): x * LSTM(avg_pool(x)).

    x: (N, C, T, H, W) float32 (PyTorch NCTHW layout).
    params: (W0, b0, W1, b1) from make_params (fused LSTM weights).
    """
    # TODO(synk): the gates=True branch (soft_nnc gating + indexed in-place
    # update) has no clean Pallas equivalent; only gates=False is implemented.
    N, C, T, H, W = x.shape
    HW = H * W
    HW_pad = ((HW + 127) // 128) * 128
    w0, b0, w1, b1 = params

    # Flatten spatial dims (free trailing reshape) and zero-pad the flattened
    # spatial axis to a multiple of 128 lanes so every kernel store is
    # lane-dense/unmasked.  The in-kernel mean divides by the true H*W.
    xr = x.reshape(N, C, T, HW)
    if HW_pad != HW:
        xr = jnp.pad(xr, ((0, 0), (0, 0), (0, 0), (0, HW_pad - HW)))
    xr = xr.reshape(N, C, T * HW_pad)

    # --- Block sizing / VMEM budget (generation-aware) ----------------------
    vmem_cap = _vmem_capacity_bytes()
    usable = (3 * vmem_cap) // 4                       # leave compiler headroom
    weight_bytes = 4 * (w0.size + b0.size + w1.size + b1.size)
    slab_bytes = C * HW_pad * 4                        # one (1, C, HW_pad) slab
    # in + out blocks, double-buffered -> 4x block bytes; also bound the
    # statically unrolled code size with an 8 MiB block cap.
    block_budget = min(8 << 20,
                       max(slab_bytes,
                           (usable - 2 * weight_bytes - (4 << 20)) // 4))
    max_slabs = max(1, block_budget // slab_bytes)

    # Fold as much of T as fits into one grid step (cap the unroll at 64),
    # then batch the LSTM over as many rows of N as fit -- but keep >= 2 grid
    # points on the batch axis so the v7x megacore retains a parallel axis.
    TT = _largest_divisor_leq(T, min(64, max_slabs))
    nb_cap = max(1, max_slabs // TT)
    if N >= 2:
        nb_cap = min(nb_cap, N // 2)
    Nb = _largest_divisor_leq(N, nb_cap)

    grid = (N // Nb, T // TT)
    block_bytes = Nb * TT * slab_bytes
    scratch_bytes = 4 * Nb * max(C, 128) * 4
    vmem_limit = int(min(usable,
                         max(4 << 20,
                             4 * block_bytes + 2 * weight_bytes
                             + scratch_bytes + (2 << 20))))

    x_spec = pl.BlockSpec((Nb, C, TT * HW_pad), lambda n, t: (n, 0, t))
    out_spec = pl.BlockSpec((Nb, C, TT * HW_pad), lambda n, t: (n, 0, t))
    # Weights/biases: constant block index -> DMA'd once, VMEM-resident.
    weight_specs = [
        pl.BlockSpec(w0.shape, lambda n, t: (0, 0)),
        pl.BlockSpec(b0.shape, lambda n, t: (0, 0)),
        pl.BlockSpec(w1.shape, lambda n, t: (0, 0)),
        pl.BlockSpec(b1.shape, lambda n, t: (0, 0)),
    ]

    out = pl.pallas_call(
        _make_sr_kernel(TT, HW_pad, 1.0 / HW),
        out_shape=jax.ShapeDtypeStruct((N, C, T * HW_pad), x.dtype),
        grid=grid,
        in_specs=[x_spec] + weight_specs,
        out_specs=out_spec,
        scratch_shapes=[pltpu.VMEM((Nb, C), jnp.float32)] * 4,
        compiler_params=pltpu.CompilerParams(
            dimension_semantics=("parallel", "arbitrary"),
            vmem_limit_bytes=vmem_limit),
    )(xr, w0, b0, w1, b1)

    out = out.reshape(N, C, T, HW_pad)
    if HW_pad != HW:
        out = out[..., :HW]
    return out.reshape(N, C, T, H, W)


# ---------------------------------------------------------------------------
# Params + pure-JAX reference
# ---------------------------------------------------------------------------

def make_params(key, planes):
    """Deterministic 2-layer LSTM params, PyTorch-style uniform(-k, k).

    Returned in the kernel's fused layout:
      W_l = [W_ih_l.T ; W_hh_l.T]   -> (2C, 4C)
      b_l = (b_ih_l + b_hh_l)[None] -> (1, 4C)
    """
    C = planes
    k = 1.0 / math.sqrt(C)
    keys = jax.random.split(key, 8)

    def u(key, shape):
        return jax.random.uniform(key, shape, jnp.float32, minval=-k, maxval=k)

    wih0 = u(keys[0], (4 * C, C))
    whh0 = u(keys[1], (4 * C, C))
    bih0 = u(keys[2], (4 * C,))
    bhh0 = u(keys[3], (4 * C,))
    wih1 = u(keys[4], (4 * C, C))
    whh1 = u(keys[5], (4 * C, C))
    bih1 = u(keys[6], (4 * C,))
    bhh1 = u(keys[7], (4 * C,))

    w0 = jnp.concatenate([wih0.T, whh0.T], axis=0)   # (2C, 4C)
    w1 = jnp.concatenate([wih1.T, whh1.T], axis=0)   # (2C, 4C)
    b0 = (bih0 + bhh0)[None, :]                      # (1, 4C)
    b1 = (bih1 + bhh1)[None, :]                      # (1, 4C)
    return w0, b0, w1, b1


def reference(x, params):
    """Pure-JAX reference of the PyTorch forward (gates=False)."""
    N, C, T, H, W = x.shape
    w0, b0, w1, b1 = params
    wih0, whh0 = w0[:C], w0[C:]
    wih1, whh1 = w1[:C], w1[C:]

    sq = x.mean(axis=(3, 4))                 # (N, C, T)
    seq = jnp.transpose(sq, (2, 0, 1))       # (T, N, C)

    def cell(x_t, h, c, wih, whh, b):
        g = x_t @ wih + h @ whh + b
        i = jax.nn.sigmoid(g[:, 0 * C:1 * C])
        f = jax.nn.sigmoid(g[:, 1 * C:2 * C])
        gg = jnp.tanh(g[:, 2 * C:3 * C])
        o = jax.nn.sigmoid(g[:, 3 * C:4 * C])
        c_new = f * c + i * gg
        return o * jnp.tanh(c_new), c_new

    h0 = c0 = h1 = c1 = jnp.zeros((N, C), jnp.float32)
    outs = []
    for t in range(T):
        h0, c0 = cell(seq[t], h0, c0, wih0, whh0, b0)
        h1, c1 = cell(h0, h1, c1, wih1, whh1, b1)
        outs.append(h1)
    lstm_out = jnp.stack(outs, axis=0)                       # (T, N, C)
    sr = jnp.transpose(lstm_out, (1, 2, 0))[:, :, :, None, None]
    return x * sr


if __name__ == "__main__":
    key = jax.random.PRNGKey(0)
    kx, kp, kx2 = jax.random.split(key, 3)

    # Case 1: H*W = 256 (multiple of 128 -> no padding), planes C = 32.
    N, C, T, H, W = 2, 32, 8, 16, 16
    x = jax.random.normal(kx, (N, C, T, H, W), jnp.float32)
    params = make_params(kp, C)
    y = jax.block_until_ready(squeeze_and_recursion(x, params))
    y_ref = jax.block_until_ready(reference(x, params))
    assert y.shape == x.shape and y.dtype == x.dtype
    assert jnp.allclose(y, y_ref, rtol=1e-4, atol=1e-4), "mismatch (16x16)"

    # Case 2: H*W = 196 (not a multiple of 128 -> padded lane-dense path).
    N2, C2, T2, H2, W2 = 2, 32, 4, 14, 14
    x2 = jax.random.normal(kx2, (N2, C2, T2, H2, W2), jnp.float32)
    params2 = make_params(kp, C2)
    y2 = jax.block_until_ready(squeeze_and_recursion(x2, params2))
    y2_ref = jax.block_until_ready(reference(x2, params2))
    assert y2.shape == x2.shape and y2.dtype == x2.dtype
    assert jnp.allclose(y2, y2_ref, rtol=1e-4, atol=1e-4), "mismatch (14x14)"

    print("KERNEL_OK")
</pallas_src>

<mosaic_0001>
module attributes {stable_mosaic.version = 11 : i64} {
  func.func @kernel(%arg0: i32, %arg1: i32, %arg2: memref<1x32x2048xf32, #tpu.memory_space<vmem>>, %arg3: memref<64x128xf32, #tpu.memory_space<vmem>>, %arg4: memref<1x128xf32, #tpu.memory_space<vmem>>, %arg5: memref<64x128xf32, #tpu.memory_space<vmem>>, %arg6: memref<1x128xf32, #tpu.memory_space<vmem>>, %arg7: memref<1x32x2048xf32, #tpu.memory_space<vmem>>, %arg8: memref<1x32xf32, #tpu.memory_space<vmem>>, %arg9: memref<1x32xf32, #tpu.memory_space<vmem>>, %arg10: memref<1x32xf32, #tpu.memory_space<vmem>>, %arg11: memref<1x32xf32, #tpu.memory_space<vmem>>) attributes {dimension_semantics = [#tpu.dimension_semantics<parallel>, #tpu.dimension_semantics<arbitrary>], iteration_bounds = array<i64: 2, 1>, scalar_prefetch = 0 : i64, scratch_operands = 4 : i64, tpu.core_type = #tpu.core_type<tc>, window_params = [{transform_indices = @transform_0, window_bounds = array<i64: 1, 32, 2048>}, {pipeline_mode = #tpu.pipeline_mode<synchronous>, transform_indices = @transform_1, window_bounds = array<i64: 64, 128>}, {pipeline_mode = #tpu.pipeline_mode<synchronous>, transform_indices = @transform_2, window_bounds = array<i64: 1, 128>}, {pipeline_mode = #tpu.pipeline_mode<synchronous>, transform_indices = @transform_3, window_bounds = array<i64: 64, 128>}, {pipeline_mode = #tpu.pipeline_mode<synchronous>, transform_indices = @transform_4, window_bounds = array<i64: 1, 128>}, {transform_indices = @transform_5, window_bounds = array<i64: 1, 32, 2048>}]} {
    %c0_i32 = arith.constant 0 : i32
    %0 = arith.cmpi eq, %arg1, %c0_i32 : i32
    %1 = arith.extui %0 : i1 to i32
    %c0_i32_0 = arith.constant 0 : i32
    %2 = arith.cmpi ne, %1, %c0_i32_0 : i32
    scf.if %2 {
      %cst_200 = arith.constant 0.000000e+00 : f32
      %555 = vector.broadcast %cst_200 : f32 to vector<1x32xf32>
      %c0_201 = arith.constant 0 : index
      %c0_202 = arith.constant 0 : index
      %556 = vector.load %arg8[%c0_201, %c0_202] : memref<1x32xf32, #tpu.memory_space<vmem>>, vector<1x32xf32>
      tpu.vector_store %arg8[%c0_201, %c0_202], %555 {strides = array<i32>} : memref<1x32xf32, #tpu.memory_space<vmem>>, vector<1x32xf32>,
      %cst_203 = arith.constant 0.000000e+00 : f32
      %557 = vector.broadcast %cst_203 : f32 to vector<1x32xf32>
      %c0_204 = arith.constant 0 : index
      %c0_205 = arith.constant 0 : index
      %558 = vector.load %arg9[%c0_204, %c0_205] : memref<1x32xf32, #tpu.memory_space<vmem>>, vector<1x32xf32>
      tpu.vector_store %arg9[%c0_204, %c0_205], %557 {strides = array<i32>} : memref<1x32xf32, #tpu.memory_space<vmem>>, vector<1x32xf32>,
      %cst_206 = arith.constant 0.000000e+00 : f32
      %559 = vector.broadcast %cst_206 : f32 to vector<1x32xf32>
      %c0_207 = arith.constant 0 : index
      %c0_208 = arith.constant 0 : index
      %560 = vector.load %arg10[%c0_207, %c0_208] : memref<1x32xf32, #tpu.memory_space<vmem>>, vector<1x32xf32>
      tpu.vector_store %arg10[%c0_207, %c0_208], %559 {strides = array<i32>} : memref<1x32xf32, #tpu.memory_space<vmem>>, vector<1x32xf32>,
      %cst_209 = arith.constant 0.000000e+00 : f32
      %561 = vector.broadcast %cst_209 : f32 to vector<1x32xf32>
      %c0_210 = arith.constant 0 : index
      %c0_211 = arith.constant 0 : index
      %562 = vector.load %arg11[%c0_210, %c0_211] : memref<1x32xf32, #tpu.memory_space<vmem>>, vector<1x32xf32>
      tpu.vector_store %arg11[%c0_210, %c0_211], %561 {strides = array<i32>} : memref<1x32xf32, #tpu.memory_space<vmem>>, vector<1x32xf32>,
    } else {
    }
    %c0 = arith.constant 0 : index
    %c0_1 = arith.constant 0 : index
    %3 = vector.load %arg8[%c0, %c0_1] : memref<1x32xf32, #tpu.memory_space<vmem>>, vector<1x32xf32>
    %c0_2 = arith.constant 0 : index
    %c0_3 = arith.constant 0 : index
    %4 = vector.load %arg9[%c0_2, %c0_3] : memref<1x32xf32, #tpu.memory_space<vmem>>, vector<1x32xf32>
    %c0_4 = arith.constant 0 : index
    %c0_5 = arith.constant 0 : index
    %5 = vector.load %arg10[%c0_4, %c0_5] : memref<1x32xf32, #tpu.memory_space<vmem>>, vector<1x32xf32>
    %c0_6 = arith.constant 0 : index
    %c0_7 = arith.constant 0 : index
    %6 = vector.load %arg11[%c0_6, %c0_7] : memref<1x32xf32, #tpu.memory_space<vmem>>, vector<1x32xf32>
    %c0_8 = arith.constant 0 : index
    %c0_9 = arith.constant 0 : index
    %c0_10 = arith.constant 0 : index
    %7 = vector.load %arg2[%c0_8, %c0_9, %c0_10] : memref<1x32x2048xf32, #tpu.memory_space<vmem>>, vector<1x32x256xf32>
    %cst = arith.constant dense<0.000000e+00> : vector<1x32xf32>
    %8 = vector.multi_reduction <add>, %7, %cst [2] : vector<1x32x256xf32> to vector<1x32xf32>
    %cst_11 = arith.constant 3.906250e-03 : f32
    %9 = vector.broadcast %cst_11 : f32 to vector<1x32xf32>
    %10 = arith.mulf %8, %9 : vector<1x32xf32>
    %11 = tpu.concatenate %10, %3 in 1 : vector<1x32xf32>, vector<1x32xf32> -> vector<1x64xf32>
    %c0_12 = arith.constant 0 : index
    %c0_13 = arith.constant 0 : index
    %12 = vector.load %arg3[%c0_12, %c0_13] : memref<64x128xf32, #tpu.memory_space<vmem>>, vector<64x128xf32>
    %cst_14 = arith.constant dense<0.000000e+00> : vector<1x128xf32>
    %13 = tpu.matmul %11, %12, %cst_14 {dimension_numbers = #tpu.dot_dimension_numbers<[1], [0], [0], [1], [0, 0, 1, 1], [], []>} : vector<1x64xf32>, vector<64x128xf32>, vector<1x128xf32> -> vector<1x128xf32>
    %c0_15 = arith.constant 0 : index
    %c0_16 = arith.constant 0 : index
    %14 = vector.load %arg4[%c0_15, %c0_16] : memref<1x128xf32, #tpu.memory_space<vmem>>, vector<1x128xf32>
    %15 = arith.addf %13, %14 : vector<1x128xf32>
    %16 = vector.extract_strided_slice %15 {offsets = [0, 0], sizes = [1, 32], strides = [1, 1]} : vector<1x128xf32> to vector<1x32xf32>
    %17 = arith.negf %16 : vector<1x32xf32>
    %18 = math.exp %17 : vector<1x32xf32>
    %cst_17 = arith.constant 1.000000e+00 : f32
    %19 = vector.broadcast %cst_17 : f32 to vector<1x32xf32>
    %20 = arith.addf %19, %18 : vector<1x32xf32>
    %21 = arith.divf %19, %20 : vector<1x32xf32>
    %22 = vector.extract_strided_slice %15 {offsets = [0, 32], sizes = [1, 32], strides = [1, 1]} : vector<1x128xf32> to vector<1x32xf32>
    %23 = arith.negf %22 : vector<1x32xf32>
    %24 = math.exp %23 : vector<1x32xf32>
    %cst_18 = arith.constant 1.000000e+00 : f32
    %25 = vector.broadcast %cst_18 : f32 to vector<1x32xf32>
    %26 = arith.addf %25, %24 : vector<1x32xf32>
    %27 = arith.divf %25, %26 : vector<1x32xf32>
    %28 = vector.extract_strided_slice %15 {offsets = [0, 64], sizes = [1, 32], strides = [1, 1]} : vector<1x128xf32> to vector<1x32xf32>
    %29 = math.tanh %28 : vector<1x32xf32>
    %30 = vector.extract_strided_slice %15 {offsets = [0, 96], sizes = [1, 32], strides = [1, 1]} : vector<1x128xf32> to vector<1x32xf32>
    %31 = arith.negf %30 : vector<1x32xf32>
    %32 = math.exp %31 : vector<1x32xf32>
    %cst_19 = arith.constant 1.000000e+00 : f32
    %33 = vector.broadcast %cst_19 : f32 to vector<1x32xf32>
    %34 = arith.addf %33, %32 : vector<1x32xf32>
    %35 = arith.divf %33, %34 : vector<1x32xf32>
    %36 = arith.mulf %27, %4 : vector<1x32xf32>
    %37 = arith.mulf %21, %29 : vector<1x32xf32>
    %38 = arith.addf %36, %37 : vector<1x32xf32>
    %39 = math.tanh %38 : vector<1x32xf32>
    %40 = arith.mulf %35, %39 : vector<1x32xf32>
    %41 = tpu.concatenate %40, %5 in 1 : vector<1x32xf32>, vector<1x32xf32> -> vector<1x64xf32>
    %c0_20 = arith.constant 0 : index
    %c0_21 = arith.constant 0 : index
    %42 = vector.load %arg5[%c0_20, %c0_21] : memref<64x128xf32, #tpu.memory_space<vmem>>, vector<64x128xf32>
    %cst_22 = arith.constant dense<0.000000e+00> : vector<1x128xf32>
    %43 = tpu.matmul %41, %42, %cst_22 {dimension_numbers = #tpu.dot_dimension_numbers<[1], [0], [0], [1], [0, 0, 1, 1], [], []>} : vector<1x64xf32>, vector<64x128xf32>, vector<1x128xf32> -> vector<1x128xf32>
    %c0_23 = arith.constant 0 : index
    %c0_24 = arith.constant 0 : index
    %44 = vector.load %arg6[%c0_23, %c0_24] : memref<1x128xf32, #tpu.memory_space<vmem>>, vector<1x128xf32>
    %45 = arith.addf %43, %44 : vector<1x128xf32>
    %46 = vector.extract_strided_slice %45 {offsets = [0, 0], sizes = [1, 32], strides = [1, 1]} : vector<1x128xf32> to vector<1x32xf32>
    %47 = arith.negf %46 : vector<1x32xf32>
    %48 = math.exp %47 : vector<1x32xf32>
    %cst_25 = arith.constant 1.000000e+00 : f32
    %49 = vector.broadcast %cst_25 : f32 to vector<1x32xf32>
    %50 = arith.addf %49, %48 : vector<1x32xf32>
    %51 = arith.divf %49, %50 : vector<1x32xf32>
    %52 = vector.extract_strided_slice %45 {offsets = [0, 32], sizes = [1, 32], strides = [1, 1]} : vector<1x128xf32> to vector<1x32xf32>
    %53 = arith.negf %52 : vector<1x32xf32>
    %54 = math.exp %53 : vector<1x32xf32>
    %cst_26 = arith.constant 1.000000e+00 : f32
    %55 = vector.broadcast %cst_26 : f32 to vector<1x32xf32>
    %56 = arith.addf %55, %54 : vector<1x32xf32>
    %57 = arith.divf %55, %56 : vector<1x32xf32>
    %58 = vector.extract_strided_slice %45 {offsets = [0, 64], sizes = [1, 32], strides = [1, 1]} : vector<1x128xf32> to vector<1x32xf32>
    %59 = math.tanh %58 : vector<1x32xf32>
    %60 = vector.extract_strided_slice %45 {offsets = [0, 96], sizes = [1, 32], strides = [1, 1]} : vector<1x128xf32> to vector<1x32xf32>
    %61 = arith.negf %60 : vector<1x32xf32>
    %62 = math.exp %61 : vector<1x32xf32>
    %cst_27 = arith.constant 1.000000e+00 : f32
    %63 = vector.broadcast %cst_27 : f32 to vector<1x32xf32>
    %64 = arith.addf %63, %62 : vector<1x32xf32>
    %65 = arith.divf %63, %64 : vector<1x32xf32>
    %66 = arith.mulf %57, %6 : vector<1x32xf32>
    %67 = arith.mulf %51, %59 : vector<1x32xf32>
    %68 = arith.addf %66, %67 : vector<1x32xf32>
    %69 = math.tanh %68 : vector<1x32xf32>
    %70 = arith.mulf %65, %69 : vector<1x32xf32>
    %71 = vector.shape_cast %70 : vector<1x32xf32> to vector<1x32x1xf32>
    %72 = vector.broadcast %71 : vector<1x32x1xf32> to vector<1x32x256xf32>
    %73 = arith.mulf %7, %72 : vector<1x32x256xf32>
    %c0_28 = arith.constant 0 : index
    %c0_29 = arith.constant 0 : index
    %c0_30 = arith.constant 0 : index
    %74 = vector.load %arg7[%c0_28, %c0_29, %c0_30] : memref<1x32x2048xf32, #tpu.memory_space<vmem>>, vector<1x32x256xf32>
    tpu.vector_store %arg7[%c0_28, %c0_29, %c0_30], %73 {strides = array<i32>} : memref<1x32x2048xf32, #tpu.memory_space<vmem>>, vector<1x32x256xf32>,
    %c0_31 = arith.constant 0 : index
    %c0_32 = arith.constant 0 : index
    %c256 = arith.constant 256 : index
    %75 = vector.load %arg2[%c0_31, %c0_32, %c256] : memref<1x32x2048xf32, #tpu.memory_space<vmem>>, vector<1x32x256xf32>
    %cst_33 = arith.constant dense<0.000000e+00> : vector<1x32xf32>
    %76 = vector.multi_reduction <add>, %75, %cst_33 [2] : vector<1x32x256xf32> to vector<1x32xf32>
    %cst_34 = arith.constant 3.906250e-03 : f32
    %77 = vector.broadcast %cst_34 : f32 to vector<1x32xf32>
    %78 = arith.mulf %76, %77 : vector<1x32xf32>
    %79 = tpu.concatenate %78, %40 in 1 : vector<1x32xf32>, vector<1x32xf32> -> vector<1x64xf32>
    %c0_35 = arith.constant 0 : index
    %c0_36 = arith.constant 0 : index
    %80 = vector.load %arg3[%c0_35, %c0_36] : memref<64x128xf32, #tpu.memory_space<vmem>>, vector<64x128xf32>
    %cst_37 = arith.constant dense<0.000000e+00> : vector<1x128xf32>
    %81 = tpu.matmul %79, %80, %cst_37 {dimension_numbers = #tpu.dot_dimension_numbers<[1], [0], [0], [1], [0, 0, 1, 1], [], []>} : vector<1x64xf32>, vector<64x128xf32>, vector<1x128xf32> -> vector<1x128xf32>
    %c0_38 = arith.constant 0 : index
    %c0_39 = arith.constant 0 : index
    %82 = vector.load %arg4[%c0_38, %c0_39] : memref<1x128xf32, #tpu.memory_space<vmem>>, vector<1x128xf32>
    %83 = arith.addf %81, %82 : vector<1x128xf32>
    %84 = vector.extract_strided_slice %83 {offsets = [0, 0], sizes = [1, 32], strides = [1, 1]} : vector<1x128xf32> to vector<1x32xf32>
    %85 = arith.negf %84 : vector<1x32xf32>
    %86 = math.exp %85 : vector<1x32xf32>
    %cst_40 = arith.constant 1.000000e+00 : f32
    %87 = vector.broadcast %cst_40 : f32 to vector<1x32xf32>
    %88 = arith.addf %87, %86 : vector<1x32xf32>
    %89 = arith.divf %87, %88 : vector<1x32xf32>
    %90 = vector.extract_strided_slice %83 {offsets = [0, 32], sizes = [1, 32], strides = [1, 1]} : vector<1x128xf32> to vector<1x32xf32>
    %91 = arith.negf %90 : vector<1x32xf32>
    %92 = math.exp %91 : vector<1x32xf32>
    %cst_41 = arith.constant 1.000000e+00 : f32
    %93 = vector.broadcast %cst_41 : f32 to vector<1x32xf32>
    %94 = arith.addf %93, %92 : vector<1x32xf32>
    %95 = arith.divf %93, %94 : vector<1x32xf32>
    %96 = vector.extract_strided_slice %83 {offsets = [0, 64], sizes = [1, 32], strides = [1, 1]} : vector<1x128xf32> to vector<1x32xf32>
    %97 = math.tanh %96 : vector<1x32xf32>
    %98 = vector.extract_strided_slice %83 {offsets = [0, 96], sizes = [1, 32], strides = [1, 1]} : vector<1x128xf32> to vector<1x32xf32>
    %99 = arith.negf %98 : vector<1x32xf32>
    %100 = math.exp %99 : vector<1x32xf32>
    %cst_42 = arith.constant 1.000000e+00 : f32
    %101 = vector.broadcast %cst_42 : f32 to vector<1x32xf32>
    %102 = arith.addf %101, %100 : vector<1x32xf32>
    %103 = arith.divf %101, %102 : vector<1x32xf32>
    %104 = arith.mulf %95, %38 : vector<1x32xf32>
    %105 = arith.mulf %89, %97 : vector<1x32xf32>
    %106 = arith.addf %104, %105 : vector<1x32xf32>
    %107 = math.tanh %106 : vector<1x32xf32>
    %108 = arith.mulf %103, %107 : vector<1x32xf32>
    %109 = tpu.concatenate %108, %70 in 1 : vector<1x32xf32>, vector<1x32xf32> -> vector<1x64xf32>
    %c0_43 = arith.constant 0 : index
    %c0_44 = arith.constant 0 : index
    %110 = vector.load %arg5[%c0_43, %c0_44] : memref<64x128xf32, #tpu.memory_space<vmem>>, vector<64x128xf32>
    %cst_45 = arith.constant dense<0.000000e+00> : vector<1x128xf32>
    %111 = tpu.matmul %109, %110, %cst_45 {dimension_numbers = #tpu.dot_dimension_numbers<[1], [0], [0], [1], [0, 0, 1, 1], [], []>} : vector<1x64xf32>, vector<64x128xf32>, vector<1x128xf32> -> vector<1x128xf32>
    %c0_46 = arith.constant 0 : index
    %c0_47 = arith.constant 0 : index
    %112 = vector.load %arg6[%c0_46, %c0_47] : memref<1x128xf32, #tpu.memory_space<vmem>>, vector<1x128xf32>
    %113 = arith.addf %111, %112 : vector<1x128xf32>
    %114 = vector.extract_strided_slice %113 {offsets = [0, 0], sizes = [1, 32], strides = [1, 1]} : vector<1x128xf32> to vector<1x32xf32>
    %115 = arith.negf %114 : vector<1x32xf32>
    %116 = math.exp %115 : vector<1x32xf32>
    %cst_48 = arith.constant 1.000000e+00 : f32
    %117 = vector.broadcast %cst_48 : f32 to vector<1x32xf32>
    %118 = arith.addf %117, %116 : vector<1x32xf32>
    %119 = arith.divf %117, %118 : vector<1x32xf32>
    %120 = vector.extract_strided_slice %113 {offsets = [0, 32], sizes = [1, 32], strides = [1, 1]} : vector<1x128xf32> to vector<1x32xf32>
    %121 = arith.negf %120 : vector<1x32xf32>
    %122 = math.exp %121 : vector<1x32xf32>
    %cst_49 = arith.constant 1.000000e+00 : f32
    %123 = vector.broadcast %cst_49 : f32 to vector<1x32xf32>
    %124 = arith.addf %123, %122 : vector<1x32xf32>
    %125 = arith.divf %123, %124 : vector<1x32xf32>
    %126 = vector.extract_strided_slice %113 {offsets = [0, 64], sizes = [1, 32], strides = [1, 1]} : vector<1x128xf32> to vector<1x32xf32>
    %127 = math.tanh %126 : vector<1x32xf32>
    %128 = vector.extract_strided_slice %113 {offsets = [0, 96], sizes = [1, 32], strides = [1, 1]} : vector<1x128xf32> to vector<1x32xf32>
    %129 = arith.negf %128 : vector<1x32xf32>
    %130 = math.exp %129 : vector<1x32xf32>
    %cst_50 = arith.constant 1.000000e+00 : f32
    %131 = vector.broadcast %cst_50 : f32 to vector<1x32xf32>
    %132 = arith.addf %131, %130 : vector<1x32xf32>
    %133 = arith.divf %131, %132 : vector<1x32xf32>
    %134 = arith.mulf %125, %68 : vector<1x32xf32>
    %135 = arith.mulf %119, %127 : vector<1x32xf32>
    %136 = arith.addf %134, %135 : vector<1x32xf32>
    %137 = math.tanh %136 : vector<1x32xf32>
    %138 = arith.mulf %133, %137 : vector<1x32xf32>
    %139 = vector.shape_cast %138 : vector<1x32xf32> to vector<1x32x1xf32>
    %140 = vector.broadcast %139 : vector<1x32x1xf32> to vector<1x32x256xf32>
    %141 = arith.mulf %75, %140 : vector<1x32x256xf32>
    %c0_51 = arith.constant 0 : index
    %c0_52 = arith.constant 0 : index
    %c256_53 = arith.constant 256 : index
    %142 = vector.load %arg7[%c0_51, %c0_52, %c256_53] : memref<1x32x2048xf32, #tpu.memory_space<vmem>>, vector<1x32x256xf32>
    tpu.vector_store %arg7[%c0_51, %c0_52, %c256_53], %141 {strides = array<i32>} : memref<1x32x2048xf32, #tpu.memory_space<vmem>>, vector<1x32x256xf32>,
    %c0_54 = arith.constant 0 : index
    %c0_55 = arith.constant 0 : index
    %c512 = arith.constant 512 : index
    %143 = vector.load %arg2[%c0_54, %c0_55, %c512] : memref<1x32x2048xf32, #tpu.memory_space<vmem>>, vector<1x32x256xf32>
    %cst_56 = arith.constant dense<0.000000e+00> : vector<1x32xf32>
    %144 = vector.multi_reduction <add>, %143, %cst_56 [2] : vector<1x32x256xf32> to vector<1x32xf32>
    %cst_57 = arith.constant 3.906250e-03 : f32
    %145 = vector.broadcast %cst_57 : f32 to vector<1x32xf32>
    %146 = arith.mulf %144, %145 : vector<1x32xf32>
    %147 = tpu.concatenate %146, %108 in 1 : vector<1x32xf32>, vector<1x32xf32> -> vector<1x64xf32>
    %c0_58 = arith.constant 0 : index
    %c0_59 = arith.constant 0 : index
    %148 = vector.load %arg3[%c0_58, %c0_59] : memref<64x128xf32, #tpu.memory_space<vmem>>, vector<64x128xf32>
    %cst_60 = arith.constant dense<0.000000e+00> : vector<1x128xf32>
    %149 = tpu.matmul %147, %148, %cst_60 {dimension_numbers = #tpu.dot_dimension_numbers<[1], [0], [0], [1], [0, 0, 1, 1], [], []>} : vector<1x64xf32>, vector<64x128xf32>, vector<1x128xf32> -> vector<1x128xf32>
    %c0_61 = arith.constant 0 : index
    %c0_62 = arith.constant 0 : index
    %150 = vector.load %arg4[%c0_61, %c0_62] : memref<1x128xf32, #tpu.memory_space<vmem>>, vector<1x128xf32>
    %151 = arith.addf %149, %150 : vector<1x128xf32>
    %152 = vector.extract_strided_slice %151 {offsets = [0, 0], sizes = [1, 32], strides = [1, 1]} : vector<1x128xf32> to vector<1x32xf32>
    %153 = arith.negf %152 : vector<1x32xf32>
    %154 = math.exp %153 : vector<1x32xf32>
    %cst_63 = arith.constant 1.000000e+00 : f32
    %155 = vector.broadcast %cst_63 : f32 to vector<1x32xf32>
    %156 = arith.addf %155, %154 : vector<1x32xf32>
    %157 = arith.divf %155, %156 : vector<1x32xf32>
    %158 = vector.extract_strided_slice %151 {offsets = [0, 32], sizes = [1, 32], strides = [1, 1]} : vector<1x128xf32> to vector<1x32xf32>
    %159 = arith.negf %158 : vector<1x32xf32>
    %160 = math.exp %159 : vector<1x32xf32>
    %cst_64 = arith.constant 1.000000e+00 : f32
    %161 = vector.broadcast %cst_64 : f32 to vector<1x32xf32>
    %162 = arith.addf %161, %160 : vector<1x32xf32>
    %163 = arith.divf %161, %162 : vector<1x32xf32>
    %164 = vector.extract_strided_slice %151 {offsets = [0, 64], sizes = [1, 32], strides = [1, 1]} : vector<1x128xf32> to vector<1x32xf32>
    %165 = math.tanh %164 : vector<1x32xf32>
    %166 = vector.extract_strided_slice %151 {offsets = [0, 96], sizes = [1, 32], strides = [1, 1]} : vector<1x128xf32> to vector<1x32xf32>
    %167 = arith.negf %166 : vector<1x32xf32>
    %168 = math.exp %167 : vector<1x32xf32>
    %cst_65 = arith.constant 1.000000e+00 : f32
    %169 = vector.broadcast %cst_65 : f32 to vector<1x32xf32>
    %170 = arith.addf %169, %168 : vector<1x32xf32>
    %171 = arith.divf %169, %170 : vector<1x32xf32>
    %172 = arith.mulf %163, %106 : vector<1x32xf32>
    %173 = arith.mulf %157, %165 : vector<1x32xf32>
    %174 = arith.addf %172, %173 : vector<1x32xf32>
    %175 = math.tanh %174 : vector<1x32xf32>
    %176 = arith.mulf %171, %175 : vector<1x32xf32>
    %177 = tpu.concatenate %176, %138 in 1 : vector<1x32xf32>, vector<1x32xf32> -> vector<1x64xf32>
    %c0_66 = arith.constant 0 : index
    %c0_67 = arith.constant 0 : index
    %178 = vector.load %arg5[%c0_66, %c0_67] : memref<64x128xf32, #tpu.memory_space<vmem>>, vector<64x128xf32>
    %cst_68 = arith.constant dense<0.000000e+00> : vector<1x128xf32>
    %179 = tpu.matmul %177, %178, %cst_68 {dimension_numbers = #tpu.dot_dimension_numbers<[1], [0], [0], [1], [0, 0, 1, 1], [], []>} : vector<1x64xf32>, vector<64x128xf32>, vector<1x128xf32> -> vector<1x128xf32>
    %c0_69 = arith.constant 0 : index
    %c0_70 = arith.constant 0 : index
    %180 = vector.load %arg6[%c0_69, %c0_70] : memref<1x128xf32, #tpu.memory_space<vmem>>, vector<1x128xf32>
    %181 = arith.addf %179, %180 : vector<1x128xf32>
    %182 = vector.extract_strided_slice %181 {offsets = [0, 0], sizes = [1, 32], strides = [1, 1]} : vector<1x128xf32> to vector<1x32xf32>
    %183 = arith.negf %182 : vector<1x32xf32>
    %184 = math.exp %183 : vector<1x32xf32>
    %cst_71 = arith.constant 1.000000e+00 : f32
    %185 = vector.broadcast %cst_71 : f32 to vector<1x32xf32>
    %186 = arith.addf %185, %184 : vector<1x32xf32>
    %187 = arith.divf %185, %186 : vector<1x32xf32>
    %188 = vector.extract_strided_slice %181 {offsets = [0, 32], sizes = [1, 32], strides = [1, 1]} : vector<1x128xf32> to vector<1x32xf32>
    %189 = arith.negf %188 : vector<1x32xf32>
    %190 = math.exp %189 : vector<1x32xf32>
    %cst_72 = arith.constant 1.000000e+00 : f32
    %191 = vector.broadcast %cst_72 : f32 to vector<1x32xf32>
    %192 = arith.addf %191, %190 : vector<1x32xf32>
    %193 = arith.divf %191, %192 : vector<1x32xf32>
    %194 = vector.extract_strided_slice %181 {offsets = [0, 64], sizes = [1, 32], strides = [1, 1]} : vector<1x128xf32> to vector<1x32xf32>
    %195 = math.tanh %194 : vector<1x32xf32>
    %196 = vector.extract_strided_slice %181 {offsets = [0, 96], sizes = [1, 32], strides = [1, 1]} : vector<1x128xf32> to vector<1x32xf32>
    %197 = arith.negf %196 : vector<1x32xf32>
    %198 = math.exp %197 : vector<1x32xf32>
    %cst_73 = arith.constant 1.000000e+00 : f32
    %199 = vector.broadcast %cst_73 : f32 to vector<1x32xf32>
    %200 = arith.addf %199, %198 : vector<1x32xf32>
    %201 = arith.divf %199, %200 : vector<1x32xf32>
    %202 = arith.mulf %193, %136 : vector<1x32xf32>
    %203 = arith.mulf %187, %195 : vector<1x32xf32>
    %204 = arith.addf %202, %203 : vector<1x32xf32>
    %205 = math.tanh %204 : vector<1x32xf32>
    %206 = arith.mulf %201, %205 : vector<1x32xf32>
    %207 = vector.shape_cast %206 : vector<1x32xf32> to vector<1x32x1xf32>
    %208 = vector.broadcast %207 : vector<1x32x1xf32> to vector<1x32x256xf32>
    %209 = arith.mulf %143, %208 : vector<1x32x256xf32>
    %c0_74 = arith.constant 0 : index
    %c0_75 = arith.constant 0 : index
    %c512_76 = arith.constant 512 : index
    %210 = vector.load %arg7[%c0_74, %c0_75, %c512_76] : memref<1x32x2048xf32, #tpu.memory_space<vmem>>, vector<1x32x256xf32>
    tpu.vector_store %arg7[%c0_74, %c0_75, %c512_76], %209 {strides = array<i32>} : memref<1x32x2048xf32, #tpu.memory_space<vmem>>, vector<1x32x256xf32>,
    %c0_77 = arith.constant 0 : index
    %c0_78 = arith.constant 0 : index
    %c768 = arith.constant 768 : index
    %211 = vector.load %arg2[%c0_77, %c0_78, %c768] : memref<1x32x2048xf32, #tpu.memory_space<vmem>>, vector<1x32x256xf32>
    %cst_79 = arith.constant dense<0.000000e+00> : vector<1x32xf32>
    %212 = vector.multi_reduction <add>, %211, %cst_79 [2] : vector<1x32x256xf32> to vector<1x32xf32>
    %cst_80 = arith.constant 3.906250e-03 : f32
    %213 = vector.broadcast %cst_80 : f32 to vector<1x32xf32>
    %214 = arith.mulf %212, %213 : vector<1x32xf32>
    %215 = tpu.concatenate %214, %176 in 1 : vector<1x32xf32>, vector<1x32xf32> -> vector<1x64xf32>
    %c0_81 = arith.constant 0 : index
    %c0_82 = arith.constant 0 : index
    %216 = vector.load %arg3[%c0_81, %c0_82] : memref<64x128xf32, #tpu.memory_space<vmem>>, vector<64x128xf32>
    %cst_83 = arith.constant dense<0.000000e+00> : vector<1x128xf32>
    %217 = tpu.matmul %215, %216, %cst_83 {dimension_numbers = #tpu.dot_dimension_numbers<[1], [0], [0], [1], [0, 0, 1, 1], [], []>} : vector<1x64xf32>, vector<64x128xf32>, vector<1x128xf32> -> vector<1x128xf32>
    %c0_84 = arith.constant 0 : index
    %c0_85 = arith.constant 0 : index
    %218 = vector.load %arg4[%c0_84, %c0_85] : memref<1x128xf32, #tpu.memory_space<vmem>>, vector<1x128xf32>
    %219 = arith.addf %217, %218 : vector<1x128xf32>
    %220 = vector.extract_strided_slice %219 {offsets = [0, 0], sizes = [1, 32], strides = [1, 1]} : vector<1x128xf32> to vector<1x32xf32>
    %221 = arith.negf %220 : vector<1x32xf32>
    %222 = math.exp %221 : vector<1x32xf32>
    %cst_86 = arith.constant 1.000000e+00 : f32
    %223 = vector.broadcast %cst_86 : f32 to vector<1x32xf32>
    %224 = arith.addf %223, %222 : vector<1x32xf32>
    %225 = arith.divf %223, %224 : vector<1x32xf32>
    %226 = vector.extract_strided_slice %219 {offsets = [0, 32], sizes = [1, 32], strides = [1, 1]} : vector<1x128xf32> to vector<1x32xf32>
    %227 = arith.negf %226 : vector<1x32xf32>
    %228 = math.exp %227 : vector<1x32xf32>
    %cst_87 = arith.constant 1.000000e+00 : f32
    %229 = vector.broadcast %cst_87 : f32 to vector<1x32xf32>
    %230 = arith.addf %229, %228 : vector<1x32xf32>
    %231 = arith.divf %229, %230 : vector<1x32xf32>
    %232 = vector.extract_strided_slice %219 {offsets = [0, 64], sizes = [1, 32], strides = [1, 1]} : vector<1x128xf32> to vector<1x32xf32>
    %233 = math.tanh %232 : vector<1x32xf32>
    %234 = vector.extract_strided_slice %219 {offsets = [0, 96], sizes = [1, 32], strides = [1, 1]} : vector<1x128xf32> to vector<1x32xf32>
    %235 = arith.negf %234 : vector<1x32xf32>
    %236 = math.exp %235 : vector<1x32xf32>
    %cst_88 = arith.constant 1.000000e+00 : f32
    %237 = vector.broadcast %cst_88 : f32 to vector<1x32xf32>
    %238 = arith.addf %237, %236 : vector<1x32xf32>
    %239 = arith.divf %237, %238 : vector<1x32xf32>
    %240 = arith.mulf %231, %174 : vector<1x32xf32>
    %241 = arith.mulf %225, %233 : vector<1x32xf32>
    %242 = arith.addf %240, %241 : vector<1x32xf32>
    %243 = math.tanh %242 : vector<1x32xf32>
    %244 = arith.mulf %239, %243 : vector<1x32xf32>
    %245 = tpu.concatenate %244, %206 in 1 : vector<1x32xf32>, vector<1x32xf32> -> vector<1x64xf32>
    %c0_89 = arith.constant 0 : index
    %c0_90 = arith.constant 0 : index
    %246 = vector.load %arg5[%c0_89, %c0_90] : memref<64x128xf32, #tpu.memory_space<vmem>>, vector<64x128xf32>
    %cst_91 = arith.constant dense<0.000000e+00> : vector<1x128xf32>
    %247 = tpu.matmul %245, %246, %cst_91 {dimension_numbers = #tpu.dot_dimension_numbers<[1], [0], [0], [1], [0, 0, 1, 1], [], []>} : vector<1x64xf32>, vector<64x128xf32>, vector<1x128xf32> -> vector<1x128xf32>
    %c0_92 = arith.constant 0 : index
    %c0_93 = arith.constant 0 : index
    %248 = vector.load %arg6[%c0_92, %c0_93] : memref<1x128xf32, #tpu.memory_space<vmem>>, vector<1x128xf32>
    %249 = arith.addf %247, %248 : vector<1x128xf32>
    %250 = vector.extract_strided_slice %249 {offsets = [0, 0], sizes = [1, 32], strides = [1, 1]} : vector<1x128xf32> to vector<1x32xf32>
    %251 = arith.negf %250 : vector<1x32xf32>
    %252 = math.exp %251 : vector<1x32xf32>
    %cst_94 = arith.constant 1.000000e+00 : f32
    %253 = vector.broadcast %cst_94 : f32 to vector<1x32xf32>
    %254 = arith.addf %253, %252 : vector<1x32xf32>
    %255 = arith.divf %253, %254 : vector<1x32xf32>
    %256 = vector.extract_strided_slice %249 {offsets = [0, 32], sizes = [1, 32], strides = [1, 1]} : vector<1x128xf32> to vector<1x32xf32>
    %257 = arith.negf %256 : vector<1x32xf32>
    %258 = math.exp %257 : vector<1x32xf32>
    %cst_95 = arith.constant 1.000000e+00 : f32
    %259 = vector.broadcast %cst_95 : f32 to vector<1x32xf32>
    %260 = arith.addf %259, %258 : vector<1x32xf32>
    %261 = arith.divf %259, %260 : vector<1x32xf32>
    %262 = vector.extract_strided_slice %249 {offsets = [0, 64], sizes = [1, 32], strides = [1, 1]} : vector<1x128xf32> to vector<1x32xf32>
    %263 = math.tanh %262 : vector<1x32xf32>
    %264 = vector.extract_strided_slice %249 {offsets = [0, 96], sizes = [1, 32], strides = [1, 1]} : vector<1x128xf32> to vector<1x32xf32>
    %265 = arith.negf %264 : vector<1x32xf32>
    %266 = math.exp %265 : vector<1x32xf32>
    %cst_96 = arith.constant 1.000000e+00 : f32
    %267 = vector.broadcast %cst_96 : f32 to vector<1x32xf32>
    %268 = arith.addf %267, %266 : vector<1x32xf32>
    %269 = arith.divf %267, %268 : vector<1x32xf32>
    %270 = arith.mulf %261, %204 : vector<1x32xf32>
    %271 = arith.mulf %255, %263 : vector<1x32xf32>
    %272 = arith.addf %270, %271 : vector<1x32xf32>
    %273 = math.tanh %272 : vector<1x32xf32>
    %274 = arith.mulf %269, %273 : vector<1x32xf32>
    %275 = vector.shape_cast %274 : vector<1x32xf32> to vector<1x32x1xf32>
    %276 = vector.broadcast %275 : vector<1x32x1xf32> to vector<1x32x256xf32>
    %277 = arith.mulf %211, %276 : vector<1x32x256xf32>
    %c0_97 = arith.constant 0 : index
    %c0_98 = arith.constant 0 : index
    %c768_99 = arith.constant 768 : index
    %278 = vector.load %arg7[%c0_97, %c0_98, %c768_99] : memref<1x32x2048xf32, #tpu.memory_space<vmem>>, vector<1x32x256xf32>
    tpu.vector_store %arg7[%c0_97, %c0_98, %c768_99], %277 {strides = array<i32>} : memref<1x32x2048xf32, #tpu.memory_space<vmem>>, vector<1x32x256xf32>,
    %c0_100 = arith.constant 0 : index
    %c0_101 = arith.constant 0 : index
    %c1024 = arith.constant 1024 : index
    %279 = vector.load %arg2[%c0_100, %c0_101, %c1024] : memref<1x32x2048xf32, #tpu.memory_space<vmem>>, vector<1x32x256xf32>
    %cst_102 = arith.constant dense<0.000000e+00> : vector<1x32xf32>
    %280 = vector.multi_reduction <add>, %279, %cst_102 [2] : vector<1x32x256xf32> to vector<1x32xf32>
    %cst_103 = arith.constant 3.906250e-03 : f32
    %281 = vector.broadcast %cst_103 : f32 to vector<1x32xf32>
    %282 = arith.mulf %280, %281 : vector<1x32xf32>
    %283 = tpu.concatenate %282, %244 in 1 : vector<1x32xf32>, vector<1x32xf32> -> vector<1x64xf32>
    %c0_104 = arith.constant 0 : index
    %c0_105 = arith.constant 0 : index
    %284 = vector.load %arg3[%c0_104, %c0_105] : memref<64x128xf32, #tpu.memory_space<vmem>>, vector<64x128xf32>
    %cst_106 = arith.constant dense<0.000000e+00> : vector<1x128xf32>
    %285 = tpu.matmul %283, %284, %cst_106 {dimension_numbers = #tpu.dot_dimension_numbers<[1], [0], [0], [1], [0, 0, 1, 1], [], []>} : vector<1x64xf32>, vector<64x128xf32>, vector<1x128xf32> -> vector<1x128xf32>
    %c0_107 = arith.constant 0 : index
    %c0_108 = arith.constant 0 : index
    %286 = vector.load %arg4[%c0_107, %c0_108] : memref<1x128xf32, #tpu.memory_space<vmem>>, vector<1x128xf32>
    %287 = arith.addf %285, %286 : vector<1x128xf32>
    %288 = vector.extract_strided_slice %287 {offsets = [0, 0], sizes = [1, 32], strides = [1, 1]} : vector<1x128xf32> to vector<1x32xf32>
    %289 = arith.negf %288 : vector<1x32xf32>
    %290 = math.exp %289 : vector<1x32xf32>
    %cst_109 = arith.constant 1.000000e+00 : f32
    %291 = vector.broadcast %cst_109 : f32 to vector<1x32xf32>
    %292 = arith.addf %291, %290 : vector<1x32xf32>
    %293 = arith.divf %291, %292 : vector<1x32xf32>
    %294 = vector.extract_strided_slice %287 {offsets = [0, 32], sizes = [1, 32], strides = [1, 1]} : vector<1x128xf32> to vector<1x32xf32>
    %295 = arith.negf %294 : vector<1x32xf32>
    %296 = math.exp %295 : vector<1x32xf32>
    %cst_110 = arith.constant 1.000000e+00 : f32
    %297 = vector.broadcast %cst_110 : f32 to vector<1x32xf32>
    %298 = arith.addf %297, %296 : vector<1x32xf32>
    %299 = arith.divf %297, %298 : vector<1x32xf32>
    %300 = vector.extract_strided_slice %287 {offsets = [0, 64], sizes = [1, 32], strides = [1, 1]} : vector<1x128xf32> to vector<1x32xf32>
    %301 = math.tanh %300 : vector<1x32xf32>
    %302 = vector.extract_strided_slice %287 {offsets = [0, 96], sizes = [1, 32], strides = [1, 1]} : vector<1x128xf32> to vector<1x32xf32>
    %303 = arith.negf %302 : vector<1x32xf32>
    %304 = math.exp %303 : vector<1x32xf32>
    %cst_111 = arith.constant 1.000000e+00 : f32
    %305 = vector.broadcast %cst_111 : f32 to vector<1x32xf32>
    %306 = arith.addf %305, %304 : vector<1x32xf32>
    %307 = arith.divf %305, %306 : vector<1x32xf32>
    %308 = arith.mulf %299, %242 : vector<1x32xf32>
    %309 = arith.mulf %293, %301 : vector<1x32xf32>
    %310 = arith.addf %308, %309 : vector<1x32xf32>
    %311 = math.tanh %310 : vector<1x32xf32>
    %312 = arith.mulf %307, %311 : vector<1x32xf32>
    %313 = tpu.concatenate %312, %274 in 1 : vector<1x32xf32>, vector<1x32xf32> -> vector<1x64xf32>
    %c0_112 = arith.constant 0 : index
    %c0_113 = arith.constant 0 : index
    %314 = vector.load %arg5[%c0_112, %c0_113] : memref<64x128xf32, #tpu.memory_space<vmem>>, vector<64x128xf32>
    %cst_114 = arith.constant dense<0.000000e+00> : vector<1x128xf32>
    %315 = tpu.matmul %313, %314, %cst_114 {dimension_numbers = #tpu.dot_dimension_numbers<[1], [0], [0], [1], [0, 0, 1, 1], [], []>} : vector<1x64xf32>, vector<64x128xf32>, vector<1x128xf32> -> vector<1x128xf32>
    %c0_115 = arith.constant 0 : index
    %c0_116 = arith.constant 0 : index
    %316 = vector.load %arg6[%c0_115, %c0_116] : memref<1x128xf32, #tpu.memory_space<vmem>>, vector<1x128xf32>
    %317 = arith.addf %315, %316 : vector<1x128xf32>
    %318 = vector.extract_strided_slice %317 {offsets = [0, 0], sizes = [1, 32], strides = [1, 1]} : vector<1x128xf32> to vector<1x32xf32>
    %319 = arith.negf %318 : vector<1x32xf32>
    %320 = math.exp %319 : vector<1x32xf32>
    %cst_117 = arith.constant 1.000000e+00 : f32
    %321 = vector.broadcast %cst_117 : f32 to vector<1x32xf32>
    %322 = arith.addf %321, %320 : vector<1x32xf32>
    %323 = arith.divf %321, %322 : vector<1x32xf32>
    %324 = vector.extract_strided_slice %317 {offsets = [0, 32], sizes = [1, 32], strides = [1, 1]} : vector<1x128xf32> to vector<1x32xf32>
    %325 = arith.negf %324 : vector<1x32xf32>
    %326 = math.exp %325 : vector<1x32xf32>
    %cst_118 = arith.constant 1.000000e+00 : f32
    %327 = vector.broadcast %cst_118 : f32 to vector<1x32xf32>
    %328 = arith.addf %327, %326 : vector<1x32xf32>
    %329 = arith.divf %327, %328 : vector<1x32xf32>
    %330 = vector.extract_strided_slice %317 {offsets = [0, 64], sizes = [1, 32], strides = [1, 1]} : vector<1x128xf32> to vector<1x32xf32>
    %331 = math.tanh %330 : vector<1x32xf32>
    %332 = vector.extract_strided_slice %317 {offsets = [0, 96], sizes = [1, 32], strides = [1, 1]} : vector<1x128xf32> to vector<1x32xf32>
    %333 = arith.negf %332 : vector<1x32xf32>
    %334 = math.exp %333 : vector<1x32xf32>
    %cst_119 = arith.constant 1.000000e+00 : f32
    %335 = vector.broadcast %cst_119 : f32 to vector<1x32xf32>
    %336 = arith.addf %335, %334 : vector<1x32xf32>
    %337 = arith.divf %335, %336 : vector<1x32xf32>
    %338 = arith.mulf %329, %272 : vector<1x32xf32>
    %339 = arith.mulf %323, %331 : vector<1x32xf32>
    %340 = arith.addf %338, %339 : vector<1x32xf32>
    %341 = math.tanh %340 : vector<1x32xf32>
    %342 = arith.mulf %337, %341 : vector<1x32xf32>
    %343 = vector.shape_cast %342 : vector<1x32xf32> to vector<1x32x1xf32>
    %344 = vector.broadcast %343 : vector<1x32x1xf32> to vector<1x32x256xf32>
    %345 = arith.mulf %279, %344 : vector<1x32x256xf32>
    %c0_120 = arith.constant 0 : index
    %c0_121 = arith.constant 0 : index
    %c1024_122 = arith.constant 1024 : index
    %346 = vector.load %arg7[%c0_120, %c0_121, %c1024_122] : memref<1x32x2048xf32, #tpu.memory_space<vmem>>, vector<1x32x256xf32>
    tpu.vector_store %arg7[%c0_120, %c0_121, %c1024_122], %345 {strides = array<i32>} : memref<1x32x2048xf32, #tpu.memory_space<vmem>>, vector<1x32x256xf32>,
    %c0_123 = arith.constant 0 : index
    %c0_124 = arith.constant 0 : index
    %c1280 = arith.constant 1280 : index
    %347 = vector.load %arg2[%c0_123, %c0_124, %c1280] : memref<1x32x2048xf32, #tpu.memory_space<vmem>>, vector<1x32x256xf32>
    %cst_125 = arith.constant dense<0.000000e+00> : vector<1x32xf32>
    %348 = vector.multi_reduction <add>, %347, %cst_125 [2] : vector<1x32x256xf32> to vector<1x32xf32>
    %cst_126 = arith.constant 3.906250e-03 : f32
    %349 = vector.broadcast %cst_126 : f32 to vector<1x32xf32>
    %350 = arith.mulf %348, %349 : vector<1x32xf32>
    %351 = tpu.concatenate %350, %312 in 1 : vector<1x32xf32>, vector<1x32xf32> -> vector<1x64xf32>
    %c0_127 = arith.constant 0 : index
    %c0_128 = arith.constant 0 : index
    %352 = vector.load %arg3[%c0_127, %c0_128] : memref<64x128xf32, #tpu.memory_space<vmem>>, vector<64x128xf32>
    %cst_129 = arith.constant dense<0.000000e+00> : vector<1x128xf32>
    %353 = tpu.matmul %351, %352, %cst_129 {dimension_numbers = #tpu.dot_dimension_numbers<[1], [0], [0], [1], [0, 0, 1, 1], [], []>} : vector<1x64xf32>, vector<64x128xf32>, vector<1x128xf32> -> vector<1x128xf32>
    %c0_130 = arith.constant 0 : index
    %c0_131 = arith.constant 0 : index
    %354 = vector.load %arg4[%c0_130, %c0_131] : memref<1x128xf32, #tpu.memory_space<vmem>>, vector<1x128xf32>
    %355 = arith.addf %353, %354 : vector<1x128xf32>
    %356 = vector.extract_strided_slice %355 {offsets = [0, 0], sizes = [1, 32], strides = [1, 1]} : vector<1x128xf32> to vector<1x32xf32>
    %357 = arith.negf %356 : vector<1x32xf32>
    %358 = math.exp %357 : vector<1x32xf32>
    %cst_132 = arith.constant 1.000000e+00 : f32
    %359 = vector.broadcast %cst_132 : f32 to vector<1x32xf32>
    %360 = arith.addf %359, %358 : vector<1x32xf32>
    %361 = arith.divf %359, %360 : vector<1x32xf32>
    %362 = vector.extract_strided_slice %355 {offsets = [0, 32], sizes = [1, 32], strides = [1, 1]} : vector<1x128xf32> to vector<1x32xf32>
    %363 = arith.negf %362 : vector<1x32xf32>
    %364 = math.exp %363 : vector<1x32xf32>
    %cst_133 = arith.constant 1.000000e+00 : f32
    %365 = vector.broadcast %cst_133 : f32 to vector<1x32xf32>
    %366 = arith.addf %365, %364 : vector<1x32xf32>
    %367 = arith.divf %365, %366 : vector<1x32xf32>
    %368 = vector.extract_strided_slice %355 {offsets = [0, 64], sizes = [1, 32], strides = [1, 1]} : vector<1x128xf32> to vector<1x32xf32>
    %369 = math.tanh %368 : vector<1x32xf32>
    %370 = vector.extract_strided_slice %355 {offsets = [0, 96], sizes = [1, 32], strides = [1, 1]} : vector<1x128xf32> to vector<1x32xf32>
    %371 = arith.negf %370 : vector<1x32xf32>
    %372 = math.exp %371 : vector<1x32xf32>
    %cst_134 = arith.constant 1.000000e+00 : f32
    %373 = vector.broadcast %cst_134 : f32 to vector<1x32xf32>
    %374 = arith.addf %373, %372 : vector<1x32xf32>
    %375 = arith.divf %373, %374 : vector<1x32xf32>
    %376 = arith.mulf %367, %310 : vector<1x32xf32>
    %377 = arith.mulf %361, %369 : vector<1x32xf32>
    %378 = arith.addf %376, %377 : vector<1x32xf32>
    %379 = math.tanh %378 : vector<1x32xf32>
    %380 = arith.mulf %375, %379 : vector<1x32xf32>
    %381 = tpu.concatenate %380, %342 in 1 : vector<1x32xf32>, vector<1x32xf32> -> vector<1x64xf32>
    %c0_135 = arith.constant 0 : index
    %c0_136 = arith.constant 0 : index
    %382 = vector.load %arg5[%c0_135, %c0_136] : memref<64x128xf32, #tpu.memory_space<vmem>>, vector<64x128xf32>
    %cst_137 = arith.constant dense<0.000000e+00> : vector<1x128xf32>
    %383 = tpu.matmul %381, %382, %cst_137 {dimension_numbers = #tpu.dot_dimension_numbers<[1], [0], [0], [1], [0, 0, 1, 1], [], []>} : vector<1x64xf32>, vector<64x128xf32>, vector<1x128xf32> -> vector<1x128xf32>
    %c0_138 = arith.constant 0 : index
    %c0_139 = arith.constant 0 : index
    %384 = vector.load %arg6[%c0_138, %c0_139] : memref<1x128xf32, #tpu.memory_space<vmem>>, vector<1x128xf32>
    %385 = arith.addf %383, %384 : vector<1x128xf32>
    %386 = vector.extract_strided_slice %385 {offsets = [0, 0], sizes = [1, 32], strides = [1, 1]} : vector<1x128xf32> to vector<1x32xf32>
    %387 = arith.negf %386 : vector<1x32xf32>
    %388 = math.exp %387 : vector<1x32xf32>
    %cst_140 = arith.constant 1.000000e+00 : f32
    %389 = vector.broadcast %cst_140 : f32 to vector<1x32xf32>
    %390 = arith.addf %389, %388 : vector<1x32xf32>
    %391 = arith.divf %389, %390 : vector<1x32xf32>
    %392 = vector.extract_strided_slice %385 {offsets = [0, 32], sizes = [1, 32], strides = [1, 1]} : vector<1x128xf32> to vector<1x32xf32>
    %393 = arith.negf %392 : vector<1x32xf32>
    %394 = math.exp %393 : vector<1x32xf32>
    %cst_141 = arith.constant 1.000000e+00 : f32
    %395 = vector.broadcast %cst_141 : f32 to vector<1x32xf32>
    %396 = arith.addf %395, %394 : vector<1x32xf32>
    %397 = arith.divf %395, %396 : vector<1x32xf32>
    %398 = vector.extract_strided_slice %385 {offsets = [0, 64], sizes = [1, 32], strides = [1, 1]} : vector<1x128xf32> to vector<1x32xf32>
    %399 = math.tanh %398 : vector<1x32xf32>
    %400 = vector.extract_strided_slice %385 {offsets = [0, 96], sizes = [1, 32], strides = [1, 1]} : vector<1x128xf32> to vector<1x32xf32>
    %401 = arith.negf %400 : vector<1x32xf32>
    %402 = math.exp %401 : vector<1x32xf32>
    %cst_142 = arith.constant 1.000000e+00 : f32
    %403 = vector.broadcast %cst_142 : f32 to vector<1x32xf32>
    %404 = arith.addf %403, %402 : vector<1x32xf32>
    %405 = arith.divf %403, %404 : vector<1x32xf32>
    %406 = arith.mulf %397, %340 : vector<1x32xf32>
    %407 = arith.mulf %391, %399 : vector<1x32xf32>
    %408 = arith.addf %406, %407 : vector<1x32xf32>
    %409 = math.tanh %408 : vector<1x32xf32>
    %410 = arith.mulf %405, %409 : vector<1x32xf32>
    %411 = vector.shape_cast %410 : vector<1x32xf32> to vector<1x32x1xf32>
    %412 = vector.broadcast %411 : vector<1x32x1xf32> to vector<1x32x256xf32>
    %413 = arith.mulf %347, %412 : vector<1x32x256xf32>
    %c0_143 = arith.constant 0 : index
    %c0_144 = arith.constant 0 : index
    %c1280_145 = arith.constant 1280 : index
    %414 = vector.load %arg7[%c0_143, %c0_144, %c1280_145] : memref<1x32x2048xf32, #tpu.memory_space<vmem>>, vector<1x32x256xf32>
    tpu.vector_store %arg7[%c0_143, %c0_144, %c1280_145], %413 {strides = array<i32>} : memref<1x32x2048xf32, #tpu.memory_space<vmem>>, vector<1x32x256xf32>,
    %c0_146 = arith.constant 0 : index
    %c0_147 = arith.constant 0 : index
    %c1536 = arith.constant 1536 : index
    %415 = vector.load %arg2[%c0_146, %c0_147, %c1536] : memref<1x32x2048xf32, #tpu.memory_space<vmem>>, vector<1x32x256xf32>
    %cst_148 = arith.constant dense<0.000000e+00> : vector<1x32xf32>
    %416 = vector.multi_reduction <add>, %415, %cst_148 [2] : vector<1x32x256xf32> to vector<1x32xf32>
    %cst_149 = arith.constant 3.906250e-03 : f32
    %417 = vector.broadcast %cst_149 : f32 to vector<1x32xf32>
    %418 = arith.mulf %416, %417 : vector<1x32xf32>
    %419 = tpu.concatenate %418, %380 in 1 : vector<1x32xf32>, vector<1x32xf32> -> vector<1x64xf32>
    %c0_150 = arith.constant 0 : index
    %c0_151 = arith.constant 0 : index
    %420 = vector.load %arg3[%c0_150, %c0_151] : memref<64x128xf32, #tpu.memory_space<vmem>>, vector<64x128xf32>
    %cst_152 = arith.constant dense<0.000000e+00> : vector<1x128xf32>
    %421 = tpu.matmul %419, %420, %cst_152 {dimension_numbers = #tpu.dot_dimension_numbers<[1], [0], [0], [1], [0, 0, 1, 1], [], []>} : vector<1x64xf32>, vector<64x128xf32>, vector<1x128xf32> -> vector<1x128xf32>
    %c0_153 = arith.constant 0 : index
    %c0_154 = arith.constant 0 : index
    %422 = vector.load %arg4[%c0_153, %c0_154] : memref<1x128xf32, #tpu.memory_space<vmem>>, vector<1x128xf32>
    %423 = arith.addf %421, %422 : vector<1x128xf32>
    %424 = vector.extract_strided_slice %423 {offsets = [0, 0], sizes = [1, 32], strides = [1, 1]} : vector<1x128xf32> to vector<1x32xf32>
    %425 = arith.negf %424 : vector<1x32xf32>
    %426 = math.exp %425 : vector<1x32xf32>
    %cst_155 = arith.constant 1.000000e+00 : f32
    %427 = vector.broadcast %cst_155 : f32 to vector<1x32xf32>
    %428 = arith.addf %427, %426 : vector<1x32xf32>
    %429 = arith.divf %427, %428 : vector<1x32xf32>
    %430 = vector.extract_strided_slice %423 {offsets = [0, 32], sizes = [1, 32], strides = [1, 1]} : vector<1x128xf32> to vector<1x32xf32>
    %431 = arith.negf %430 : vector<1x32xf32>
    %432 = math.exp %431 : vector<1x32xf32>
    %cst_156 = arith.constant 1.000000e+00 : f32
    %433 = vector.broadcast %cst_156 : f32 to vector<1x32xf32>
    %434 = arith.addf %433, %432 : vector<1x32xf32>
    %435 = arith.divf %433, %434 : vector<1x32xf32>
    %436 = vector.extract_strided_slice %423 {offsets = [0, 64], sizes = [1, 32], strides = [1, 1]} : vector<1x128xf32> to vector<1x32xf32>
    %437 = math.tanh %436 : vector<1x32xf32>
    %438 = vector.extract_strided_slice %423 {offsets = [0, 96], sizes = [1, 32], strides = [1, 1]} : vector<1x128xf32> to vector<1x32xf32>
    %439 = arith.negf %438 : vector<1x32xf32>
    %440 = math.exp %439 : vector<1x32xf32>
    %cst_157 = arith.constant 1.000000e+00 : f32
    %441 = vector.broadcast %cst_157 : f32 to vector<1x32xf32>
    %442 = arith.addf %441, %440 : vector<1x32xf32>
    %443 = arith.divf %441, %442 : vector<1x32xf32>
    %444 = arith.mulf %435, %378 : vector<1x32xf32>
    %445 = arith.mulf %429, %437 : vector<1x32xf32>
    %446 = arith.addf %444, %445 : vector<1x32xf32>
    %447 = math.tanh %446 : vector<1x32xf32>
    %448 = arith.mulf %443, %447 : vector<1x32xf32>
    %449 = tpu.concatenate %448, %410 in 1 : vector<1x32xf32>, vector<1x32xf32> -> vector<1x64xf32>
    %c0_158 = arith.constant 0 : index
    %c0_159 = arith.constant 0 : index
    %450 = vector.load %arg5[%c0_158, %c0_159] : memref<64x128xf32, #tpu.memory_space<vmem>>, vector<64x128xf32>
    %cst_160 = arith.constant dense<0.000000e+00> : vector<1x128xf32>
    %451 = tpu.matmul %449, %450, %cst_160 {dimension_numbers = #tpu.dot_dimension_numbers<[1], [0], [0], [1], [0, 0, 1, 1], [], []>} : vector<1x64xf32>, vector<64x128xf32>, vector<1x128xf32> -> vector<1x128xf32>
    %c0_161 = arith.constant 0 : index
    %c0_162 = arith.constant 0 : index
    %452 = vector.load %arg6[%c0_161, %c0_162] : memref<1x128xf32, #tpu.memory_space<vmem>>, vector<1x128xf32>
    %453 = arith.addf %451, %452 : vector<1x128xf32>
    %454 = vector.extract_strided_slice %453 {offsets = [0, 0], sizes = [1, 32], strides = [1, 1]} : vector<1x128xf32> to vector<1x32xf32>
    %455 = arith.negf %454 : vector<1x32xf32>
    %456 = math.exp %455 : vector<1x32xf32>
    %cst_163 = arith.constant 1.000000e+00 : f32
    %457 = vector.broadcast %cst_163 : f32 to vector<1x32xf32>
    %458 = arith.addf %457, %456 : vector<1x32xf32>
    %459 = arith.divf %457, %458 : vector<1x32xf32>
    %460 = vector.extract_strided_slice %453 {offsets = [0, 32], sizes = [1, 32], strides = [1, 1]} : vector<1x128xf32> to vector<1x32xf32>
    %461 = arith.negf %460 : vector<1x32xf32>
    %462 = math.exp %461 : vector<1x32xf32>
    %cst_164 = arith.constant 1.000000e+00 : f32
    %463 = vector.broadcast %cst_164 : f32 to vector<1x32xf32>
    %464 = arith.addf %463, %462 : vector<1x32xf32>
    %465 = arith.divf %463, %464 : vector<1x32xf32>
    %466 = vector.extract_strided_slice %453 {offsets = [0, 64], sizes = [1, 32], strides = [1, 1]} : vector<1x128xf32> to vector<1x32xf32>
    %467 = math.tanh %466 : vector<1x32xf32>
    %468 = vector.extract_strided_slice %453 {offsets = [0, 96], sizes = [1, 32], strides = [1, 1]} : vector<1x128xf32> to vector<1x32xf32>
    %469 = arith.negf %468 : vector<1x32xf32>
    %470 = math.exp %469 : vector<1x32xf32>
    %cst_165 = arith.constant 1.000000e+00 : f32
    %471 = vector.broadcast %cst_165 : f32 to vector<1x32xf32>
    %472 = arith.addf %471, %470 : vector<1x32xf32>
    %473 = arith.divf %471, %472 : vector<1x32xf32>
    %474 = arith.mulf %465, %408 : vector<1x32xf32>
    %475 = arith.mulf %459, %467 : vector<1x32xf32>
    %476 = arith.addf %474, %475 : vector<1x32xf32>
    %477 = math.tanh %476 : vector<1x32xf32>
    %478 = arith.mulf %473, %477 : vector<1x32xf32>
    %479 = vector.shape_cast %478 : vector<1x32xf32> to vector<1x32x1xf32>
    %480 = vector.broadcast %479 : vector<1x32x1xf32> to vector<1x32x256xf32>
    %481 = arith.mulf %415, %480 : vector<1x32x256xf32>
    %c0_166 = arith.constant 0 : index
    %c0_167 = arith.constant 0 : index
    %c1536_168 = arith.constant 1536 : index
    %482 = vector.load %arg7[%c0_166, %c0_167, %c1536_168] : memref<1x32x2048xf32, #tpu.memory_space<vmem>>, vector<1x32x256xf32>
    tpu.vector_store %arg7[%c0_166, %c0_167, %c1536_168], %481 {strides = array<i32>} : memref<1x32x2048xf32, #tpu.memory_space<vmem>>, vector<1x32x256xf32>,
    %c0_169 = arith.constant 0 : index
    %c0_170 = arith.constant 0 : index
    %c1792 = arith.constant 1792 : index
    %483 = vector.load %arg2[%c0_169, %c0_170, %c1792] : memref<1x32x2048xf32, #tpu.memory_space<vmem>>, vector<1x32x256xf32>
    %cst_171 = arith.constant dense<0.000000e+00> : vector<1x32xf32>
    %484 = vector.multi_reduction <add>, %483, %cst_171 [2] : vector<1x32x256xf32> to vector<1x32xf32>
    %cst_172 = arith.constant 3.906250e-03 : f32
    %485 = vector.broadcast %cst_172 : f32 to vector<1x32xf32>
    %486 = arith.mulf %484, %485 : vector<1x32xf32>
    %487 = tpu.concatenate %486, %448 in 1 : vector<1x32xf32>, vector<1x32xf32> -> vector<1x64xf32>
    %c0_173 = arith.constant 0 : index
    %c0_174 = arith.constant 0 : index
    %488 = vector.load %arg3[%c0_173, %c0_174] : memref<64x128xf32, #tpu.memory_space<vmem>>, vector<64x128xf32>
    %cst_175 = arith.constant dense<0.000000e+00> : vector<1x128xf32>
    %489 = tpu.matmul %487, %488, %cst_175 {dimension_numbers = #tpu.dot_dimension_numbers<[1], [0], [0], [1], [0, 0, 1, 1], [], []>} : vector<1x64xf32>, vector<64x128xf32>, vector<1x128xf32> -> vector<1x128xf32>
    %c0_176 = arith.constant 0 : index
    %c0_177 = arith.constant 0 : index
    %490 = vector.load %arg4[%c0_176, %c0_177] : memref<1x128xf32, #tpu.memory_space<vmem>>, vector<1x128xf32>
    %491 = arith.addf %489, %490 : vector<1x128xf32>
    %492 = vector.extract_strided_slice %491 {offsets = [0, 0], sizes = [1, 32], strides = [1, 1]} : vector<1x128xf32> to vector<1x32xf32>
    %493 = arith.negf %492 : vector<1x32xf32>
    %494 = math.exp %493 : vector<1x32xf32>
    %cst_178 = arith.constant 1.000000e+00 : f32
    %495 = vector.broadcast %cst_178 : f32 to vector<1x32xf32>
    %496 = arith.addf %495, %494 : vector<1x32xf32>
    %497 = arith.divf %495, %496 : vector<1x32xf32>
    %498 = vector.extract_strided_slice %491 {offsets = [0, 32], sizes = [1, 32], strides = [1, 1]} : vector<1x128xf32> to vector<1x32xf32>
    %499 = arith.negf %498 : vector<1x32xf32>
    %500 = math.exp %499 : vector<1x32xf32>
    %cst_179 = arith.constant 1.000000e+00 : f32
    %501 = vector.broadcast %cst_179 : f32 to vector<1x32xf32>
    %502 = arith.addf %501, %500 : vector<1x32xf32>
    %503 = arith.divf %501, %502 : vector<1x32xf32>
    %504 = vector.extract_strided_slice %491 {offsets = [0, 64], sizes = [1, 32], strides = [1, 1]} : vector<1x128xf32> to vector<1x32xf32>
    %505 = math.tanh %504 : vector<1x32xf32>
    %506 = vector.extract_strided_slice %491 {offsets = [0, 96], sizes = [1, 32], strides = [1, 1]} : vector<1x128xf32> to vector<1x32xf32>
    %507 = arith.negf %506 : vector<1x32xf32>
    %508 = math.exp %507 : vector<1x32xf32>
    %cst_180 = arith.constant 1.000000e+00 : f32
    %509 = vector.broadcast %cst_180 : f32 to vector<1x32xf32>
    %510 = arith.addf %509, %508 : vector<1x32xf32>
    %511 = arith.divf %509, %510 : vector<1x32xf32>
    %512 = arith.mulf %503, %446 : vector<1x32xf32>
    %513 = arith.mulf %497, %505 : vector<1x32xf32>
    %514 = arith.addf %512, %513 : vector<1x32xf32>
    %515 = math.tanh %514 : vector<1x32xf32>
    %516 = arith.mulf %511, %515 : vector<1x32xf32>
    %517 = tpu.concatenate %516, %478 in 1 : vector<1x32xf32>, vector<1x32xf32> -> vector<1x64xf32>
    %c0_181 = arith.constant 0 : index
    %c0_182 = arith.constant 0 : index
    %518 = vector.load %arg5[%c0_181, %c0_182] : memref<64x128xf32, #tpu.memory_space<vmem>>, vector<64x128xf32>
    %cst_183 = arith.constant dense<0.000000e+00> : vector<1x128xf32>
    %519 = tpu.matmul %517, %518, %cst_183 {dimension_numbers = #tpu.dot_dimension_numbers<[1], [0], [0], [1], [0, 0, 1, 1], [], []>} : vector<1x64xf32>, vector<64x128xf32>, vector<1x128xf32> -> vector<1x128xf32>
    %c0_184 = arith.constant 0 : index
    %c0_185 = arith.constant 0 : index
    %520 = vector.load %arg6[%c0_184, %c0_185] : memref<1x128xf32, #tpu.memory_space<vmem>>, vector<1x128xf32>
    %521 = arith.addf %519, %520 : vector<1x128xf32>
    %522 = vector.extract_strided_slice %521 {offsets = [0, 0], sizes = [1, 32], strides = [1, 1]} : vector<1x128xf32> to vector<1x32xf32>
    %523 = arith.negf %522 : vector<1x32xf32>
    %524 = math.exp %523 : vector<1x32xf32>
    %cst_186 = arith.constant 1.000000e+00 : f32
    %525 = vector.broadcast %cst_186 : f32 to vector<1x32xf32>
    %526 = arith.addf %525, %524 : vector<1x32xf32>
    %527 = arith.divf %525, %526 : vector<1x32xf32>
    %528 = vector.extract_strided_slice %521 {offsets = [0, 32], sizes = [1, 32], strides = [1, 1]} : vector<1x128xf32> to vector<1x32xf32>
    %529 = arith.negf %528 : vector<1x32xf32>
    %530 = math.exp %529 : vector<1x32xf32>
    %cst_187 = arith.constant 1.000000e+00 : f32
    %531 = vector.broadcast %cst_187 : f32 to vector<1x32xf32>
    %532 = arith.addf %531, %530 : vector<1x32xf32>
    %533 = arith.divf %531, %532 : vector<1x32xf32>
    %534 = vector.extract_strided_slice %521 {offsets = [0, 64], sizes = [1, 32], strides = [1, 1]} : vector<1x128xf32> to vector<1x32xf32>
    %535 = math.tanh %534 : vector<1x32xf32>
    %536 = vector.extract_strided_slice %521 {offsets = [0, 96], sizes = [1, 32], strides = [1, 1]} : vector<1x128xf32> to vector<1x32xf32>
    %537 = arith.negf %536 : vector<1x32xf32>
    %538 = math.exp %537 : vector<1x32xf32>
    %cst_188 = arith.constant 1.000000e+00 : f32
    %539 = vector.broadcast %cst_188 : f32 to vector<1x32xf32>
    %540 = arith.addf %539, %538 : vector<1x32xf32>
    %541 = arith.divf %539, %540 : vector<1x32xf32>
    %542 = arith.mulf %533, %476 : vector<1x32xf32>
    %543 = arith.mulf %527, %535 : vector<1x32xf32>
    %544 = arith.addf %542, %543 : vector<1x32xf32>
    %545 = math.tanh %544 : vector<1x32xf32>
    %546 = arith.mulf %541, %545 : vector<1x32xf32>
    %547 = vector.shape_cast %546 : vector<1x32xf32> to vector<1x32x1xf32>
    %548 = vector.broadcast %547 : vector<1x32x1xf32> to vector<1x32x256xf32>
    %549 = arith.mulf %483, %548 : vector<1x32x256xf32>
    %c0_189 = arith.constant 0 : index
    %c0_190 = arith.constant 0 : index
    %c1792_191 = arith.constant 1792 : index
    %550 = vector.load %arg7[%c0_189, %c0_190, %c1792_191] : memref<1x32x2048xf32, #tpu.memory_space<vmem>>, vector<1x32x256xf32>
    tpu.vector_store %arg7[%c0_189, %c0_190, %c1792_191], %549 {strides = array<i32>} : memref<1x32x2048xf32, #tpu.memory_space<vmem>>, vector<1x32x256xf32>,
    %c0_192 = arith.constant 0 : index
    %c0_193 = arith.constant 0 : index
    %551 = vector.load %arg8[%c0_192, %c0_193] : memref<1x32xf32, #tpu.memory_space<vmem>>, vector<1x32xf32>
    tpu.vector_store %arg8[%c0_192, %c0_193], %516 {strides = array<i32>} : memref<1x32xf32, #tpu.memory_space<vmem>>, vector<1x32xf32>,
    %c0_194 = arith.constant 0 : index
    %c0_195 = arith.constant 0 : index
    %552 = vector.load %arg9[%c0_194, %c0_195] : memref<1x32xf32, #tpu.memory_space<vmem>>, vector<1x32xf32>
    tpu.vector_store %arg9[%c0_194, %c0_195], %514 {strides = array<i32>} : memref<1x32xf32, #tpu.memory_space<vmem>>, vector<1x32xf32>,
    %c0_196 = arith.constant 0 : index
    %c0_197 = arith.constant 0 : index
    %553 = vector.load %arg10[%c0_196, %c0_197] : memref<1x32xf32, #tpu.memory_space<vmem>>, vector<1x32xf32>
    tpu.vector_store %arg10[%c0_196, %c0_197], %546 {strides = array<i32>} : memref<1x32xf32, #tpu.memory_space<vmem>>, vector<1x32xf32>,
    %c0_198 = arith.constant 0 : index
    %c0_199 = arith.constant 0 : index
    %554 = vector.load %arg11[%c0_198, %c0_199] : memref<1x32xf32, #tpu.memory_space<vmem>>, vector<1x32xf32>
    tpu.vector_store %arg11[%c0_198, %c0_199], %544 {strides = array<i32>} : memref<1x32xf32, #tpu.memory_space<vmem>>, vector<1x32xf32>,
    return
  }
  func.func @transform_0(%arg0: i32, %arg1: i32) -> (i32, i32, i32) {
    %c0_i32 = arith.constant 0 : i32
    %c0_i32_0 = arith.constant 0 : i32
    return %arg0, %c0_i32, %arg1 : i32, i32, i32
  }
  func.func @transform_1(%arg0: i32, %arg1: i32) -> (i32, i32) {
    %c0_i32 = arith.constant 0 : i32
    %c0_i32_0 = arith.constant 0 : i32
    %c0_i32_1 = arith.constant 0 : i32
    return %c0_i32, %c0_i32_0 : i32, i32
  }
  func.func @transform_2(%arg0: i32, %arg1: i32) -> (i32, i32) {
    %c0_i32 = arith.constant 0 : i32
    %c0_i32_0 = arith.constant 0 : i32
    %c0_i32_1 = arith.constant 0 : i32
    return %c0_i32, %c0_i32_0 : i32, i32
  }
  func.func @transform_3(%arg0: i32, %arg1: i32) -> (i32, i32) {
    %c0_i32 = arith.constant 0 : i32
    %c0_i32_0 = arith.constant 0 : i32
    %c0_i32_1 = arith.constant 0 : i32
    return %c0_i32, %c0_i32_0 : i32, i32
  }
  func.func @transform_4(%arg0: i32, %arg1: i32) -> (i32, i32) {
    %c0_i32 = arith.constant 0 : i32
    %c0_i32_0 = arith.constant 0 : i32
    %c0_i32_1 = arith.constant 0 : i32
    return %c0_i32, %c0_i32_0 : i32, i32
  }
  func.func @transform_5(%arg0: i32, %arg1: i32) -> (i32, i32, i32) {
    %c0_i32 = arith.constant 0 : i32
    %c0_i32_0 = arith.constant 0 : i32
    return %arg0, %c0_i32, %arg1 : i32, i32, i32
  }
}

</mosaic_0001>

<bundles_post_ra>
// kernel: tpu_custom_call.1
= control target key start
LH: loop header
LB: loop body
LE: loop exit
PB: predicated region body
PF: predicated region fallthrough
CT: control target
= control target key end

     0   :  { %s5114_s0 = inlined_call_operand.hbm [shape: f32[2,32,2048], index: 0, kind: input, shape index: {}]   ;;  %s5115_s1 = inlined_call_operand.hbm [shape: f32[64,128], index: 1, kind: input, shape index: {}]   ;;  %s5116_s2 = inlined_call_operand.vmem [shape: f32[1,128], index: 2, kind: input, shape index: {}]   ;;  %s5117_s3 = inlined_call_operand.hbm [shape: f32[64,128], index: 3, kind: input, shape index: {}]   ;;  %s5118_s4 = inlined_call_operand.vmem [shape: f32[1,128], index: 4, kind: input, shape index: {}]   ;;  %s5119_s5 = inlined_call_operand.hbm [shape: f32[2,32,2048], index: 5, kind: output, shape index: {}]  }
   0x1   :  { %5121 = sst [smem:[#allocation16_spill]] %s5115_s1 }
   0x2   :  { %10 = vsyncpa [#allocation7], 0 }
   0x3   :  { %12 = vsyncpa [#allocation7 + $0x1], 0 }
   0x4   :  { %13 = vsyncpa [#allocation10], 0 }
   0x5   :  { %14 = vsyncpa [#allocation8], 0 }
   0x6   :  { %16 = vsyncpa [#allocation8 + $0x1], 0  ;;  %s3931_s18 = smov 0   ;;  %s3933_s19 = smov 0  }
   0x7   :  { %s3935_s20 = smov 0   ;;  %s3937_s21 = smov 0  }
   0x8   :  { %s3939_s22 = smov 0   ;;  %s3941_s23 = smov 0  }
   0x9 LB: > { %s2951_s24 = sadd.s32 4294967295, %s3885_s23   ;;  %s2952_s25 = sadd.s32 4294967294, %s3885_s23   ;;  %s3885_s23 = sphi %s3941_s23, %s22_s23   ;;  %s3881_s22 = sphi %s3939_s22, %s5138_s22   ;;  %s3877_s21 = sphi %s3937_s21, %s5137_s21   ;;  %s3873_s20 = sphi %s3935_s20, %s5136_s20   ;;  %s3869_s19 = sphi %s3933_s19, %s5135_s19   ;;  %s3865_s18 = sphi %s3931_s18, %s5134_s18  }
   0xa   : > { %p56_p0 = scmp.ne.s32.totalorder %s3869_s19, %s3865_s18  ;;  %p3965_p1 = scmp.eq.s32.totalorder %s2951_s24, 0 }
   0xb   : > { %p3969_p2 = scmp.eq.s32.totalorder %s2951_s24, 1  ;;  %p172_p3 = scmp.eq.s32.totalorder %s2952_s25, 1 }
   0xc   : > { %p3975_p4 = por %p3965_p1, %p56_p0  ;;  %p2953_p5 = scmp.ge.s32.totalorder %s3885_s23, 1 }
   0xd   : > { %p3980_p6 = por %p172_p3, %p56_p0  ;;  %p179_p7 = scmp.lt.s32.totalorder %s3885_s23, 3 }
   0xe   : > { %s3887_s6 = smov [#allocation9]   ;;  %s3888_s9 = smov [#allocation11]  }
   0xf   : > { %s5125_s29 = scalar_select %p3980_p6, 1, 0 }
  0x10   : > { %p3985_p8 = pnand %p2953_p5, %p179_p7  ;;  %s191_s7 = sshll.u32 %s3887_s6, 4  ;;  %s192_s7 = int_to_ptr.vmem [resolvable:$true] %s191_s7 }
  0x11   : > { %s207_s10 = sshll.u32 %s3888_s9, 4  ;;  %s3732_s11 = scalar_lea.vmem %s192_s7, 1024  ;;  %s208_s10 = int_to_ptr.vmem [resolvable:$true] %s207_s10 }
  0x12   : > { %p3468_p9 = pneg %p3985_p8  ;;  %p3733_p13 = scmp.ne.s32.totalorder %s192_s7, %s3732_s11 }
  0x13   : > { %p3740_p5 = scmp.lt.s32.totalorder %s192_s7, %s192_s7  ;;  %p3741_p7 = scmp.lt.s32.totalorder %s3732_s11, %s3732_s11 }
  0x14   : > { %p3994_p11 = pnand %p3468_p9, %p3965_p1 }
  0x15   : > { %p3742_p10 = por %p3741_p7, %p3740_p5 }
  0x16   : > { %p3723_p12 = pneg %p3994_p11 }
  0x18   : > { %p3735_p0 = pnand %p3733_p13, %p3723_p12 }
  0x1a   : > { %p3736_p3 = pneg %p3735_p0 }
  0x1c   : > { %p3743_p9 = pnand %p3742_p10, %p3736_p3 }
  0x1e   : > { %3746 = shalt.err (!%p3743_p9)
}
  0x1f   : > { %s5120_s12 = smov 128   ;;  %s3890_s13 = smov 8  }
  0x20   : > { %s5128_s1 = sld [smem:[#allocation16_spill]]  ;;  %s3758_s16 = scalar_lea.vmem %s208_s10, 1024 }
  0x21   : > { %p3759_p6 = scmp.ne.s32.totalorder %s208_s10, %s3758_s16  ;;  %p3766_p5 = scmp.lt.s32.totalorder %s208_s10, %s208_s10 }
  0x22   : > { %p3767_p10 = scmp.lt.s32.totalorder %s3758_s16, %s3758_s16 }
  0x23   : > { %p3761_p13 = pnand %p3759_p6, %p3723_p12 }
  0x24   : > { %p3768_p3 = por %p3767_p10, %p3766_p5 }
  0x25   : > { %p3762_p0 = pneg %p3761_p13 }
  0x26   : > { %3471 = dma.hbm_to_vmem [thread:$0]  (!%p3994_p11), %s5128_s1, 1024, %s192_s7, [#allocation10], %s5120_s12, %s5120_s12, %s3890_s13  }
  0x27   : > { %p3769_p7 = pnand %p3768_p3, %p3762_p0 }
  0x29   : > { %3772 = shalt.err (!%p3769_p7)
}
  0x2a   : > { %3474 = dma.hbm_to_vmem [thread:$0]  (!%p3994_p11), %s5117_s3, 1024, %s208_s10, [#allocation10], %s5120_s12, %s5120_s12, %s3890_s13  }
  0x2b   : > { %s34_s25 = sadd.s32 1, %s3881_s22  ;;  %s43_s6 = sadd.s32 1, %s3873_s20 }
  0x2c   : > { %p36_p6 = scmp.ge.s32.totalorder %s34_s25, 2  ;;  %p50_p12 = scmp.ne.s32.totalorder %s3873_s20, %s3869_s19 }
  0x2d   : > { %p51_p9 = scmp.eq.s32.totalorder %s3885_s23, 0  ;;  %p3485_p13 = scmp.lt.s32.totalorder %s3885_s23, 2 }
  0x2e   : > { %s5140_s25 = smov (%p36_p6, %s34_s25), 0  ;;  %p4030_p5 = por %p3969_p2, %p50_p12 }
  0x2f   : > { %p52_p0 = por %p51_p9, %p50_p12  ;;  %s38_s8 = ssub.s32 %s3881_s22, %s5140_s25 }
  0x30   : > { %s224_s9 = sand.u32 1, %s3873_s20   ;;  %p41_p10 = scmp.eq.s32.totalorder %s38_s8, 0 }
  0x31   : > { %s2957_s10 = sshll.u32 %s224_s9, 9  ;;  %s3006_s11 = sshll.u32 %s3881_s22, 13 }
  0x32   : > { %s4039_s13 = scalar_select %p41_p10, %s3873_s20, %s43_s6  }
  0x33   : > { %s236_s16 = scalar_lea.hbm %s5114_s0, %s3006_s11  ;;  %s228_s17 = scalar_lea.vmem [#allocation6], %s2957_s10 }
  0x34   : > { %s237_s24 = sshll.u32 %s228_s17, 4  ;;  %p4046_p11 = pnand %p3485_p13, %p52_p0  ;;  %s238_s24 = int_to_ptr.vmem [resolvable:$true] %s237_s24 }
  0x35   : > { %s225_s12 = scalar_lea.sflag [#allocation7], %s224_s9  ;;  %s3786_s8 = scalar_lea.vmem %s238_s24, 8192 }
  0x36   : > { %p3775_p2 = pneg %p4046_p11  ;;  %p3787_p3 = scmp.ne.s32.totalorder %s238_s24, %s3786_s8 }
  0x37   : > { %s3891_s6 = smov [#allocation6]  }
  0x38   : > { %p3789_p7 = pnand %p3787_p3, %p3775_p2  ;;  %s3791_s1 = sshll.u32 %s3891_s6, 4  ;;  %s3792_s1 = int_to_ptr.vmem [resolvable:$false] %s3791_s1 }
  0x39   : > { %s3793_s11 = scalar_lea.vmem %s3792_s1, 16384  ;;  %p3794_p12 = scmp.lt.s32.totalorder %s238_s24, %s3792_s1 }
  0x3a   : > { %p3790_p6 = pneg %p3789_p7  ;;  %p3795_p9 = scmp.lt.s32.totalorder %s3793_s11, %s3786_s8 }
  0x3c   : > { %p3796_p10 = por %p3795_p9, %p3794_p12 }
  0x3e   : > { %p3797_p13 = pnand %p3796_p10, %p3790_p6 }
  0x40   : > { %3800 = shalt.err (!%p3797_p13)
}
  0x41   : > { %s3892_s10 = smov 2048   ;;  %s5131_s14 = smov 128  }
  0x42   : > { %3478 = dma.hbm_to_vmem [thread:$0]  (!%p4046_p11), %s236_s16, 8192, %s238_s24, %s225_s12, %s3892_s10, %s3892_s10, %s5131_s14  }
  0x43   : > { %249 = sbr.rel (%p3985_p8) target bundleno = 6479 (0x194f), region = 40  ;;  %s4058_s9 = sand.u32 (!%p3985_p8), 1, %s3869_s19  }
  0x44   : > { %s2961_s1 = sshll.u32 (!%p3985_p8), %s4058_s9, 9  ;;  %s252_s15 = scalar_lea.sflag (!%p3985_p8), [#allocation7], %s4058_s9 }
  0x45   : > { %s4064_s17 = scalar_lea.vmem (!%p3985_p8), [#allocation6], %s2961_s1 }
  0x48   : > { %3852 = dma.done.wait (%p3975_p4), %s252_s15, 8192  }
  0x49   : > { %3854 = vsyncadd (%p3975_p4), %s252_s15, 4294959104 }
  0x4a   : > { %3856 = dma.done.wait (%p3965_p1), [#allocation10], 2048  }
  0x4b   : > { %3858 = vsyncadd (%p3965_p1), [#allocation10], 4294965248  ;;  %vm296_vm0 = vcmask 253952   ;;  %v3893_v0 = vmov 0.0   ;;  %v305_v1 = vld [vmem:[%s4064_s17] sm:$0xff]  ;;  %v306_v2 = vld [vmem:[%s4064_s17 + $0x8] sm:$0xff]  ;;  %v333_v22 = vlaneseq }
  0x4c   : > { %297 = vst.msk [vmem:[#allocation2] sm:$0x1] %vm296_vm0, %v3893_v0  ;;  %298 = vst.msk [vmem:[#allocation3] sm:$0x1] %vm296_vm0, %v3893_v0  ;;  %3152 = vmatprep.subr.mxu0 %v3893_v0  ;;  %3171 = vmatprep.subr.mxu1 %v3893_v0  ;;  %v309_v3 = vld [vmem:[%s4064_s17 + $0x100] sm:$0xff]  ;;  %v313_v4 = vadd.f32 %v306_v2, %v305_v1  ;;  %v310_v5 = vld [vmem:[%s4064_s17 + $0x108] sm:$0xff] }
  0x4d   : > { %299 = vst.msk [vmem:[#allocation4] sm:$0x1] %vm296_vm0, %v3893_v0  ;;  %300 = vst.msk [vmem:[#allocation5] sm:$0x1] %vm296_vm0, %v3893_v0  ;;  %v307_v6 = vld [vmem:[%s4064_s17 + $0x80] sm:$0xff]  ;;  %v308_v7 = vld [vmem:[%s4064_s17 + $0x88] sm:$0xff]  ;;  %v319_v8 = vadd.f32 %v310_v5, %v309_v3 }
  0x4e   : > { %v311_v9 = vld [vmem:[%s4064_s17 + $0x180] sm:$0xff]  ;;  %v312_v10 = vld [vmem:[%s4064_s17 + $0x188] sm:$0xff]  ;;  %314 = vadd.xlane.f32.xlu0 %v313_v4  ;;  %v316_v11 = vadd.f32 %v308_v7, %v307_v6  ;;  %v4092_v12 = vld [vmem:[#allocation9 + $0x38] sm:$0xff]  ;;  %vm3894_vm1 = vmmov 0   ;;  %s3895_s26 = smov 32   ;;  %v334_v23 = vand.u32 127, %v333_v22 }
  0x4f   : > { %v4094_v13 = vld [vmem:[#allocation9 + $0x30] sm:$0xff]  ;;  %320 = vadd.xlane.f32.xlu1 %v319_v8  ;;  %v322_v14 = vadd.f32 %v312_v10, %v311_v9  ;;  %3153 = vmatpush3.msra.mxu0 %v4092_v12  ;;  %v4100_v15 = vld [vmem:[#allocation9 + $0x28] sm:$0xff]  ;;  %v4104_v16 = vld [vmem:[#allocation9 + $0x20] sm:$0xff]  ;;  %v4129_v24 = vshrl.u32 %v333_v22, 7  ;;  %vm344_vm2 = vcmask 130112   ;;  %vm351_vm3 = vcmask 195712  }
  0x50   : > { %3154 = vmatprep.subr.mxu0 %v3893_v0  ;;  %v4108_v17 = vld [vmem:[#allocation9 + $0x18] sm:$0xff]  ;;  %v4112_v18 = vld [vmem:[#allocation9 + $0x10] sm:$0xff]  ;;  %v4116_v19 = vld [vmem:[#allocation9 + $0x8] sm:$0xff]  ;;  %3168 = vmatprep.mubr.msk.f32.mxu0 %vm3894_vm1, %v3893_v0  ;;  %v339_v25 = vadd.s32 4294967288, %v334_v23  ;;  %v346_v27 = vadd.s32 4294967280, %v334_v23  ;;  %v353_v28 = vadd.s32 4294967272, %v334_v23 }
  0x51   : > { %3155 = vmatpush3.msra.mxu0 %v4094_v13  ;;  %v4120_v20 = vld [vmem:[#allocation9] sm:$0xff]  ;;  %3187 = vmatprep.mubr.msk.f32.mxu1 %vm3894_vm1, %v3893_v0  ;;  %v4132_v30 = vsub.s32 %v334_v23, %v4129_v24  ;;  %vm358_vm4 = vcmask 261312   ;;  %vm369_vm5 = vcmask 261120   ;;  %vm380_vm6 = vcmask 523264   ;;  %v379_v49 = vld [vmem:[%s5116_s2] sm:$0x1] }
  0x52   : > { %317 = vadd.xlane.f32.xlu0 %v316_v11  ;;  %3156 = vmatprep.subr.mxu0 %v3893_v0  ;;  %v4135_v32 = vsub.s32 %v339_v25, %v4129_v24  ;;  %v4138_v33 = vsub.s32 %v346_v27, %v4129_v24  ;;  %v4141_v36 = vsub.s32 %v353_v28, %v4129_v24  ;;  %s3896_s12 = smov 64   ;;  %v649_v61 = vld [vmem:[%s4064_s17 + $0x10] sm:$0xff]  ;;  %v650_v62 = vld [vmem:[%s4064_s17 + $0x18] sm:$0xff]  ;;  %v4198_v27 = vld [vmem:[#allocation11 + $0x20] sm:$0xff]  ;;  %s3897_s15 = smov 96  }
  0x53   : > { %323 = vadd.xlane.f32.xlu1 %v322_v14  ;;  %3157 = vmatpush3.msra.mxu0 %v4100_v15  ;;  %v2965_v21 = vld [vmem:[#allocation2] ss:$0 sm:$0xff]  ;;  %v2968_v54 = vld [vmem:[#allocation3] ss:$0 sm:$0xff]  ;;  %v657_v63 = vadd.f32 %v650_v62, %v649_v61  ;;  %v651_v6 = vld [vmem:[%s4064_s17 + $0x90] sm:$0xff]  ;;  %s4908_s28 = scalar_lea.vmem [#allocation12], %s2961_s1 }
  0x54   : > { %3158 = vmatprep.subr.mxu0 %v3893_v0  ;;  %v652_v7 = vld [vmem:[%s4064_s17 + $0x98] sm:$0xff]  ;;  %v653_v9 = vld [vmem:[%s4064_s17 + $0x110] sm:$0xff]  ;;  %s3007_s1 = sshll.u32 %s3877_s21, 13  ;;  %s2830_s21 = scalar_lea.sflag [#allocation8], %s4058_s9 }
  0x55   : > { %3159 = vmatpush3.msra.mxu0 %v4104_v16  ;;  %v660_v8 = vadd.f32 %v652_v7, %v651_v6  ;;  %v654_v10 = vld [vmem:[%s4064_s17 + $0x118] sm:$0xff]  ;;  %v655_v14 = vld [vmem:[%s4064_s17 + $0x190] sm:$0xff]  ;;  %s5054_s30 = scalar_lea.hbm %s5119_s5, %s3007_s1  ;;  %s3898_s24 = smov [#allocation12]  }
  0x56   : > { %3160 = vmatprep.subr.mxu0 %v3893_v0  ;;  %v663_v11 = vadd.f32 %v654_v10, %v653_v9  ;;  %v4188_v23 = vld [vmem:[#allocation11 + $0x38] sm:$0xff]  ;;  %v4190_v25 = vld [vmem:[#allocation11 + $0x30] sm:$0xff]  ;;  %s3805_s27 = sshll.u32 %s3898_s24, 4  ;;  %s3806_s27 = int_to_ptr.vmem [resolvable:$false] %s3805_s27 }
  0x57   : > { %3161 = vmatpush3.msra.mxu0 %v4108_v17  ;;  %3172 = vmatpush3.msra.mxu1 %v4188_v23  ;;  %v4202_v28 = vld [vmem:[#allocation11 + $0x18] sm:$0xff]  ;;  %s3807_s8 = scalar_lea.vmem %s3806_s27, 16384 }
  0x58   : > { %3162 = vmatprep.subr.mxu0 %v3893_v0  ;;  %3173 = vmatprep.subr.mxu1 %v3893_v0 }
  0x59   : > { %3163 = vmatpush3.msra.mxu0 %v4112_v18  ;;  %3174 = vmatpush3.msra.mxu1 %v4190_v25 }
  0x5a   : > { %3164 = vmatprep.subr.mxu0 %v3893_v0  ;;  %3175 = vmatprep.subr.mxu1 %v3893_v0 }
  0x5b   : > { %3165 = vmatpush3.msra.mxu0 %v4116_v19 }
  0x5c   : > { %3166 = vmatprep.subr.mxu0 %v3893_v0 }
  0x5d   : > { %3167 = vmatpush3.msra.mxu0 %v4120_v20 }
  0x5e   : > { %3190 = vmatprep.subr.mxu0 %v3893_v0 }
  0x68   : > { %366 = vrot.lane.b32.xlu0 %v2965_v21, %s3895_s26  ;;  %v656_v21 = vld [vmem:[%s4064_s17 + $0x198] sm:$0xff] }
  0x69   : > { %v666_v22 = vadd.f32 %v656_v21, %v655_v14 }
  0xd7   : > { %v315_v26 = vpop.xlane.xlu0 %314 }
  0xd8   : > { %v321_v29 = vpop.xlane.xlu1 %320  ;;  %v325_v31 = vmul.f32 0.00390625, %v315_v26  ;;  %v4196_v26 = vld [vmem:[#allocation11 + $0x28] sm:$0xff] }
  0xd9   : > { %v327_v34 = vmul.f32 0.00390625, %v321_v29  ;;  %3176 = vmatpush3.msra.mxu1 %v4196_v26  ;;  %v4206_v29 = vld [vmem:[#allocation11 + $0x10] sm:$0xff] }
  0xda   : > { %v338_v40 = vrot.slane %v325_v31, %v4132_v30  ;;  %3177 = vmatprep.subr.mxu1 %v3893_v0  ;;  %v4210_v31 = vld [vmem:[#allocation11 + $0x8] sm:$0xff] }
  0xdb   : > { %v318_v35 = vpop.xlane.xlu0 %317  ;;  %v350_v42 = vrot.slane %v327_v34, %v4138_v33  ;;  %3178 = vmatpush3.msra.mxu1 %v4198_v27  ;;  %v2969_v34 = vld [vmem:[#allocation4] ss:$0 sm:$0xff] }
  0xdc   : > { %v326_v37 = vmul.f32 0.00390625, %v318_v35  ;;  %v324_v38 = vpop.xlane.xlu1 %323  ;;  %3179 = vmatprep.subr.mxu1 %v3893_v0  ;;  %v4217_v35 = vld [vmem:[#allocation11] sm:$0xff] }
  0xdd   : > { %v328_v39 = vmul.f32 0.00390625, %v324_v38  ;;  %3180 = vmatpush3.msra.mxu1 %v4202_v28 }
  0xde   : > { %v343_v41 = vrot.slane %v326_v37, %v4135_v32  ;;  %3181 = vmatprep.subr.mxu1 %v3893_v0  ;;  %v2972_v37 = vld [vmem:[#allocation5] ss:$0 sm:$0xff] }
  0xdf   : > { %v357_v43 = vrot.slane %v328_v39, %v4141_v36  ;;  %v367_v45 = vpop.permute.xlu0 %366  ;;  %3182 = vmatpush3.msra.mxu1 %v4206_v29 }
  0xe0   : > { %v345_v44 = vsel %vm344_vm2, %v343_v41, %v338_v40  ;;  %3183 = vmatprep.subr.mxu1 %v3893_v0 }
  0xe1   : > { %v352_v46 = vsel %vm351_vm3, %v350_v42, %v345_v44  ;;  %3184 = vmatpush3.msra.mxu1 %v4210_v31 }
  0xe2   : > { %v359_v47 = vsel %vm358_vm4, %v357_v43, %v352_v46  ;;  %3185 = vmatprep.subr.mxu1 %v3893_v0 }
  0xe3   : > { %v370_v48 = vsel %vm369_vm5, %v359_v47, %v367_v45  ;;  %3186 = vmatpush3.msra.mxu1 %v4217_v35 }
  0xe4   : > { %3169 = vmatmul.mubr.msk.f32.vlgmr.msra.gmra.mxu0 %vm380_vm6, %v370_v48  ;;  %3209 = vmatprep.subr.mxu1 %v3893_v0 }
  0xe5   : > { %3191 = vmatpush3.msra.mxu0 %v4092_v12  ;;  %3206 = vmatprep.mubr.msk.f32.mxu0 %vm3894_vm1, %v3893_v0 }
  0xe6   : > { %3192 = vmatprep.subr.mxu0 %v3893_v0 }
  0xe7   : > { %3193 = vmatpush3.msra.mxu0 %v4094_v13 }
  0xe8   : > { %3194 = vmatprep.subr.mxu0 %v3893_v0 }
  0xe9   : > { %3195 = vmatpush3.msra.mxu0 %v4100_v15 }
  0xea   : > { %3196 = vmatprep.subr.mxu0 %v3893_v0 }
  0xeb   : > { %3197 = vmatpush3.msra.mxu0 %v4104_v16 }
  0xec   : > { %3198 = vmatprep.subr.mxu0 %v3893_v0 }
  0xed   : > { %3199 = vmatpush3.msra.mxu0 %v4108_v17 }
  0xee   : > { %3200 = vmatprep.subr.mxu0 %v3893_v0 }
  0xef   : > { %3201 = vmatpush3.msra.mxu0 %v4112_v18 }
  0xf0   : > { %3202 = vmatprep.subr.mxu0 %v3893_v0 }
  0xf1   : > { %3203 = vmatpush3.msra.mxu0 %v4116_v19 }
  0xf2   : > { %3204 = vmatprep.subr.mxu0 %v3893_v0 }
  0xf3   : > { %3205 = vmatpush3.msra.mxu0 %v4120_v20 }
  0xf4   : > { %3228 = vmatprep.subr.mxu0 %v3893_v0 }
 0x1a4   : > { %v450_v50 = vpop.f32.mrf.mxu0 }
 0x1a5   : > { %v451_v51 = vadd.f32 %v450_v50, %v379_v49 }
 0x1a6   : > { %v3170_v52 = vpop.f32.mrf.mxu0 }
 0x1a7   : > { %3549 = vtanh.f32 %v451_v51  ;;  %v2967_v55 = vmul.f32 -1.442695, %v451_v51 }
 0x1a9   : > { %3551 = vpow2.f32 %v2967_v55 }
 0x1b4   : > { %v3550_v53 = vpop.eup %3549 }
 0x1b5   : > { %471 = vrot.lane.b32.xlu1 %v3550_v53, %s3896_s12 }
 0x1b6   : > { %v3552_v56 = vpop.eup %3551 }
 0x1b7   : > { %v457_v57 = vadd.f32 1.0, %v3552_v56 }
 0x1b9   : > { %466 = vrot.lane.b32.xlu1 %v2968_v54, %s3895_s26  ;;  %3553 = vrcp.f32 %v457_v57 }
 0x1c6   : > { %v3554_v58 = vpop.eup %3553 }
 0x227   : > { %v472_v59 = vpop.permute.xlu1 %471 }
 0x228   : > { %v474_v60 = vmul.f32 %v3554_v58, %v472_v59 }
 0x22a   : > { %476 = vrot.lane.b32.xlu1 %v474_v60, %s3895_s26  ;;  %v507_v60 = vld [vmem:[%s5118_s4] sm:$0x1] }
 0x22b   : > { %v467_v1 = vpop.permute.xlu1 %466 }
 0x22c   : > { %v469_v2 = vmul.f32 %v3554_v58, %v467_v1  ;;  %v709_v1 = vld [vmem:[%s5116_s2] sm:$0x1] }
 0x24e   : > { %658 = vadd.xlane.f32.xlu1 %v657_v63 }
 0x29c   : > { %v477_v3 = vpop.permute.xlu1 %476 }
 0x29d   : > { %v4178_v4 = vadd.f32 %v477_v3, %v469_v2 }
 0x29f   : > { %3555 = vtanh.f32 %v4178_v4 }
 0x2ac   : > { %v3556_v5 = vpop.eup %3555 }
 0x2ad   : > { %482 = vrot.lane.b32.xlu0 %v3556_v5, %s3896_s12 }
 0x2cc   : > { %661 = vadd.xlane.f32.xlu0 %v660_v8 }
 0x2d0   : > { %664 = vadd.xlane.f32.xlu0 %v663_v11 }
 0x2d4   : > { %667 = vadd.xlane.f32.xlu0 %v666_v22 }
 0x2d7   : > { %v659_v42 = vpop.xlane.xlu1 %658 }
 0x2d8   : > { %v669_v44 = vmul.f32 0.00390625, %v659_v42 }
 0x2da   : > { %v680_v48 = vrot.slane %v669_v44, %v4132_v30 }
 0x2ea   : > { %495 = vrot.lane.b32.xlu0 %v2969_v34, %s3895_s26 }
 0x2ee   : > { %593 = vrot.lane.b32.xlu0 %v2972_v37, %s3895_s26 }
 0x31f   : > { %v483_v38 = vpop.permute.xlu0 %482 }
 0x320   : > { %v485_v39 = vmul.f32 %v3554_v58, %v483_v38 }
 0x322   : > { %487 = vrot.lane.b32.xlu1 %v485_v39, %s3895_s26 }
 0x326   : > { %697 = vrot.lane.b32.xlu1 %v485_v39, %s3896_s12 }
 0x355   : > { %v662_v40 = vpop.xlane.xlu0 %661 }
 0x356   : > { %v670_v43 = vmul.f32 0.00390625, %v662_v40 }
 0x358   : > { %v684_v47 = vrot.slane %v670_v43, %v4135_v32 }
 0x359   : > { %v665_v41 = vpop.xlane.xlu0 %664 }
 0x35a   : > { %v671_v45 = vmul.f32 0.00390625, %v665_v41  ;;  %v685_v51 = vsel %vm344_vm2, %v684_v47, %v680_v48 }
 0x35c   : > { %v689_v50 = vrot.slane %v671_v45, %v4138_v33 }
 0x35d   : > { %v668_v46 = vpop.xlane.xlu0 %667 }
 0x35e   : > { %v672_v49 = vmul.f32 0.00390625, %v668_v46  ;;  %v690_v56 = vsel %vm351_vm3, %v689_v50, %v685_v51  ;;  %v960_v50 = vld [vmem:[%s4064_s17 + $0xa0] sm:$0xff]  ;;  %v961_v51 = vld [vmem:[%s4064_s17 + $0xa8] sm:$0xff] }
 0x360   : > { %v694_v53 = vrot.slane %v672_v49, %v4141_v36 }
 0x361   : > { %v496_v52 = vpop.permute.xlu0 %495 }
 0x362   : > { %v695_v58 = vsel %vm358_vm4, %v694_v53, %v690_v56  ;;  %v959_v53 = vld [vmem:[%s4064_s17 + $0x28] sm:$0xff] }
 0x365   : > { %v594_v41 = vpop.permute.xlu0 %593 }
 0x394   : > { %v488_v54 = vpop.permute.xlu1 %487 }
 0x395   : > { %v498_v55 = vsel %vm369_vm5, %v488_v54, %v496_v52  ;;  %v958_v52 = vld [vmem:[%s4064_s17 + $0x20] sm:$0xff]  ;;  %v969_v54 = vadd.f32 %v961_v51, %v960_v50 }
 0x396   : > { %3188 = vmatmul.mubr.msk.f32.vlgmr.msra.gmra.mxu1 %vm380_vm6, %v498_v55  ;;  %v962_v55 = vld [vmem:[%s4064_s17 + $0x120] sm:$0xff]  ;;  %v966_v56 = vadd.f32 %v959_v53, %v958_v52 }
 0x397   : > { %3210 = vmatpush3.msra.mxu1 %v4188_v23  ;;  %3225 = vmatprep.mubr.msk.f32.mxu1 %vm3894_vm1, %v3893_v0 }
 0x398   : > { %v698_v57 = vpop.permute.xlu1 %697  ;;  %3211 = vmatprep.subr.mxu1 %v3893_v0 }
 0x399   : > { %v700_v59 = vsel %vm369_vm5, %v695_v58, %v698_v57  ;;  %3212 = vmatpush3.msra.mxu1 %v4190_v25  ;;  %v964_v58 = vld [vmem:[%s4064_s17 + $0x1a0] sm:$0xff] }
 0x39a   : > { %3207 = vmatmul.mubr.msk.f32.vlgmr.msra.gmra.mxu0 %vm380_vm6, %v700_v59  ;;  %3213 = vmatprep.subr.mxu1 %v3893_v0  ;;  %v965_v59 = vld [vmem:[%s4064_s17 + $0x1a8] sm:$0xff] }
 0x39b   : > { %3214 = vmatpush3.msra.mxu1 %v4196_v26  ;;  %3229 = vmatpush3.msra.mxu0 %v4092_v12 }
 0x39c   : > { %3215 = vmatprep.subr.mxu1 %v3893_v0  ;;  %3230 = vmatprep.subr.mxu0 %v3893_v0 }
 0x39d   : > { %3216 = vmatpush3.msra.mxu1 %v4198_v27  ;;  %3231 = vmatpush3.msra.mxu0 %v4094_v13 }
 0x39e   : > { %3217 = vmatprep.subr.mxu1 %v3893_v0  ;;  %3232 = vmatprep.subr.mxu0 %v3893_v0 }
 0x39f   : > { %3218 = vmatpush3.msra.mxu1 %v4202_v28  ;;  %3233 = vmatpush3.msra.mxu0 %v4100_v15 }
 0x3a0   : > { %3219 = vmatprep.subr.mxu1 %v3893_v0  ;;  %3234 = vmatprep.subr.mxu0 %v3893_v0 }
 0x3a1   : > { %3220 = vmatpush3.msra.mxu1 %v4206_v29  ;;  %3235 = vmatpush3.msra.mxu0 %v4104_v16 }
 0x3a2   : > { %3221 = vmatprep.subr.mxu1 %v3893_v0  ;;  %3236 = vmatprep.subr.mxu0 %v3893_v0 }
 0x3a3   : > { %3222 = vmatpush3.msra.mxu1 %v4210_v31  ;;  %3237 = vmatpush3.msra.mxu0 %v4108_v17 }
 0x3a4   : > { %3223 = vmatprep.subr.mxu1 %v3893_v0  ;;  %3238 = vmatprep.subr.mxu0 %v3893_v0 }
 0x3a5   : > { %3224 = vmatpush3.msra.mxu1 %v4217_v35  ;;  %3239 = vmatpush3.msra.mxu0 %v4112_v18 }
 0x3a6   : > { %3240 = vmatprep.subr.mxu0 %v3893_v0  ;;  %3244 = vmatprep.mubr.msk.f32.mxu0 %vm3894_vm1, %v3893_v0 }
 0x3a7   : > { %3241 = vmatpush3.msra.mxu0 %v4116_v19  ;;  %3247 = vmatprep.subr.mxu1 %v3893_v0 }
 0x3a8   : > { %3242 = vmatprep.subr.mxu0 %v3893_v0 }
 0x3a9   : > { %3243 = vmatpush3.msra.mxu0 %v4120_v20 }
 0x3aa   : > { %3266 = vmatprep.subr.mxu0 %v3893_v0 }
 0x456   : > { %v577_v61 = vpop.f32.mrf.mxu1 }
 0x457   : > { %v578_v62 = vadd.f32 %v577_v61, %v507_v60  ;;  %v975_v60 = vadd.f32 %v965_v59, %v964_v58 }
 0x458   : > { %v3189_v63 = vpop.f32.mrf.mxu1 }
 0x459   : > { %3557 = vtanh.f32 %v578_v62  ;;  %v2971_v8 = vmul.f32 -1.442695, %v578_v62 }
 0x45a   : > { %v779_v2 = vpop.f32.mrf.mxu0 }
 0x45b   : > { %v780_v3 = vadd.f32 %v779_v2, %v709_v1 }
 0x45c   : > { %v3208_v5 = vpop.f32.mrf.mxu0 }
 0x45d   : > { %3559 = vtanh.f32 %v780_v3  ;;  %v2974_v9 = vmul.f32 -1.442695, %v780_v3 }
 0x45e   : > { %3561 = vpow2.f32 %v2971_v8 }
 0x45f   : > { %3563 = vpow2.f32 %v2974_v9 }
 0x466   : > { %v3558_v6 = vpop.eup %3557 }
 0x467   : > { %598 = vrot.lane.b32.xlu1 %v3558_v6, %s3896_s12 }
 0x46a   : > { %v3560_v7 = vpop.eup %3559 }
 0x46b   : > { %792 = vrot.lane.b32.xlu1 %v3560_v7, %s3896_s12  ;;  %v3562_v10 = vpop.eup %3561 }
 0x46c   : > { %v584_v11 = vadd.f32 1.0, %v3562_v10  ;;  %v3564_v14 = vpop.eup %3563 }
 0x46d   : > { %v786_v21 = vadd.f32 1.0, %v3564_v14 }
 0x46e   : > { %3565 = vrcp.f32 %v584_v11 }
 0x46f   : > { %3567 = vrcp.f32 %v786_v21 }
 0x47b   : > { %v3566_v22 = vpop.eup %3565 }
 0x47c   : > { %v3568_v38 = vpop.eup %3567  ;;  %v596_v42 = vmul.f32 %v3566_v22, %v594_v41 }
 0x47d   : > { %v790_v45 = vmul.f32 %v3568_v38, %v4178_v4  ;;  %v963_v4 = vld [vmem:[%s4064_s17 + $0x128] sm:$0xff] }
 0x47e   : > { %v972_v57 = vadd.f32 %v963_v4, %v962_v55 }
 0x4d9   : > { %v599_v34 = vpop.permute.xlu1 %598 }
 0x4da   : > { %v601_v37 = vmul.f32 %v3566_v22, %v599_v34 }
 0x4dc   : > { %603 = vrot.lane.b32.xlu1 %v601_v37, %s3895_s26 }
 0x4dd   : > { %v793_v39 = vpop.permute.xlu1 %792 }
 0x4de   : > { %v795_v40 = vmul.f32 %v3568_v38, %v793_v39 }
 0x4e0   : > { %797 = vrot.lane.b32.xlu0 %v795_v40, %s3895_s26 }
 0x54e   : > { %v604_v43 = vpop.permute.xlu1 %603 }
 0x54f   : > { %v4281_v44 = vadd.f32 %v604_v43, %v596_v42 }
 0x551   : > { %3569 = vtanh.f32 %v4281_v44 }
 0x552   : > { %v798_v46 = vpop.permute.xlu0 %797 }
 0x553   : > { %v4285_v47 = vadd.f32 %v798_v46, %v790_v45 }
 0x555   : > { %3571 = vtanh.f32 %v4285_v47 }
 0x55e   : > { %v3570_v48 = vpop.eup %3569 }
 0x55f   : > { %609 = vrot.lane.b32.xlu1 %v3570_v48, %s3896_s12 }
 0x562   : > { %v3572_v49 = vpop.eup %3571 }
 0x563   : > { %803 = vrot.lane.b32.xlu0 %v3572_v49, %s3896_s12 }
 0x582   : > { %970 = vadd.xlane.f32.xlu0 %v969_v54 }
 0x583   : > { %967 = vadd.xlane.f32.xlu1 %v966_v56 }
 0x586   : > { %973 = vadd.xlane.f32.xlu0 %v972_v57 }
 0x58a   : > { %976 = vadd.xlane.f32.xlu0 %v975_v60 }
 0x5d1   : > { %v610_v61 = vpop.permute.xlu1 %609 }
 0x5d2   : > { %v4298_v62 = vmul.f32 %v3566_v22, %v610_v61 }
 0x5d4   : > { %812 = vrot.lane.b32.xlu0 %v4298_v62, %s3896_s12 }
 0x5d5   : > { %v804_v63 = vpop.permute.xlu0 %803 }
 0x5d6   : > { %v806_v1 = vmul.f32 %v3568_v38, %v804_v63 }
 0x5d8   : > { %808 = vrot.lane.b32.xlu1 %v806_v1, %s3895_s26 }
 0x5dc   : > { %1006 = vrot.lane.b32.xlu1 %v806_v1, %s3896_s12 }
 0x60b   : > { %v971_v2 = vpop.xlane.xlu0 %970 }
 0x60c   : > { %v968_v5 = vpop.xlane.xlu1 %967  ;;  %v979_v6 = vmul.f32 0.00390625, %v971_v2 }
 0x60d   : > { %v978_v7 = vmul.f32 0.00390625, %v968_v5  ;;  %v1267_v5 = vld [vmem:[%s4064_s17 + $0x30] sm:$0xff] }
 0x60e   : > { %v993_v10 = vrot.slane %v979_v6, %v4135_v32  ;;  %v1268_v6 = vld [vmem:[%s4064_s17 + $0x38] sm:$0xff] }
 0x60f   : > { %v974_v3 = vpop.xlane.xlu0 %973  ;;  %v989_v11 = vrot.slane %v978_v7, %v4132_v30  ;;  %v1275_v7 = vadd.f32 %v1268_v6, %v1267_v5 }
 0x610   : > { %v980_v8 = vmul.f32 0.00390625, %v974_v3 }
 0x611   : > { %v994_v22 = vsel %vm344_vm2, %v993_v10, %v989_v11  ;;  %v1273_v10 = vld [vmem:[%s4064_s17 + $0x1b0] sm:$0xff]  ;;  %v1274_v11 = vld [vmem:[%s4064_s17 + $0x1b8] sm:$0xff] }
 0x612   : > { %v998_v21 = vrot.slane %v980_v8, %v4138_v33  ;;  %v1271_v8 = vld [vmem:[%s4064_s17 + $0x130] sm:$0xff] }
 0x613   : > { %v977_v9 = vpop.xlane.xlu0 %976 }
 0x614   : > { %v981_v14 = vmul.f32 0.00390625, %v977_v9  ;;  %v999_v40 = vsel %vm351_vm3, %v998_v21, %v994_v22  ;;  %v1272_v9 = vld [vmem:[%s4064_s17 + $0x138] sm:$0xff]  ;;  %v1284_v22 = vadd.f32 %v1274_v11, %v1273_v10 }
 0x615   : > { %v1270_v21 = vld [vmem:[%s4064_s17 + $0xb8] sm:$0xff] }
 0x616   : > { %v1003_v34 = vrot.slane %v981_v14, %v4141_v36  ;;  %v1269_v14 = vld [vmem:[%s4064_s17 + $0xb0] sm:$0xff] }
 0x618   : > { %v1004_v42 = vsel %vm358_vm4, %v1003_v34, %v999_v40  ;;  %v1278_v34 = vadd.f32 %v1270_v21, %v1269_v14 }
 0x646   : > { %v813_v37 = vpop.permute.xlu0 %812 }
 0x64a   : > { %v809_v38 = vpop.permute.xlu1 %808 }
 0x64b   : > { %v815_v39 = vsel %vm369_vm5, %v809_v38, %v813_v37 }
 0x64c   : > { %3226 = vmatmul.mubr.msk.f32.vlgmr.msra.gmra.mxu1 %vm380_vm6, %v815_v39 }
 0x64d   : > { %3248 = vmatpush3.msra.mxu1 %v4188_v23  ;;  %3263 = vmatprep.mubr.msk.f32.mxu1 %vm3894_vm1, %v3893_v0 }
 0x64e   : > { %v1007_v41 = vpop.permute.xlu1 %1006  ;;  %3249 = vmatprep.subr.mxu1 %v3893_v0 }
 0x64f   : > { %v1009_v43 = vsel %vm369_vm5, %v1004_v42, %v1007_v41  ;;  %3250 = vmatpush3.msra.mxu1 %v4190_v25 }
 0x650   : > { %3245 = vmatmul.mubr.msk.f32.vlgmr.msra.gmra.mxu0 %vm380_vm6, %v1009_v43  ;;  %3251 = vmatprep.subr.mxu1 %v3893_v0 }
 0x651   : > { %3267 = vmatpush3.msra.mxu0 %v4092_v12  ;;  %3252 = vmatpush3.msra.mxu1 %v4196_v26  ;;  %v824_v12 = vld [vmem:[%s5118_s4] sm:$0x1] }
 0x652   : > { %3268 = vmatprep.subr.mxu0 %v3893_v0  ;;  %3253 = vmatprep.subr.mxu1 %v3893_v0 }
 0x653   : > { %3269 = vmatpush3.msra.mxu0 %v4094_v13  ;;  %3254 = vmatpush3.msra.mxu1 %v4198_v27 }
 0x654   : > { %3270 = vmatprep.subr.mxu0 %v3893_v0  ;;  %3255 = vmatprep.subr.mxu1 %v3893_v0 }
 0x655   : > { %3271 = vmatpush3.msra.mxu0 %v4100_v15  ;;  %3256 = vmatpush3.msra.mxu1 %v4202_v28 }
 0x656   : > { %3272 = vmatprep.subr.mxu0 %v3893_v0  ;;  %3257 = vmatprep.subr.mxu1 %v3893_v0 }
 0x657   : > { %3273 = vmatpush3.msra.mxu0 %v4104_v16  ;;  %3258 = vmatpush3.msra.mxu1 %v4206_v29 }
 0x658   : > { %3274 = vmatprep.subr.mxu0 %v3893_v0  ;;  %3259 = vmatprep.subr.mxu1 %v3893_v0 }
 0x659   : > { %3275 = vmatpush3.msra.mxu0 %v4108_v17  ;;  %3260 = vmatpush3.msra.mxu1 %v4210_v31  ;;  %v1018_v17 = vld [vmem:[%s5116_s2] sm:$0x1] }
 0x65a   : > { %3276 = vmatprep.subr.mxu0 %v3893_v0  ;;  %3261 = vmatprep.subr.mxu1 %v3893_v0 }
 0x65b   : > { %3277 = vmatpush3.msra.mxu0 %v4112_v18  ;;  %3262 = vmatpush3.msra.mxu1 %v4217_v35 }
 0x65c   : > { %3278 = vmatprep.subr.mxu0 %v3893_v0  ;;  %3282 = vmatprep.mubr.msk.f32.mxu0 %vm3894_vm1, %v3893_v0 }
 0x65d   : > { %3279 = vmatpush3.msra.mxu0 %v4116_v19  ;;  %3285 = vmatprep.subr.mxu1 %v3893_v0 }
 0x65e   : > { %3280 = vmatprep.subr.mxu0 %v3893_v0 }
 0x65f   : > { %3281 = vmatpush3.msra.mxu0 %v4120_v20 }
 0x660   : > { %3304 = vmatprep.subr.mxu0 %v3893_v0 }
 0x70c   : > { %v894_v13 = vpop.f32.mrf.mxu1 }
 0x70d   : > { %v895_v15 = vadd.f32 %v894_v13, %v824_v12 }
 0x70e   : > { %v3227_v16 = vpop.f32.mrf.mxu1 }
 0x70f   : > { %3573 = vtanh.f32 %v895_v15  ;;  %v2976_v48 = vmul.f32 -1.442695, %v895_v15 }
 0x710   : > { %v1088_v18 = vpop.f32.mrf.mxu0 }
 0x711   : > { %v1089_v19 = vadd.f32 %v1088_v18, %v1018_v17 }
 0x712   : > { %v3246_v45 = vpop.f32.mrf.mxu0 }
 0x713   : > { %3575 = vtanh.f32 %v1089_v19  ;;  %v2978_v49 = vmul.f32 -1.442695, %v1089_v19 }
 0x714   : > { %3577 = vpow2.f32 %v2976_v48 }
 0x715   : > { %3579 = vpow2.f32 %v2978_v49 }
 0x71c   : > { %v3574_v46 = vpop.eup %3573 }
 0x71d   : > { %907 = vrot.lane.b32.xlu1 %v3574_v46, %s3896_s12 }
 0x720   : > { %v3576_v20 = vpop.eup %3575 }
 0x721   : > { %1101 = vrot.lane.b32.xlu1 %v3576_v20, %s3896_s12  ;;  %v3578_v50 = vpop.eup %3577 }
 0x722   : > { %v901_v51 = vadd.f32 1.0, %v3578_v50  ;;  %v3580_v52 = vpop.eup %3579 }
 0x723   : > { %v1095_v53 = vadd.f32 1.0, %v3580_v52 }
 0x724   : > { %3581 = vrcp.f32 %v901_v51 }
 0x725   : > { %3583 = vrcp.f32 %v1095_v53 }
 0x731   : > { %v3582_v54 = vpop.eup %3581 }
 0x732   : > { %v3584_v56 = vpop.eup %3583  ;;  %v905_v59 = vmul.f32 %v3582_v54, %v4281_v44 }
 0x733   : > { %v1099_v63 = vmul.f32 %v3584_v56, %v4285_v47  ;;  %v1281_v47 = vadd.f32 %v1272_v9, %v1271_v8 }
 0x78f   : > { %v908_v55 = vpop.permute.xlu1 %907 }
 0x790   : > { %v910_v4 = vmul.f32 %v3582_v54, %v908_v55 }
 0x792   : > { %912 = vrot.lane.b32.xlu0 %v910_v4, %s3895_s26 }
 0x793   : > { %v1102_v57 = vpop.permute.xlu1 %1101 }
 0x794   : > { %v1104_v58 = vmul.f32 %v3584_v56, %v1102_v57 }
 0x796   : > { %1106 = vrot.lane.b32.xlu1 %v1104_v58, %s3895_s26 }
 0x804   : > { %v913_v60 = vpop.permute.xlu0 %912 }
 0x805   : > { %v4362_v61 = vadd.f32 %v913_v60, %v905_v59 }
 0x807   : > { %3585 = vtanh.f32 %v4362_v61 }
 0x808   : > { %v1107_v1 = vpop.permute.xlu1 %1106 }
 0x809   : > { %v4366_v2 = vadd.f32 %v1107_v1, %v1099_v63 }
 0x80b   : > { %3587 = vtanh.f32 %v4366_v2 }
 0x814   : > { %v3586_v3 = vpop.eup %3585 }
 0x815   : > { %918 = vrot.lane.b32.xlu0 %v3586_v3, %s3896_s12 }
 0x818   : > { %v3588_v44 = vpop.eup %3587 }
 0x819   : > { %1112 = vrot.lane.b32.xlu1 %v3588_v44, %s3896_s12 }
 0x834   : > { %1276 = vadd.xlane.f32.xlu0 %v1275_v7 }
 0x838   : > { %1282 = vadd.xlane.f32.xlu0 %v1281_v47 }
 0x83c   : > { %1285 = vadd.xlane.f32.xlu0 %v1284_v22 }
 0x83d   : > { %1279 = vadd.xlane.f32.xlu1 %v1278_v34 }
 0x887   : > { %v919_v37 = vpop.permute.xlu0 %918 }
 0x888   : > { %v4379_v38 = vmul.f32 %v3582_v54, %v919_v37  ;;  %v1580_v37 = vld [vmem:[%s4064_s17 + $0x140] sm:$0xff] }
 0x88a   : > { %1121 = vrot.lane.b32.xlu1 %v4379_v38, %s3896_s12 }
 0x88b   : > { %v1113_v39 = vpop.permute.xlu1 %1112 }
 0x88c   : > { %v1115_v40 = vmul.f32 %v3584_v56, %v1113_v39  ;;  %v1581_v39 = vld [vmem:[%s4064_s17 + $0x148] sm:$0xff] }
 0x88e   : > { %1315 = vrot.lane.b32.xlu1 %v1115_v40, %s3896_s12  ;;  %1117 = vrot.lane.b32.xlu0 %v1115_v40, %s3895_s26  ;;  %v1576_v40 = vld [vmem:[%s4064_s17 + $0x40] sm:$0xff] }
 0x8bd   : > { %v1277_v41 = vpop.xlane.xlu0 %1276 }
 0x8be   : > { %v1287_v12 = vmul.f32 0.00390625, %v1277_v41  ;;  %v1577_v41 = vld [vmem:[%s4064_s17 + $0x48] sm:$0xff] }
 0x8c0   : > { %v1298_v17 = vrot.slane %v1287_v12, %v4132_v30  ;;  %v1582_v12 = vld [vmem:[%s4064_s17 + $0x1c0] sm:$0xff] }
 0x8c1   : > { %v1283_v42 = vpop.xlane.xlu0 %1282 }
 0x8c2   : > { %v1289_v15 = vmul.f32 0.00390625, %v1283_v42  ;;  %v1590_v42 = vadd.f32 %v1581_v39, %v1580_v37 }
 0x8c4   : > { %v1307_v45 = vrot.slane %v1289_v15, %v4138_v33 }
 0x8c5   : > { %v1286_v16 = vpop.xlane.xlu0 %1285 }
 0x8c6   : > { %v1280_v43 = vpop.xlane.xlu1 %1279  ;;  %v1290_v19 = vmul.f32 0.00390625, %v1286_v16  ;;  %v4444_v16 = vld [vmem:[#allocation9 + $0x38] sm:$0xff] }
 0x8c7   : > { %v1288_v13 = vmul.f32 0.00390625, %v1280_v43  ;;  %v1584_v43 = vadd.f32 %v1577_v41, %v1576_v40 }
 0x8c8   : > { %v1312_v20 = vrot.slane %v1290_v19, %v4141_v36  ;;  %v4454_v19 = vld [vmem:[#allocation9 + $0x20] sm:$0xff] }
 0x8c9   : > { %v1302_v18 = vrot.slane %v1288_v13, %v4135_v32  ;;  %v1583_v13 = vld [vmem:[%s4064_s17 + $0x1c8] sm:$0xff] }
 0x8ca   : > { %v1593_v15 = vadd.f32 %v1583_v13, %v1582_v12 }
 0x8cb   : > { %v1303_v46 = vsel %vm344_vm2, %v1302_v18, %v1298_v17  ;;  %v4446_v17 = vld [vmem:[#allocation9 + $0x30] sm:$0xff]  ;;  %v4450_v18 = vld [vmem:[#allocation9 + $0x28] sm:$0xff] }
 0x8cc   : > { %v1308_v49 = vsel %vm351_vm3, %v1307_v45, %v1303_v46  ;;  %v4458_v45 = vld [vmem:[#allocation9 + $0x18] sm:$0xff]  ;;  %v4464_v46 = vld [vmem:[#allocation9 + $0x10] sm:$0xff] }
 0x8cd   : > { %v1313_v51 = vsel %vm358_vm4, %v1312_v20, %v1308_v49  ;;  %v4468_v20 = vld [vmem:[#allocation9 + $0x8] sm:$0xff] }
 0x8fc   : > { %v1122_v48 = vpop.permute.xlu1 %1121 }
 0x900   : > { %v1118_v50 = vpop.permute.xlu0 %1117  ;;  %v1316_v52 = vpop.permute.xlu1 %1315 }
 0x901   : > { %v1124_v53 = vsel %vm369_vm5, %v1118_v50, %v1122_v48  ;;  %v1318_v54 = vsel %vm369_vm5, %v1313_v51, %v1316_v52  ;;  %v4472_v48 = vld [vmem:[#allocation9] sm:$0xff] }
 0x902   : > { %3264 = vmatmul.mubr.msk.f32.vlgmr.msra.gmra.mxu1 %vm380_vm6, %v1124_v53  ;;  %3283 = vmatmul.mubr.msk.f32.vlgmr.msra.gmra.mxu0 %vm380_vm6, %v1318_v54 }
 0x903   : > { %3286 = vmatpush3.msra.mxu1 %v4188_v23  ;;  %3301 = vmatprep.mubr.msk.f32.mxu1 %vm3894_vm1, %v3893_v0  ;;  %v1133_v23 = vld [vmem:[%s5118_s4] sm:$0x1] }
 0x904   : > { %3287 = vmatprep.subr.mxu1 %v3893_v0  ;;  %3320 = vmatprep.mubr.msk.f32.mxu0 %vm3894_vm1, %v3893_v0 }
 0x905   : > { %3288 = vmatpush3.msra.mxu1 %v4190_v25  ;;  %v1327_v25 = vld [vmem:[%s5116_s2] sm:$0x1]  ;;  %3305 = vmatpush3.msra.mxu0 %v4444_v16 }
 0x906   : > { %3289 = vmatprep.subr.mxu1 %v3893_v0  ;;  %3306 = vmatprep.subr.mxu0 %v3893_v0 }
 0x907   : > { %3290 = vmatpush3.msra.mxu1 %v4196_v26  ;;  %3307 = vmatpush3.msra.mxu0 %v4446_v17 }
 0x908   : > { %3291 = vmatprep.subr.mxu1 %v3893_v0  ;;  %3308 = vmatprep.subr.mxu0 %v3893_v0 }
 0x909   : > { %3292 = vmatpush3.msra.mxu1 %v4198_v27  ;;  %3309 = vmatpush3.msra.mxu0 %v4450_v18 }
 0x90a   : > { %3293 = vmatprep.subr.mxu1 %v3893_v0  ;;  %3310 = vmatprep.subr.mxu0 %v3893_v0 }
 0x90b   : > { %3294 = vmatpush3.msra.mxu1 %v4202_v28  ;;  %3311 = vmatpush3.msra.mxu0 %v4454_v19 }
 0x90c   : > { %3295 = vmatprep.subr.mxu1 %v3893_v0  ;;  %3312 = vmatprep.subr.mxu0 %v3893_v0 }
 0x90d   : > { %3296 = vmatpush3.msra.mxu1 %v4206_v29  ;;  %3313 = vmatpush3.msra.mxu0 %v4458_v45 }
 0x90e   : > { %3297 = vmatprep.subr.mxu1 %v3893_v0  ;;  %3314 = vmatprep.subr.mxu0 %v3893_v0 }
 0x90f   : > { %3298 = vmatpush3.msra.mxu1 %v4210_v31  ;;  %3315 = vmatpush3.msra.mxu0 %v4464_v46 }
 0x910   : > { %3299 = vmatprep.subr.mxu1 %v3893_v0  ;;  %3316 = vmatprep.subr.mxu0 %v3893_v0 }
 0x911   : > { %3300 = vmatpush3.msra.mxu1 %v4217_v35  ;;  %3317 = vmatpush3.msra.mxu0 %v4468_v20 }
 0x912   : > { %3323 = vmatprep.subr.mxu1 %v3893_v0  ;;  %3318 = vmatprep.subr.mxu0 %v3893_v0 }
 0x913   : > { %3319 = vmatpush3.msra.mxu0 %v4472_v48 }
 0x914   : > { %3342 = vmatprep.subr.mxu0 %v3893_v0 }
 0x9c2   : > { %v1203_v26 = vpop.f32.mrf.mxu1  ;;  %v1397_v27 = vpop.f32.mrf.mxu0 }
 0x9c3   : > { %v1204_v28 = vadd.f32 %v1203_v26, %v1133_v23  ;;  %v1398_v29 = vadd.f32 %v1397_v27, %v1327_v25 }
 0x9c4   : > { %v3265_v55 = vpop.f32.mrf.mxu1  ;;  %v3284_v31 = vpop.f32.mrf.mxu0 }
 0x9c5   : > { %3589 = vtanh.f32 %v1204_v28  ;;  %v2980_v56 = vmul.f32 -1.442695, %v1204_v28  ;;  %v2982_v57 = vmul.f32 -1.442695, %v1398_v29 }
 0x9c6   : > { %3591 = vtanh.f32 %v1398_v29 }
 0x9c7   : > { %3593 = vpow2.f32 %v2980_v56 }
 0x9c8   : > { %3595 = vpow2.f32 %v2982_v57 }
 0x9d2   : > { %v3590_v4 = vpop.eup %3589 }
 0x9d3   : > { %v3592_v35 = vpop.eup %3591  ;;  %1216 = vrot.lane.b32.xlu1 %v3590_v4, %s3896_s12 }
 0x9d4   : > { %1410 = vrot.lane.b32.xlu0 %v3592_v35, %s3896_s12  ;;  %v3594_v58 = vpop.eup %3593 }
 0x9d5   : > { %v3596_v59 = vpop.eup %3595  ;;  %v1210_v60 = vadd.f32 1.0, %v3594_v58 }
 0x9d6   : > { %v1404_v63 = vadd.f32 1.0, %v3596_v59 }
 0x9d7   : > { %3597 = vrcp.f32 %v1210_v60 }
 0x9d8   : > { %3599 = vrcp.f32 %v1404_v63 }
 0x9e4   : > { %v3598_v1 = vpop.eup %3597 }
 0x9e5   : > { %v3600_v44 = vpop.eup %3599  ;;  %v1214_v8 = vmul.f32 %v3598_v1, %v4362_v61  ;;  %v1578_v61 = vld [vmem:[%s4064_s17 + $0xc0] sm:$0xff] }
 0x9e6   : > { %v1408_v47 = vmul.f32 %v3600_v44, %v4366_v2  ;;  %v1579_v2 = vld [vmem:[%s4064_s17 + $0xc8] sm:$0xff] }
 0x9e7   : > { %v1587_v34 = vadd.f32 %v1579_v2, %v1578_v61 }
 0xa45   : > { %v1217_v3 = vpop.permute.xlu1 %1216 }
 0xa46   : > { %v1219_v5 = vmul.f32 %v3598_v1, %v1217_v3  ;;  %v1411_v6 = vpop.permute.xlu0 %1410 }
 0xa47   : > { %v1413_v7 = vmul.f32 %v3600_v44, %v1411_v6 }
 0xa48   : > { %1221 = vrot.lane.b32.xlu1 %v1219_v5, %s3895_s26 }
 0xa49   : > { %1415 = vrot.lane.b32.xlu0 %v1413_v7, %s3895_s26 }
 0xaba   : > { %v1222_v9 = vpop.permute.xlu1 %1221 }
 0xabb   : > { %v4428_v10 = vadd.f32 %v1222_v9, %v1214_v8  ;;  %v1416_v11 = vpop.permute.xlu0 %1415  ;;  %v1636_v8 = vld [vmem:[%s5116_s2] sm:$0x1] }
 0xabc   : > { %v4430_v14 = vadd.f32 %v1416_v11, %v1408_v47 }
 0xabd   : > { %3601 = vtanh.f32 %v4428_v10 }
 0xabe   : > { %3603 = vtanh.f32 %v4430_v14 }
 0xaca   : > { %v3602_v21 = vpop.eup %3601 }
 0xacb   : > { %v3604_v22 = vpop.eup %3603  ;;  %1227 = vrot.lane.b32.xlu1 %v3602_v21, %s3896_s12 }
 0xacc   : > { %1421 = vrot.lane.b32.xlu0 %v3604_v22, %s3896_s12 }
 0xaeb   : > { %1588 = vadd.xlane.f32.xlu0 %v1587_v34 }
 0xaef   : > { %1591 = vadd.xlane.f32.xlu0 %v1590_v42  ;;  %1585 = vadd.xlane.f32.xlu1 %v1584_v43 }
 0xaf3   : > { %1594 = vadd.xlane.f32.xlu0 %v1593_v15 }
 0xb3d   : > { %v1228_v49 = vpop.permute.xlu1 %1227 }
 0xb3e   : > { %v4476_v50 = vmul.f32 %v3598_v1, %v1228_v49  ;;  %v1422_v51 = vpop.permute.xlu0 %1421 }
 0xb3f   : > { %v1424_v52 = vmul.f32 %v3600_v44, %v1422_v51  ;;  %v1442_v44 = vld [vmem:[%s5118_s4] sm:$0x1] }
 0xb40   : > { %1430 = vrot.lane.b32.xlu0 %v4476_v50, %s3896_s12 }
 0xb41   : > { %1426 = vrot.lane.b32.xlu1 %v1424_v52, %s3895_s26 }
 0xb45   : > { %1624 = vrot.lane.b32.xlu1 %v1424_v52, %s3896_s12 }
 0xb74   : > { %v1589_v53 = vpop.xlane.xlu0 %1588 }
 0xb75   : > { %v1597_v25 = vmul.f32 0.00390625, %v1589_v53 }
 0xb77   : > { %v1611_v29 = vrot.slane %v1597_v25, %v4135_v32 }
 0xb78   : > { %v1592_v54 = vpop.xlane.xlu0 %1591  ;;  %v1586_v23 = vpop.xlane.xlu1 %1585 }
 0xb79   : > { %v1596_v26 = vmul.f32 0.00390625, %v1586_v23  ;;  %v1598_v27 = vmul.f32 0.00390625, %v1592_v54 }
 0xb7b   : > { %v1607_v55 = vrot.slane %v1596_v26, %v4132_v30  ;;  %v1616_v4 = vrot.slane %v1598_v27, %v4138_v33  ;;  %v4534_v26 = vld [vmem:[%s4064_s17 + $0x50] sm:$0xff]  ;;  %v4537_v27 = vld [vmem:[%s4064_s17 + $0x58] sm:$0xff] }
 0xb7c   : > { %v1595_v28 = vpop.xlane.xlu0 %1594 }
 0xb7d   : > { %v1599_v31 = vmul.f32 0.00390625, %v1595_v28  ;;  %v1612_v35 = vsel %vm344_vm2, %v1611_v29, %v1607_v55  ;;  %v4542_v28 = vld [vmem:[%s4064_s17 + $0x150] sm:$0xff]  ;;  %v4545_v29 = vld [vmem:[%s4064_s17 + $0x158] sm:$0xff] }
 0xb7e   : > { %v1617_v60 = vsel %vm351_vm3, %v1616_v4, %v1612_v35  ;;  %v1899_v55 = vadd.f32 %v4545_v29, %v4542_v28  ;;  %v1892_v4 = vld [vmem:[%s4064_s17 + $0x1d8] sm:$0xff]  ;;  %v1887_v35 = vld [vmem:[%s4064_s17 + $0xd0] sm:$0xff] }
 0xb7f   : > { %v1621_v57 = vrot.slane %v1599_v31, %v4141_v36  ;;  %v1891_v31 = vld [vmem:[%s4064_s17 + $0x1d0] sm:$0xff] }
 0xb81   : > { %v1622_v1 = vsel %vm358_vm4, %v1621_v57, %v1617_v60  ;;  %v1902_v57 = vadd.f32 %v1892_v4, %v1891_v31  ;;  %v4557_v60 = vld [vmem:[#allocation11 + $0x30] sm:$0xff] }
 0xbb2   : > { %v1431_v56 = vpop.permute.xlu0 %1430 }
 0xbb3   : > { %v1427_v58 = vpop.permute.xlu1 %1426 }
 0xbb4   : > { %v1433_v59 = vsel %vm369_vm5, %v1427_v58, %v1431_v56  ;;  %v1888_v56 = vld [vmem:[%s4064_s17 + $0xd8] sm:$0xff] }
 0xbb5   : > { %3302 = vmatmul.mubr.msk.f32.vlgmr.msra.gmra.mxu1 %vm380_vm6, %v1433_v59  ;;  %v1896_v58 = vadd.f32 %v1888_v56, %v1887_v35  ;;  %v4553_v59 = vld [vmem:[#allocation11 + $0x38] sm:$0xff] }
 0xbb6   : > { %3339 = vmatprep.mubr.msk.f32.mxu1 %vm3894_vm1, %v3893_v0  ;;  %3324 = vmatpush3.msra.mxu1 %v4553_v59 }
 0xbb7   : > { %v1625_v63 = vpop.permute.xlu1 %1624  ;;  %3325 = vmatprep.subr.mxu1 %v3893_v0 }
 0xbb8   : > { %v1627_v3 = vsel %vm369_vm5, %v1622_v1, %v1625_v63  ;;  %v4559_v63 = vld [vmem:[#allocation11 + $0x28] sm:$0xff]  ;;  %3326 = vmatpush3.msra.mxu1 %v4557_v60  ;;  %v4563_v1 = vld [vmem:[#allocation11 + $0x20] sm:$0xff] }
 0xbb9   : > { %3321 = vmatmul.mubr.msk.f32.vlgmr.msra.gmra.mxu0 %vm380_vm6, %v1627_v3  ;;  %3327 = vmatprep.subr.mxu1 %v3893_v0  ;;  %v4567_v3 = vld [vmem:[#allocation11 + $0x18] sm:$0xff] }
 0xbba   : > { %3343 = vmatpush3.msra.mxu0 %v4444_v16  ;;  %3358 = vmatprep.mubr.msk.f32.mxu0 %vm3894_vm1, %v3893_v0 }
 0xbbb   : > { %3344 = vmatprep.subr.mxu0 %v3893_v0  ;;  %3328 = vmatpush3.msra.mxu1 %v4559_v63 }
 0xbbc   : > { %3345 = vmatpush3.msra.mxu0 %v4446_v17  ;;  %3329 = vmatprep.subr.mxu1 %v3893_v0 }
 0xbbd   : > { %3346 = vmatprep.subr.mxu0 %v3893_v0  ;;  %3330 = vmatpush3.msra.mxu1 %v4563_v1 }
 0xbbe   : > { %3347 = vmatpush3.msra.mxu0 %v4450_v18  ;;  %3331 = vmatprep.subr.mxu1 %v3893_v0 }
 0xbbf   : > { %3348 = vmatprep.subr.mxu0 %v3893_v0  ;;  %3332 = vmatpush3.msra.mxu1 %v4567_v3 }
 0xbc0   : > { %3349 = vmatpush3.msra.mxu0 %v4454_v19  ;;  %3333 = vmatprep.subr.mxu1 %v3893_v0 }
 0xbc1   : > { %3350 = vmatprep.subr.mxu0 %v3893_v0 }
 0xbc2   : > { %3351 = vmatpush3.msra.mxu0 %v4458_v45 }
 0xbc3   : > { %3352 = vmatprep.subr.mxu0 %v3893_v0 }
 0xbc4   : > { %3353 = vmatpush3.msra.mxu0 %v4464_v46 }
 0xbc5   : > { %3354 = vmatprep.subr.mxu0 %v3893_v0 }
 0xbc6   : > { %3355 = vmatpush3.msra.mxu0 %v4468_v20 }
 0xbc7   : > { %3356 = vmatprep.subr.mxu0 %v3893_v0 }
 0xbc8   : > { %3357 = vmatpush3.msra.mxu0 %v4472_v48 }
 0xbc9   : > { %3380 = vmatprep.subr.mxu0 %v3893_v0 }
 0xc75   : > { %v1512_v5 = vpop.f32.mrf.mxu1 }
 0xc76   : > { %v1513_v6 = vadd.f32 %v1512_v5, %v1442_v44  ;;  %v4573_v44 = vld [vmem:[#allocation11 + $0x10] sm:$0xff]  ;;  %v4575_v5 = vld [vmem:[#allocation11 + $0x8] sm:$0xff] }
 0xc77   : > { %v3303_v7 = vpop.f32.mrf.mxu1  ;;  %3334 = vmatpush3.msra.mxu1 %v4573_v44 }
 0xc78   : > { %3605 = vtanh.f32 %v1513_v6  ;;  %v2984_v61 = vmul.f32 -1.442695, %v1513_v6  ;;  %3335 = vmatprep.subr.mxu1 %v3893_v0  ;;  %v4581_v6 = vld [vmem:[#allocation11] sm:$0xff] }
 0xc79   : > { %v1706_v9 = vpop.f32.mrf.mxu0  ;;  %3336 = vmatpush3.msra.mxu1 %v4575_v5 }
 0xc7a   : > { %v1707_v47 = vadd.f32 %v1706_v9, %v1636_v8  ;;  %3337 = vmatprep.subr.mxu1 %v3893_v0 }
 0xc7b   : > { %v3322_v11 = vpop.f32.mrf.mxu0  ;;  %3338 = vmatpush3.msra.mxu1 %v4581_v6 }
 0xc7c   : > { %3607 = vtanh.f32 %v1707_v47  ;;  %v2986_v2 = vmul.f32 -1.442695, %v1707_v47  ;;  %3361 = vmatprep.subr.mxu1 %v3893_v0 }
 0xc7d   : > { %3609 = vpow2.f32 %v2984_v61 }
 0xc7e   : > { %3611 = vpow2.f32 %v2986_v2 }
 0xc85   : > { %v3606_v21 = vpop.eup %3605 }
 0xc86   : > { %1525 = vrot.lane.b32.xlu1 %v3606_v21, %s3896_s12 }
 0xc89   : > { %v3608_v22 = vpop.eup %3607 }
 0xc8a   : > { %1719 = vrot.lane.b32.xlu1 %v3608_v22, %s3896_s12  ;;  %v3610_v34 = vpop.eup %3609 }
 0xc8b   : > { %v1519_v37 = vadd.f32 1.0, %v3610_v34  ;;  %v3612_v39 = vpop.eup %3611 }
 0xc8c   : > { %v1713_v40 = vadd.f32 1.0, %v3612_v39 }
 0xc8d   : > { %3613 = vrcp.f32 %v1519_v37 }
 0xc8e   : > { %3615 = vrcp.f32 %v1713_v40 }
 0xc9a   : > { %v3614_v41 = vpop.eup %3613 }
 0xc9b   : > { %v3616_v12 = vpop.eup %3615  ;;  %v1523_v49 = vmul.f32 %v3614_v41, %v4428_v10 }
 0xc9c   : > { %v1717_v53 = vmul.f32 %v3616_v12, %v4430_v14  ;;  %v1893_v14 = vadd.f32 %v4537_v27, %v4534_v26 }
 0xcf8   : > { %v1526_v42 = vpop.permute.xlu1 %1525 }
 0xcf9   : > { %v1528_v43 = vmul.f32 %v3614_v41, %v1526_v42 }
 0xcfb   : > { %1530 = vrot.lane.b32.xlu0 %v1528_v43, %s3895_s26 }
 0xcfc   : > { %v1720_v13 = vpop.permute.xlu1 %1719 }
 0xcfd   : > { %v1722_v15 = vmul.f32 %v3616_v12, %v1720_v13 }
 0xcff   : > { %1724 = vrot.lane.b32.xlu1 %v1722_v15, %s3895_s26 }
 0xd6d   : > { %v1531_v51 = vpop.permute.xlu0 %1530 }
 0xd6e   : > { %v4524_v52 = vadd.f32 %v1531_v51, %v1523_v49 }
 0xd70   : > { %3617 = vtanh.f32 %v4524_v52 }
 0xd71   : > { %v1725_v54 = vpop.permute.xlu1 %1724 }
 0xd72   : > { %v4528_v23 = vadd.f32 %v1725_v54, %v1717_v53 }
 0xd74   : > { %3619 = vtanh.f32 %v4528_v23 }
 0xd7d   : > { %v3618_v25 = vpop.eup %3617 }
 0xd7e   : > { %1536 = vrot.lane.b32.xlu0 %v3618_v25, %s3896_s12 }
 0xd81   : > { %v3620_v10 = vpop.eup %3619 }
 0xd82   : > { %1730 = vrot.lane.b32.xlu1 %v3620_v10, %s3896_s12  ;;  %v1751_v10 = vld [vmem:[%s5118_s4] sm:$0x1] }
 0xd9d   : > { %1894 = vadd.xlane.f32.xlu0 %v1893_v14  ;;  %v1945_v14 = vld [vmem:[%s5116_s2] sm:$0x1] }
 0xda1   : > { %1900 = vadd.xlane.f32.xlu0 %v1899_v55 }
 0xda5   : > { %1903 = vadd.xlane.f32.xlu0 %v1902_v57 }
 0xda6   : > { %1897 = vadd.xlane.f32.xlu1 %v1896_v58 }
 0xdf0   : > { %v1537_v7 = vpop.permute.xlu0 %1536 }
 0xdf1   : > { %v4585_v8 = vmul.f32 %v3614_v41, %v1537_v7 }
 0xdf3   : > { %1739 = vrot.lane.b32.xlu1 %v4585_v8, %s3896_s12 }
 0xdf4   : > { %v1731_v9 = vpop.permute.xlu1 %1730 }
 0xdf5   : > { %v1733_v47 = vmul.f32 %v3616_v12, %v1731_v9 }
 0xdf7   : > { %1933 = vrot.lane.b32.xlu1 %v1733_v47, %s3896_s12  ;;  %1735 = vrot.lane.b32.xlu0 %v1733_v47, %s3895_s26 }
 0xe26   : > { %v1895_v11 = vpop.xlane.xlu0 %1894 }
 0xe27   : > { %v1905_v61 = vmul.f32 0.00390625, %v1895_v11 }
 0xe29   : > { %v1916_v39 = vrot.slane %v1905_v61, %v4132_v30 }
 0xe2a   : > { %v1901_v21 = vpop.xlane.xlu0 %1900 }
 0xe2b   : > { %v1907_v34 = vmul.f32 0.00390625, %v1901_v21 }
 0xe2d   : > { %v1925_v42 = vrot.slane %v1907_v34, %v4138_v33 }
 0xe2e   : > { %v1904_v37 = vpop.xlane.xlu0 %1903 }
 0xe2f   : > { %v1898_v22 = vpop.xlane.xlu1 %1897  ;;  %v1908_v41 = vmul.f32 0.00390625, %v1904_v37 }
 0xe30   : > { %v1906_v2 = vmul.f32 0.00390625, %v1898_v22 }
 0xe31   : > { %v1930_v12 = vrot.slane %v1908_v41, %v4141_v36 }
 0xe32   : > { %v1920_v40 = vrot.slane %v1906_v2, %v4135_v32 }
 0xe34   : > { %v1921_v43 = vsel %vm344_vm2, %v1920_v40, %v1916_v39 }
 0xe35   : > { %v1926_v15 = vsel %vm351_vm3, %v1925_v42, %v1921_v43 }
 0xe36   : > { %v1931_v51 = vsel %vm358_vm4, %v1930_v12, %v1926_v15 }
 0xe65   : > { %v1740_v13 = vpop.permute.xlu1 %1739 }
 0xe69   : > { %v1736_v49 = vpop.permute.xlu0 %1735  ;;  %v1934_v53 = vpop.permute.xlu1 %1933 }
 0xe6a   : > { %v1742_v54 = vsel %vm369_vm5, %v1736_v49, %v1740_v13  ;;  %v1936_v25 = vsel %vm369_vm5, %v1931_v51, %v1934_v53 }
 0xe6b   : > { %3340 = vmatmul.mubr.msk.f32.vlgmr.msra.gmra.mxu1 %vm380_vm6, %v1742_v54  ;;  %3359 = vmatmul.mubr.msk.f32.vlgmr.msra.gmra.mxu0 %vm380_vm6, %v1936_v25  ;;  %v4667_v25 = vld [vmem:[%s4064_s17 + $0x160] sm:$0xff] }
 0xe6c   : > { %3362 = vmatpush3.msra.mxu1 %v4553_v59  ;;  %3381 = vmatpush3.msra.mxu0 %v4444_v16 }
 0xe6d   : > { %3363 = vmatprep.subr.mxu1 %v3893_v0  ;;  %3382 = vmatprep.subr.mxu0 %v3893_v0 }
 0xe6e   : > { %3364 = vmatpush3.msra.mxu1 %v4557_v60  ;;  %3383 = vmatpush3.msra.mxu0 %v4446_v17 }
 0xe6f   : > { %3365 = vmatprep.subr.mxu1 %v3893_v0  ;;  %3384 = vmatprep.subr.mxu0 %v3893_v0 }
 0xe70   : > { %3366 = vmatpush3.msra.mxu1 %v4559_v63  ;;  %3385 = vmatpush3.msra.mxu0 %v4450_v18 }
 0xe71   : > { %3367 = vmatprep.subr.mxu1 %v3893_v0  ;;  %3386 = vmatprep.subr.mxu0 %v3893_v0 }
 0xe72   : > { %3368 = vmatpush3.msra.mxu1 %v4563_v1  ;;  %3387 = vmatpush3.msra.mxu0 %v4454_v19 }
 0xe73   : > { %3369 = vmatprep.subr.mxu1 %v3893_v0  ;;  %3388 = vmatprep.subr.mxu0 %v3893_v0 }
 0xe74   : > { %3370 = vmatpush3.msra.mxu1 %v4567_v3  ;;  %3389 = vmatpush3.msra.mxu0 %v4458_v45 }
 0xe75   : > { %3371 = vmatprep.subr.mxu1 %v3893_v0  ;;  %3390 = vmatprep.subr.mxu0 %v3893_v0 }
 0xe76   : > { %3372 = vmatpush3.msra.mxu1 %v4573_v44  ;;  %3377 = vmatprep.mubr.msk.f32.mxu1 %vm3894_vm1, %v3893_v0 }
 0xe77   : > { %3373 = vmatprep.subr.mxu1 %v3893_v0  ;;  %3391 = vmatpush3.msra.mxu0 %v4464_v46 }
 0xe78   : > { %3374 = vmatpush3.msra.mxu1 %v4575_v5  ;;  %3392 = vmatprep.subr.mxu0 %v3893_v0 }
 0xe79   : > { %3375 = vmatprep.subr.mxu1 %v3893_v0  ;;  %3393 = vmatpush3.msra.mxu0 %v4468_v20 }
 0xe7a   : > { %3376 = vmatpush3.msra.mxu1 %v4581_v6  ;;  %3394 = vmatprep.subr.mxu0 %v3893_v0 }
 0xe7b   : > { %3395 = vmatpush3.msra.mxu0 %v4472_v48  ;;  %3396 = vmatprep.mubr.msk.f32.mxu0 %vm3894_vm1, %v3893_v0 }
 0xe7c   : > { %3399 = vmatprep.subr.mxu1 %v3893_v0  ;;  %3418 = vmatprep.subr.mxu0 %v3893_v0 }
 0xf2b   : > { %v1821_v55 = vpop.f32.mrf.mxu1  ;;  %v2015_v31 = vpop.f32.mrf.mxu0 }
 0xf2c   : > { %v1822_v4 = vadd.f32 %v1821_v55, %v1751_v10  ;;  %v2016_v35 = vadd.f32 %v2015_v31, %v1945_v14  ;;  %v4670_v10 = vld [vmem:[%s4064_s17 + $0x168] sm:$0xff]  ;;  %v4673_v14 = vld [vmem:[%s4064_s17 + $0x60] sm:$0xff] }
 0xf2d   : > { %v3341_v56 = vpop.f32.mrf.mxu1  ;;  %v3360_v57 = vpop.f32.mrf.mxu0  ;;  %v4676_v55 = vld [vmem:[%s4064_s17 + $0x68] sm:$0xff]  ;;  %v2208_v31 = vadd.f32 %v4670_v10, %v4667_v25 }
 0xf2e   : > { %3621 = vtanh.f32 %v1822_v4  ;;  %v2988_v9 = vmul.f32 -1.442695, %v1822_v4  ;;  %v2990_v47 = vmul.f32 -1.442695, %v2016_v35  ;;  %v2202_v4 = vadd.f32 %v4676_v55, %v4673_v14  ;;  %v4686_v56 = vld [vmem:[%s4064_s17 + $0x1e8] sm:$0xff] }
 0xf2f   : > { %3623 = vtanh.f32 %v2016_v35  ;;  %v4683_v35 = vld [vmem:[%s4064_s17 + $0x1e0] sm:$0xff] }
 0xf30   : > { %3625 = vpow2.f32 %v2988_v9  ;;  %v2211_v57 = vadd.f32 %v4686_v56, %v4683_v35 }
 0xf31   : > { %3627 = vpow2.f32 %v2990_v47 }
 0xf3b   : > { %v3622_v58 = vpop.eup %3621 }
 0xf3c   : > { %v3624_v7 = vpop.eup %3623  ;;  %1834 = vrot.lane.b32.xlu1 %v3622_v58, %s3896_s12 }
 0xf3d   : > { %2028 = vrot.lane.b32.xlu0 %v3624_v7, %s3896_s12  ;;  %v3626_v11 = vpop.eup %3625 }
 0xf3e   : > { %v3628_v21 = vpop.eup %3627  ;;  %v1828_v22 = vadd.f32 1.0, %v3626_v11 }
 0xf3f   : > { %v2022_v61 = vadd.f32 1.0, %v3628_v21 }
 0xf40   : > { %3629 = vrcp.f32 %v1828_v22 }
 0xf41   : > { %3631 = vrcp.f32 %v2022_v61 }
 0xf4d   : > { %v3630_v2 = vpop.eup %3629 }
 0xf4e   : > { %v3632_v37 = vpop.eup %3631  ;;  %v1832_v42 = vmul.f32 %v3630_v2, %v4524_v52  ;;  %v4659_v52 = vld [vmem:[%s4064_s17 + $0xe0] sm:$0xff] }
 0xf4f   : > { %v2026_v12 = vmul.f32 %v3632_v37, %v4528_v23  ;;  %v4662_v23 = vld [vmem:[%s4064_s17 + $0xe8] sm:$0xff] }
 0xf50   : > { %v2205_v54 = vadd.f32 %v4662_v23, %v4659_v52 }
 0xfae   : > { %v1835_v34 = vpop.permute.xlu1 %1834 }
 0xfaf   : > { %v1837_v39 = vmul.f32 %v3630_v2, %v1835_v34  ;;  %v2029_v40 = vpop.permute.xlu0 %2028 }
 0xfb0   : > { %v2031_v41 = vmul.f32 %v3632_v37, %v2029_v40 }
 0xfb1   : > { %1839 = vrot.lane.b32.xlu1 %v1837_v39, %s3895_s26 }
 0xfb2   : > { %2033 = vrot.lane.b32.xlu0 %v2031_v41, %s3895_s26 }
0x1023   : > { %v1840_v43 = vpop.permute.xlu1 %1839 }
0x1024   : > { %v4650_v13 = vadd.f32 %v1840_v43, %v1832_v42  ;;  %v2034_v15 = vpop.permute.xlu0 %2033 }
0x1025   : > { %v4652_v49 = vadd.f32 %v2034_v15, %v2026_v12 }
0x1026   : > { %3633 = vtanh.f32 %v4650_v13 }
0x1027   : > { %3635 = vtanh.f32 %v4652_v49 }
0x1033   : > { %v3634_v51 = vpop.eup %3633 }
0x1034   : > { %v3636_v53 = vpop.eup %3635  ;;  %1845 = vrot.lane.b32.xlu1 %v3634_v51, %s3896_s12 }
0x1035   : > { %2039 = vrot.lane.b32.xlu0 %v3636_v53, %s3896_s12 }
0x1054   : > { %2206 = vadd.xlane.f32.xlu0 %v2205_v54 }
0x1058   : > { %2209 = vadd.xlane.f32.xlu0 %v2208_v31  ;;  %2203 = vadd.xlane.f32.xlu1 %v2202_v4 }
0x105c   : > { %2212 = vadd.xlane.f32.xlu0 %v2211_v57 }
0x10a6   : > { %v1846_v58 = vpop.permute.xlu1 %1845 }
0x10a7   : > { %v4690_v7 = vmul.f32 %v3630_v2, %v1846_v58  ;;  %v2040_v9 = vpop.permute.xlu0 %2039 }
0x10a8   : > { %v2042_v47 = vmul.f32 %v3632_v37, %v2040_v9 }
0x10a9   : > { %2048 = vrot.lane.b32.xlu0 %v4690_v7, %s3896_s12 }
0x10aa   : > { %2044 = vrot.lane.b32.xlu1 %v2042_v47, %s3895_s26 }
0x10ae   : > { %2242 = vrot.lane.b32.xlu1 %v2042_v47, %s3896_s12 }
0x10dd   : > { %v2207_v11 = vpop.xlane.xlu0 %2206 }
0x10de   : > { %v2215_v61 = vmul.f32 0.00390625, %v2207_v11 }
0x10e0   : > { %v2229_v41 = vrot.slane %v2215_v61, %v4135_v32 }
0x10e1   : > { %v2210_v21 = vpop.xlane.xlu0 %2209  ;;  %v2204_v22 = vpop.xlane.xlu1 %2203 }
0x10e2   : > { %v2214_v34 = vmul.f32 0.00390625, %v2204_v22  ;;  %v2216_v39 = vmul.f32 0.00390625, %v2210_v21 }
0x10e4   : > { %v2225_v2 = vrot.slane %v2214_v34, %v4132_v30  ;;  %v2234_v37 = vrot.slane %v2216_v39, %v4138_v33 }
0x10e5   : > { %v2213_v40 = vpop.xlane.xlu0 %2212 }
0x10e6   : > { %v2217_v42 = vmul.f32 0.00390625, %v2213_v40  ;;  %v2230_v43 = vsel %vm344_vm2, %v2229_v41, %v2225_v2 }
0x10e7   : > { %v2235_v54 = vsel %vm351_vm3, %v2234_v37, %v2230_v43 }
0x10e8   : > { %v2239_v15 = vrot.slane %v2217_v42, %v4141_v36 }
0x10ea   : > { %v2240_v4 = vsel %vm358_vm4, %v2239_v15, %v2235_v54 }
0x111b   : > { %v2049_v12 = vpop.permute.xlu0 %2048 }
0x111c   : > { %v2045_v51 = vpop.permute.xlu1 %2044 }
0x111d   : > { %v2051_v53 = vsel %vm369_vm5, %v2045_v51, %v2049_v12 }
0x111e   : > { %3378 = vmatmul.mubr.msk.f32.vlgmr.msra.gmra.mxu1 %vm380_vm6, %v2051_v53 }
0x111f   : > { %3400 = vmatpush3.msra.mxu1 %v4553_v59  ;;  %3415 = vmatprep.mubr.msk.f32.mxu1 %vm3894_vm1, %v3893_v0 }
0x1120   : > { %v2243_v31 = vpop.permute.xlu1 %2242  ;;  %3401 = vmatprep.subr.mxu1 %v3893_v0 }
0x1121   : > { %v2245_v57 = vsel %vm369_vm5, %v2240_v4, %v2243_v31  ;;  %3402 = vmatpush3.msra.mxu1 %v4557_v60  ;;  %v4763_v4 = vld [vmem:[%s4064_s17 + $0x70] sm:$0xff] }
0x1122   : > { %3397 = vmatmul.mubr.msk.f32.vlgmr.msra.gmra.mxu0 %vm380_vm6, %v2245_v57  ;;  %3403 = vmatprep.subr.mxu1 %v3893_v0  ;;  %v4766_v57 = vld [vmem:[%s4064_s17 + $0x78] sm:$0xff] }
0x1123   : > { %3419 = vmatpush3.msra.mxu0 %v4444_v16  ;;  %3404 = vmatpush3.msra.mxu1 %v4559_v63  ;;  %v2060_v16 = vld [vmem:[%s5118_s4] sm:$0x1] }
0x1124   : > { %3420 = vmatprep.subr.mxu0 %v3893_v0  ;;  %3405 = vmatprep.subr.mxu1 %v3893_v0 }
0x1125   : > { %3421 = vmatpush3.msra.mxu0 %v4446_v17  ;;  %3406 = vmatpush3.msra.mxu1 %v4563_v1 }
0x1126   : > { %3422 = vmatprep.subr.mxu0 %v3893_v0  ;;  %3407 = vmatprep.subr.mxu1 %v3893_v0 }
0x1127   : > { %3423 = vmatpush3.msra.mxu0 %v4450_v18  ;;  %3408 = vmatpush3.msra.mxu1 %v4567_v3 }
0x1128   : > { %3424 = vmatprep.subr.mxu0 %v3893_v0  ;;  %3409 = vmatprep.subr.mxu1 %v3893_v0 }
0x1129   : > { %3425 = vmatpush3.msra.mxu0 %v4454_v19  ;;  %3410 = vmatpush3.msra.mxu1 %v4573_v44 }
0x112a   : > { %3426 = vmatprep.subr.mxu0 %v3893_v0  ;;  %3411 = vmatprep.subr.mxu1 %v3893_v0 }
0x112b   : > { %3427 = vmatpush3.msra.mxu0 %v4458_v45  ;;  %3412 = vmatpush3.msra.mxu1 %v4575_v5  ;;  %v2254_v45 = vld [vmem:[%s5116_s2] sm:$0x1] }
0x112c   : > { %3428 = vmatprep.subr.mxu0 %v3893_v0  ;;  %3413 = vmatprep.subr.mxu1 %v3893_v0 }
0x112d   : > { %3429 = vmatpush3.msra.mxu0 %v4464_v46  ;;  %3414 = vmatpush3.msra.mxu1 %v4581_v6 }
0x112e   : > { %3430 = vmatprep.subr.mxu0 %v3893_v0  ;;  %3434 = vmatprep.mubr.msk.f32.mxu0 %vm3894_vm1, %v3893_v0 }
0x112f   : > { %3431 = vmatpush3.msra.mxu0 %v4468_v20  ;;  %3437 = vmatprep.subr.mxu1 %v3893_v0 }
0x1130   : > { %3432 = vmatprep.subr.mxu0 %v3893_v0 }
0x1131   : > { %3433 = vmatpush3.msra.mxu0 %v4472_v48 }
0x11de   : > { %v2130_v17 = vpop.f32.mrf.mxu1 }
0x11df   : > { %v2131_v18 = vadd.f32 %v2130_v17, %v2060_v16  ;;  %v4771_v16 = vld [vmem:[%s4064_s17 + $0x170] sm:$0xff]  ;;  %v4774_v17 = vld [vmem:[%s4064_s17 + $0x178] sm:$0xff] }
0x11e0   : > { %v3379_v19 = vpop.f32.mrf.mxu1 }
0x11e1   : > { %3637 = vtanh.f32 %v2131_v18  ;;  %v2992_v47 = vmul.f32 -1.442695, %v2131_v18  ;;  %v2517_v18 = vadd.f32 %v4774_v17, %v4771_v16  ;;  %v4779_v19 = vld [vmem:[%s4064_s17 + $0x1f0] sm:$0xff] }
0x11e2   : > { %v2324_v46 = vpop.f32.mrf.mxu0 }
0x11e3   : > { %v2325_v20 = vadd.f32 %v2324_v46, %v2254_v45  ;;  %v4782_v45 = vld [vmem:[%s4064_s17 + $0x1f8] sm:$0xff]  ;;  %v4785_v46 = vld [vmem:[%s4064_s17 + $0xf0] sm:$0xff] }
0x11e4   : > { %v3398_v58 = vpop.f32.mrf.mxu0 }
0x11e5   : > { %3639 = vtanh.f32 %v2325_v20  ;;  %v2994_v11 = vmul.f32 -1.442695, %v2325_v20  ;;  %v4788_v20 = vld [vmem:[%s4064_s17 + $0xf8] sm:$0xff]  ;;  %v2520_v58 = vadd.f32 %v4782_v45, %v4779_v19 }
0x11e6   : > { %3641 = vpow2.f32 %v2992_v47 }
0x11e7   : > { %3643 = vpow2.f32 %v2994_v11 }
0x11ee   : > { %v3638_v9 = vpop.eup %3637 }
0x11ef   : > { %2143 = vrot.lane.b32.xlu1 %v3638_v9, %s3896_s12  ;;  %v2514_v9 = vadd.f32 %v4788_v20, %v4785_v46 }
0x11f2   : > { %v3640_v48 = vpop.eup %3639 }
0x11f3   : > { %2337 = vrot.lane.b32.xlu1 %v3640_v48, %s3896_s12  ;;  %v3642_v21 = vpop.eup %3641 }
0x11f4   : > { %v2137_v22 = vadd.f32 1.0, %v3642_v21  ;;  %v3644_v61 = vpop.eup %3643 }
0x11f5   : > { %v2331_v34 = vadd.f32 1.0, %v3644_v61 }
0x11f6   : > { %3645 = vrcp.f32 %v2137_v22 }
0x11f7   : > { %3647 = vrcp.f32 %v2331_v34 }
0x1203   : > { %v3646_v39 = vpop.eup %3645 }
0x1204   : > { %v3648_v2 = vpop.eup %3647  ;;  %v2141_v43 = vmul.f32 %v3646_v39, %v4650_v13 }
0x1205   : > { %v2335_v51 = vmul.f32 %v3648_v2, %v4652_v49  ;;  %v2511_v49 = vadd.f32 %v4766_v57, %v4763_v4 }
0x1261   : > { %v2144_v40 = vpop.permute.xlu1 %2143 }
0x1262   : > { %v2146_v41 = vmul.f32 %v3646_v39, %v2144_v40 }
0x1264   : > { %2148 = vrot.lane.b32.xlu0 %v2146_v41, %s3895_s26 }
0x1265   : > { %v2338_v42 = vpop.permute.xlu1 %2337 }
0x1266   : > { %v2340_v37 = vmul.f32 %v3648_v2, %v2338_v42 }
0x1268   : > { %2342 = vrot.lane.b32.xlu1 %v2340_v37, %s3895_s26 }
0x12d6   : > { %v2149_v12 = vpop.permute.xlu0 %2148 }
0x12d7   : > { %v4753_v15 = vadd.f32 %v2149_v12, %v2141_v43 }
0x12d9   : > { %3649 = vtanh.f32 %v4753_v15 }
0x12da   : > { %v2343_v53 = vpop.permute.xlu1 %2342 }
0x12db   : > { %v4757_v54 = vadd.f32 %v2343_v53, %v2335_v51 }
0x12dd   : > { %3651 = vtanh.f32 %v4757_v54 }
0x12e6   : > { %v3650_v31 = vpop.eup %3649 }
0x12e7   : > { %2154 = vrot.lane.b32.xlu0 %v3650_v31, %s3896_s12 }
0x12ea   : > { %v3652_v13 = vpop.eup %3651 }
0x12eb   : > { %2348 = vrot.lane.b32.xlu1 %v3652_v13, %s3896_s12 }
0x1306   : > { %2512 = vadd.xlane.f32.xlu0 %v2511_v49 }
0x130a   : > { %2518 = vadd.xlane.f32.xlu0 %v2517_v18 }
0x130e   : > { %2521 = vadd.xlane.f32.xlu0 %v2520_v58 }
0x130f   : > { %2515 = vadd.xlane.f32.xlu1 %v2514_v9 }
0x1359   : > { %v2155_v48 = vpop.permute.xlu0 %2154 }
0x135a   : > { %v4794_v47 = vmul.f32 %v3646_v39, %v2155_v48 }
0x135c   : > { %2357 = vrot.lane.b32.xlu1 %v4794_v47, %s3896_s12 }
0x135d   : > { %v2349_v11 = vpop.permute.xlu1 %2348 }
0x135e   : > { %v2351_v21 = vmul.f32 %v3648_v2, %v2349_v11 }
0x1360   : > { %2551 = vrot.lane.b32.xlu1 %v2351_v21, %s3896_s12  ;;  %2353 = vrot.lane.b32.xlu0 %v2351_v21, %s3895_s26 }
0x138f   : > { %v2513_v22 = vpop.xlane.xlu0 %2512 }
0x1390   : > { %v2523_v40 = vmul.f32 0.00390625, %v2513_v22 }
0x1392   : > { %v2534_v43 = vrot.slane %v2523_v40, %v4132_v30 }
0x1393   : > { %v2519_v61 = vpop.xlane.xlu0 %2518 }
0x1394   : > { %v2525_v42 = vmul.f32 0.00390625, %v2519_v61 }
0x1396   : > { %v2543_v51 = vrot.slane %v2525_v42, %v4138_v33  ;;  %v2563_v33 = vld [vmem:[%s5116_s2] sm:$0x1] }
0x1397   : > { %v2522_v37 = vpop.xlane.xlu0 %2521 }
0x1398   : > { %v2516_v34 = vpop.xlane.xlu1 %2515  ;;  %v2526_v12 = vmul.f32 0.00390625, %v2522_v37 }
0x1399   : > { %v2524_v41 = vmul.f32 0.00390625, %v2516_v34 }
0x139a   : > { %v2548_v53 = vrot.slane %v2526_v12, %v4141_v36 }
0x139b   : > { %v2538_v39 = vrot.slane %v2524_v41, %v4135_v32  ;;  %v2369_v32 = vld [vmem:[%s5118_s4] sm:$0x1] }
0x139d   : > { %v2539_v2 = vsel %vm344_vm2, %v2538_v39, %v2534_v43 }
0x139e   : > { %v2544_v13 = vsel %vm351_vm3, %v2543_v51, %v2539_v2 }
0x139f   : > { %v2549_v18 = vsel %vm358_vm4, %v2548_v53, %v2544_v13 }
0x13ce   : > { %v2358_v31 = vpop.permute.xlu1 %2357 }
0x13d2   : > { %v2354_v49 = vpop.permute.xlu0 %2353  ;;  %v2552_v58 = vpop.permute.xlu1 %2551 }
0x13d3   : > { %v2360_v9 = vsel %vm369_vm5, %v2354_v49, %v2358_v31  ;;  %v2554_v30 = vsel %vm369_vm5, %v2549_v18, %v2552_v58 }
0x13d4   : > { %3416 = vmatmul.mubr.msk.f32.vlgmr.msra.gmra.mxu1 %vm380_vm6, %v2360_v9  ;;  %3435 = vmatmul.mubr.msk.f32.vlgmr.msra.gmra.mxu0 %vm380_vm6, %v2554_v30 }
0x13d5   : > { %3438 = vmatpush3.msra.mxu1 %v4553_v59  ;;  %3453 = vmatprep.mubr.msk.f32.mxu1 %vm3894_vm1, %v3893_v0 }
0x13d6   : > { %3439 = vmatprep.subr.mxu1 %v3893_v0 }
0x13d7   : > { %3440 = vmatpush3.msra.mxu1 %v4557_v60 }
0x13d8   : > { %3441 = vmatprep.subr.mxu1 %v3893_v0 }
0x13d9   : > { %3442 = vmatpush3.msra.mxu1 %v4559_v63 }
0x13da   : > { %3443 = vmatprep.subr.mxu1 %v3893_v0 }
0x13db   : > { %3444 = vmatpush3.msra.mxu1 %v4563_v1 }
0x13dc   : > { %3445 = vmatprep.subr.mxu1 %v3893_v0 }
0x13dd   : > { %3446 = vmatpush3.msra.mxu1 %v4567_v3 }
0x13de   : > { %3447 = vmatprep.subr.mxu1 %v3893_v0 }
0x13df   : > { %3448 = vmatpush3.msra.mxu1 %v4573_v44 }
0x13e0   : > { %3449 = vmatprep.subr.mxu1 %v3893_v0 }
0x13e1   : > { %3450 = vmatpush3.msra.mxu1 %v4575_v5 }
0x13e2   : > { %3451 = vmatprep.subr.mxu1 %v3893_v0 }
0x13e3   : > { %3452 = vmatpush3.msra.mxu1 %v4581_v6 }
0x1494   : > { %v2439_v36 = vpop.f32.mrf.mxu1  ;;  %v2633_v59 = vpop.f32.mrf.mxu0 }
0x1495   : > { %v2440_v60 = vadd.f32 %v2439_v36, %v2369_v32  ;;  %v2634_v63 = vadd.f32 %v2633_v59, %v2563_v33  ;;  %v2678_v32 = vld [vmem:[%s5118_s4] sm:$0x1] }
0x1496   : > { %v3417_v1 = vpop.f32.mrf.mxu1  ;;  %v3436_v3 = vpop.f32.mrf.mxu0 }
0x1497   : > { %3653 = vtanh.f32 %v2440_v60  ;;  %v2996_v5 = vmul.f32 -1.442695, %v2440_v60  ;;  %v2998_v6 = vmul.f32 -1.442695, %v2634_v63 }
0x1498   : > { %3655 = vtanh.f32 %v2634_v63 }
0x1499   : > { %3657 = vpow2.f32 %v2996_v5  ;;  %v4854_v5 = vsub.s32 0, %v4129_v24 }
0x149a   : > { %3659 = vpow2.f32 %v2998_v6 }
0x149b   : > { %v4872_v24 = vrot.slane %v4476_v50, %v4854_v5  ;;  %v4890_v50 = vrot.slane %v4794_v47, %v4854_v5 }
0x14a4   : > { %v3654_v44 = vpop.eup %3653 }
0x14a5   : > { %v3656_v0 = vpop.eup %3655  ;;  %2452 = vrot.lane.b32.xlu1 %v3654_v44, %s3896_s12 }
0x14a6   : > { %2646 = vrot.lane.b32.xlu0 %v3656_v0, %s3896_s12  ;;  %v3658_v48 = vpop.eup %3657 }
0x14a7   : > { %v3660_v11 = vpop.eup %3659  ;;  %v2446_v21 = vadd.f32 1.0, %v3658_v48  ;;  %v4860_v48 = vrot.slane %v4298_v62, %v4854_v5  ;;  %v4878_v62 = vrot.slane %v4585_v8, %v4854_v5 }
0x14a8   : > { %v2640_v22 = vadd.f32 1.0, %v3660_v11  ;;  %v4866_v11 = vrot.slane %v4379_v38, %v4854_v5  ;;  %v4884_v38 = vrot.slane %v4690_v7, %v4854_v5 }
0x14a9   : > { %3661 = vrcp.f32 %v2446_v21 }
0x14aa   : > { %3663 = vrcp.f32 %v2640_v22 }
0x14b6   : > { %v3662_v61 = vpop.eup %3661 }
0x14b7   : > { %v3664_v40 = vpop.eup %3663  ;;  %v2450_v43 = vmul.f32 %v3662_v61, %v4753_v15 }
0x14b8   : > { %v2644_v12 = vmul.f32 %v3664_v40, %v4757_v54 }
0x1517   : > { %v2453_v34 = vpop.permute.xlu1 %2452 }
0x1518   : > { %v2455_v41 = vmul.f32 %v3662_v61, %v2453_v34  ;;  %v2647_v42 = vpop.permute.xlu0 %2646 }
0x1519   : > { %v2649_v37 = vmul.f32 %v3664_v40, %v2647_v42 }
0x151a   : > { %2457 = vrot.lane.b32.xlu1 %v2455_v41, %s3895_s26 }
0x151b   : > { %2651 = vrot.lane.b32.xlu0 %v2649_v37, %s3895_s26  ;;  %v3679_v37 = vld [vmem:[%s4064_s17 + $0x100] sm:$0xff] }
0x158c   : > { %v2458_v39 = vpop.permute.xlu1 %2457 }
0x158d   : > { %v2460_v51 = vadd.f32 %v2458_v39, %v2450_v43  ;;  %v2652_v2 = vpop.permute.xlu0 %2651  ;;  %v3680_v39 = vld [vmem:[%s4064_s17 + $0x108] sm:$0xff] }
0x158e   : > { %v2654_v53 = vadd.f32 %v2652_v2, %v2644_v12  ;;  %v3681_v2 = vld [vmem:[%s4064_s17 + $0x10] sm:$0xff] }
0x158f   : > { %3665 = vtanh.f32 %v2460_v51 }
0x1590   : > { %3667 = vtanh.f32 %v2654_v53 }
0x159c   : > { %v3666_v31 = vpop.eup %3665 }
0x159d   : > { %v3668_v13 = vpop.eup %3667  ;;  %2463 = vrot.lane.b32.xlu1 %v3666_v31, %s3896_s12  ;;  %v3682_v31 = vld [vmem:[%s4064_s17 + $0x18] sm:$0xff] }
0x159e   : > { %2657 = vrot.lane.b32.xlu0 %v3668_v13, %s3896_s12 }
0x160f   : > { %v2464_v49 = vpop.permute.xlu1 %2463 }
0x1610   : > { %v2466_v18 = vmul.f32 %v3662_v61, %v2464_v49  ;;  %v2658_v58 = vpop.permute.xlu0 %2657  ;;  %v3677_v61 = vld [vmem:[%s4064_s17] sm:$0xff] }
0x1611   : > { %v2660_v9 = vmul.f32 %v3664_v40, %v2658_v58  ;;  %v3678_v40 = vld [vmem:[%s4064_s17 + $0x8] sm:$0xff]  ;;  %v3683_v58 = vld [vmem:[%s4064_s17 + $0x110] sm:$0xff] }
0x1612   : > { %2666 = vrot.lane.b32.xlu0 %v2466_v18, %s3896_s12  ;;  %v4895_v8 = vrot.slane %v2466_v18, %v4854_v5 }
0x1613   : > { %2662 = vrot.lane.b32.xlu1 %v2660_v9, %s3895_s26 }
0x1684   : > { %v2667_v15 = vpop.permute.xlu0 %2666 }
0x1685   : > { %v2663_v54 = vpop.permute.xlu1 %2662 }
0x1686   : > { %2813 = vst.msk [vmem:[#allocation2] sm:$0x1] %vm296_vm0, %v2663_v54  ;;  %v2669_v30 = vsel %vm369_vm5, %v2663_v54, %v2667_v15  ;;  %v3684_v15 = vld [vmem:[%s4064_s17 + $0x118] sm:$0xff] }
0x1687   : > { %3454 = vmatmul.mubr.msk.f32.vlgmr.msra.gmra.mxu1 %vm380_vm6, %v2669_v30 }
0x1747   : > { %v2748_v33 = vpop.f32.mrf.mxu1 }
0x1748   : > { %v2749_v36 = vadd.f32 %v2748_v33, %v2678_v32  ;;  %v3685_v32 = vld [vmem:[%s4064_s17 + $0x20] sm:$0xff] }
0x1749   : > { %v3455_v59 = vpop.f32.mrf.mxu1 }
0x174a   : > { %3669 = vtanh.f32 %v2749_v36  ;;  %v3000_v63 = vmul.f32 -1.442695, %v2749_v36  ;;  %v3686_v36 = vld [vmem:[%s4064_s17 + $0x28] sm:$0xff] }
0x174c   : > { %3671 = vpow2.f32 %v3000_v63  ;;  %v3687_v63 = vld [vmem:[%s4064_s17 + $0x120] sm:$0xff] }
0x1757   : > { %v3670_v60 = vpop.eup %3669 }
0x1758   : > { %2761 = vrot.lane.b32.xlu1 %v3670_v60, %s3896_s12 }
0x1759   : > { %v3672_v1 = vpop.eup %3671 }
0x175a   : > { %v2755_v3 = vadd.f32 1.0, %v3672_v1 }
0x175c   : > { %3673 = vrcp.f32 %v2755_v3  ;;  %v3688_v3 = vld [vmem:[%s4064_s17 + $0x128] sm:$0xff] }
0x1769   : > { %v4851_v44 = vpop.eup %3673 }
0x176a   : > { %v2759_v7 = vmul.f32 %v4851_v44, %v2460_v51 }
0x17ca   : > { %v2762_v0 = vpop.permute.xlu1 %2761 }
0x17cb   : > { %v2764_v6 = vmul.f32 %v4851_v44, %v2762_v0 }
0x17cd   : > { %2766 = vrot.lane.b32.xlu0 %v2764_v6, %s3895_s26 }
0x17d1   : > { %619 = vbcast.lane.b32.xlu0 %v4860_v48, 352 }
0x17d5   : > { %627 = vbcast.lane.b32.xlu0 %v4860_v48, 368 }
0x17d9   : > { %928 = vbcast.lane.b32.xlu0 %v4866_v11, 352 }
0x17dd   : > { %936 = vbcast.lane.b32.xlu0 %v4866_v11, 368 }
0x17e1   : > { %1237 = vbcast.lane.b32.xlu0 %v4872_v24, 352 }
0x17e5   : > { %1245 = vbcast.lane.b32.xlu0 %v4872_v24, 368 }
0x17e9   : > { %1546 = vbcast.lane.b32.xlu0 %v4878_v62, 352 }
0x17ed   : > { %1554 = vbcast.lane.b32.xlu0 %v4878_v62, 368 }
0x17f1   : > { %1855 = vbcast.lane.b32.xlu0 %v4884_v38, 352 }
0x17f5   : > { %1863 = vbcast.lane.b32.xlu0 %v4884_v38, 368 }
0x17f9   : > { %2164 = vbcast.lane.b32.xlu0 %v4890_v50, 352 }
0x17fd   : > { %2172 = vbcast.lane.b32.xlu0 %v4890_v50, 368 }
0x1801   : > { %2473 = vbcast.lane.b32.xlu0 %v4895_v8, 352 }
0x1805   : > { %2481 = vbcast.lane.b32.xlu0 %v4895_v8, 368 }
0x1809   : > { %2815 = vrot.lane.b32.xlu0 %v2654_v53, %s3897_s15 }
0x183f   : > { %v2767_v47 = vpop.permute.xlu0 %2766 }
0x1840   : > { %v4901_v21 = vadd.f32 %v2767_v47, %v2759_v7  ;;  %v3689_v7 = vld [vmem:[%s4064_s17 + $0x30] sm:$0xff] }
0x1842   : > { %3675 = vtanh.f32 %v4901_v21 }
0x1843   : > { %v620_v22 = vpop.permute.xlu0 %619 }
0x1844   : > { %v633_v34 = vmul.f32 %v3677_v61, %v620_v22  ;;  %v634_v41 = vmul.f32 %v3678_v40, %v620_v22  ;;  %v3690_v22 = vld [vmem:[%s4064_s17 + $0x38] sm:$0xff]  ;;  %v3691_v40 = vld [vmem:[%s4064_s17 + $0x130] sm:$0xff] }
0x1846   : > { %641 = vst [vmem:[%s4908_s28] sm:$0xff] %v633_v34  ;;  %642 = vst [vmem:[%s4908_s28 + $0x8] sm:$0xff] %v634_v41  ;;  %v3692_v41 = vld [vmem:[%s4064_s17 + $0x138] sm:$0xff] }
0x1847   : > { %v628_v42 = vpop.permute.xlu0 %627 }
0x1848   : > { %v637_v43 = vmul.f32 %v3679_v37, %v628_v42  ;;  %v638_v12 = vmul.f32 %v3680_v39, %v628_v42 }
0x184a   : > { %645 = vst [vmem:[%s4908_s28 + $0x100] sm:$0xff] %v637_v43  ;;  %646 = vst [vmem:[%s4908_s28 + $0x108] sm:$0xff] %v638_v12  ;;  %v3693_v43 = vld [vmem:[%s4064_s17 + $0x40] sm:$0xff]  ;;  %v3694_v12 = vld [vmem:[%s4064_s17 + $0x48] sm:$0xff] }
0x184b   : > { %v929_v51 = vpop.permute.xlu0 %928 }
0x184c   : > { %v942_v53 = vmul.f32 %v3681_v2, %v929_v51  ;;  %v943_v13 = vmul.f32 %v3682_v31, %v929_v51 }
0x184e   : > { %950 = vst [vmem:[%s4908_s28 + $0x10] sm:$0xff] %v942_v53  ;;  %951 = vst [vmem:[%s4908_s28 + $0x18] sm:$0xff] %v943_v13  ;;  %v3695_v53 = vld [vmem:[%s4064_s17 + $0x140] sm:$0xff] }
0x184f   : > { %v3676_v49 = vpop.eup %3675  ;;  %v937_v18 = vpop.permute.xlu0 %936 }
0x1850   : > { %v946_v9 = vmul.f32 %v3683_v58, %v937_v18  ;;  %v947_v54 = vmul.f32 %v3684_v15, %v937_v18  ;;  %2772 = vrot.lane.b32.xlu1 %v3676_v49, %s3896_s12 }
0x1852   : > { %954 = vst [vmem:[%s4908_s28 + $0x110] sm:$0xff] %v946_v9  ;;  %955 = vst [vmem:[%s4908_s28 + $0x118] sm:$0xff] %v947_v54 }
0x1853   : > { %v1238_v30 = vpop.permute.xlu0 %1237 }
0x1854   : > { %v1251_v33 = vmul.f32 %v3685_v32, %v1238_v30  ;;  %v1252_v59 = vmul.f32 %v3686_v36, %v1238_v30  ;;  %623 = vbcast.lane.b32.xlu1 %v4860_v48, 360 }
0x1856   : > { %1259 = vst [vmem:[%s4908_s28 + $0x20] sm:$0xff] %v1251_v33  ;;  %1260 = vst [vmem:[%s4908_s28 + $0x28] sm:$0xff] %v1252_v59  ;;  %v3698_v33 = vld [vmem:[%s4064_s17 + $0x88] sm:$0xff] }
0x1857   : > { %v1246_v60 = vpop.permute.xlu0 %1245  ;;  %v3700_v59 = vld [vmem:[%s4064_s17 + $0x188] sm:$0xff] }
0x1858   : > { %v1255_v1 = vmul.f32 %v3687_v63, %v1246_v60  ;;  %v1256_v0 = vmul.f32 %v3688_v3, %v1246_v60  ;;  %631 = vbcast.lane.b32.xlu1 %v4860_v48, 376  ;;  %v3701_v63 = vld [vmem:[%s4064_s17 + $0x90] sm:$0xff]  ;;  %v3702_v3 = vld [vmem:[%s4064_s17 + $0x98] sm:$0xff] }
0x185a   : > { %1263 = vst [vmem:[%s4908_s28 + $0x120] sm:$0xff] %v1255_v1  ;;  %1264 = vst [vmem:[%s4908_s28 + $0x128] sm:$0xff] %v1256_v0 }
0x185b   : > { %v1547_v6 = vpop.permute.xlu0 %1546 }
0x185c   : > { %v1560_v47 = vmul.f32 %v3689_v7, %v1547_v6  ;;  %v1561_v61 = vmul.f32 %v3690_v22, %v1547_v6  ;;  %932 = vbcast.lane.b32.xlu1 %v4866_v11, 360  ;;  %v3703_v7 = vld [vmem:[%s4064_s17 + $0x190] sm:$0xff]  ;;  %v3704_v22 = vld [vmem:[%s4064_s17 + $0x198] sm:$0xff] }
0x185e   : > { %1568 = vst [vmem:[%s4908_s28 + $0x30] sm:$0xff] %v1560_v47  ;;  %1569 = vst [vmem:[%s4908_s28 + $0x38] sm:$0xff] %v1561_v61 }
0x185f   : > { %v1555_v34 = vpop.permute.xlu0 %1554 }
0x1860   : > { %v1564_v48 = vmul.f32 %v3691_v40, %v1555_v34  ;;  %v1565_v42 = vmul.f32 %v3692_v41, %v1555_v34  ;;  %940 = vbcast.lane.b32.xlu1 %v4866_v11, 376  ;;  %v3696_v11 = vld [vmem:[%s4064_s17 + $0x148] sm:$0xff]  ;;  %v3705_v40 = vld [vmem:[%s4064_s17 + $0xa0] sm:$0xff] }
0x1862   : > { %1572 = vst [vmem:[%s4908_s28 + $0x130] sm:$0xff] %v1564_v48  ;;  %1573 = vst [vmem:[%s4908_s28 + $0x138] sm:$0xff] %v1565_v42 }
0x1863   : > { %v1856_v37 = vpop.permute.xlu0 %1855 }
0x1864   : > { %v1869_v39 = vmul.f32 %v3693_v43, %v1856_v37  ;;  %v1870_v51 = vmul.f32 %v3694_v12, %v1856_v37  ;;  %1241 = vbcast.lane.b32.xlu1 %v4872_v24, 360  ;;  %v3707_v37 = vld [vmem:[%s4064_s17 + $0x1a0] sm:$0xff] }
0x1866   : > { %1877 = vst [vmem:[%s4908_s28 + $0x40] sm:$0xff] %v1869_v39  ;;  %1878 = vst [vmem:[%s4908_s28 + $0x48] sm:$0xff] %v1870_v51  ;;  %v3708_v39 = vld [vmem:[%s4064_s17 + $0x1a8] sm:$0xff] }
0x1867   : > { %v1864_v2 = vpop.permute.xlu0 %1863 }
0x1868   : > { %v1873_v31 = vmul.f32 %v3695_v53, %v1864_v2  ;;  %v1874_v13 = vmul.f32 %v3696_v11, %v1864_v2  ;;  %1249 = vbcast.lane.b32.xlu1 %v4872_v24, 376  ;;  %v3709_v2 = vld [vmem:[%s4064_s17 + $0xb0] sm:$0xff] }
0x186a   : > { %1881 = vst [vmem:[%s4908_s28 + $0x140] sm:$0xff] %v1873_v31  ;;  %1882 = vst [vmem:[%s4908_s28 + $0x148] sm:$0xff] %v1874_v13  ;;  %v3710_v31 = vld [vmem:[%s4064_s17 + $0xb8] sm:$0xff] }
0x186b   : > { %v2165_v49 = vpop.permute.xlu0 %2164 }
0x186c   : > { %v2178_v18 = vmul.f32 %v2165_v49, %v4534_v26  ;;  %v2179_v58 = vmul.f32 %v2165_v49, %v4537_v27  ;;  %1550 = vbcast.lane.b32.xlu1 %v4878_v62, 360  ;;  %v3711_v49 = vld [vmem:[%s4064_s17 + $0x1b0] sm:$0xff] }
0x186e   : > { %2186 = vst [vmem:[%s4908_s28 + $0x50] sm:$0xff] %v2178_v18  ;;  %2187 = vst [vmem:[%s4908_s28 + $0x58] sm:$0xff] %v2179_v58  ;;  %v3712_v58 = vld [vmem:[%s4064_s17 + $0x1b8] sm:$0xff] }
0x186f   : > { %v2173_v9 = vpop.permute.xlu0 %2172 }
0x1870   : > { %v2182_v15 = vmul.f32 %v2173_v9, %v4542_v28  ;;  %v2183_v24 = vmul.f32 %v2173_v9, %v4545_v29  ;;  %1558 = vbcast.lane.b32.xlu1 %v4878_v62, 376  ;;  %v3697_v62 = vld [vmem:[%s4064_s17 + $0x80] sm:$0xff] }
0x1872   : > { %2190 = vst [vmem:[%s4908_s28 + $0x150] sm:$0xff] %v2182_v15  ;;  %2191 = vst [vmem:[%s4908_s28 + $0x158] sm:$0xff] %v2183_v24  ;;  %v3713_v24 = vld [vmem:[%s4064_s17 + $0xc0] sm:$0xff] }
0x1873   : > { %v2474_v54 = vpop.permute.xlu0 %2473 }
0x1874   : > { %v2487_v26 = vmul.f32 %v2474_v54, %v4673_v14  ;;  %v2488_v27 = vmul.f32 %v2474_v54, %v4676_v55  ;;  %1859 = vbcast.lane.b32.xlu1 %v4884_v38, 360 }
0x1876   : > { %2495 = vst [vmem:[%s4908_s28 + $0x60] sm:$0xff] %v2487_v26  ;;  %2496 = vst [vmem:[%s4908_s28 + $0x68] sm:$0xff] %v2488_v27  ;;  %v3714_v26 = vld [vmem:[%s4064_s17 + $0xc8] sm:$0xff] }
0x1877   : > { %v2482_v30 = vpop.permute.xlu0 %2481 }
0x1878   : > { %v2491_v28 = vmul.f32 %v2482_v30, %v4667_v25  ;;  %v2492_v32 = vmul.f32 %v2482_v30, %v4670_v10  ;;  %1867 = vbcast.lane.b32.xlu1 %v4884_v38, 376 }
0x187a   : > { %2499 = vst [vmem:[%s4908_s28 + $0x160] sm:$0xff] %v2491_v28  ;;  %2500 = vst [vmem:[%s4908_s28 + $0x168] sm:$0xff] %v2492_v32  ;;  %v3715_v28 = vld [vmem:[%s4064_s17 + $0x1c0] sm:$0xff] }
0x187b   : > { %v2816_v29 = vpop.permute.xlu0 %2815 }
0x187c   : > { %2818 = vst.msk [vmem:[#allocation3] sm:$0x1] %vm296_vm0, %v2816_v29  ;;  %2168 = vbcast.lane.b32.xlu1 %v4890_v50, 360  ;;  %v3716_v29 = vld [vmem:[%s4064_s17 + $0x1c8] sm:$0xff] }
0x1880   : > { %2176 = vbcast.lane.b32.xlu1 %v4890_v50, 376 }
0x1884   : > { %2477 = vbcast.lane.b32.xlu1 %v4895_v8, 360 }
0x1888   : > { %2485 = vbcast.lane.b32.xlu1 %v4895_v8, 376  ;;  %v3699_v8 = vld [vmem:[%s4064_s17 + $0x180] sm:$0xff] }
0x18c2   : > { %v2773_v25 = vpop.permute.xlu1 %2772 }
0x18c3   : > { %v2775_v10 = vmul.f32 %v4851_v44, %v2773_v25 }
0x18c5   : > { %v2779_v14 = vrot.slane %v2775_v10, %v4854_v5 }
0x18c6   : > { %v624_v55 = vpop.permute.xlu1 %623 }
0x18c7   : > { %v635_v38 = vmul.f32 %v3697_v62, %v624_v55  ;;  %v636_v36 = vmul.f32 %v3698_v33, %v624_v55  ;;  %2786 = vbcast.lane.b32.xlu1 %v2779_v14, 360  ;;  %2782 = vbcast.lane.b32.xlu0 %v2779_v14, 352  ;;  %v3718_v62 = vld [vmem:[%s4064_s17 + $0xd8] sm:$0xff] }
0x18c9   : > { %643 = vst [vmem:[%s4908_s28 + $0x80] sm:$0xff] %v635_v38  ;;  %644 = vst [vmem:[%s4908_s28 + $0x88] sm:$0xff] %v636_v36  ;;  %v3719_v36 = vld [vmem:[%s4064_s17 + $0x1d0] sm:$0xff] }
0x18ca   : > { %v632_v50 = vpop.permute.xlu1 %631 }
0x18cb   : > { %v639_v44 = vmul.f32 %v3699_v8, %v632_v50  ;;  %v640_v5 = vmul.f32 %v3700_v59, %v632_v50  ;;  %2794 = vbcast.lane.b32.xlu1 %v2779_v14, 376  ;;  %2790 = vbcast.lane.b32.xlu0 %v2779_v14, 368  ;;  %v3717_v14 = vld [vmem:[%s4064_s17 + $0xd0] sm:$0xff]  ;;  %v3720_v8 = vld [vmem:[%s4064_s17 + $0x1d8] sm:$0xff] }
0x18cd   : > { %647 = vst [vmem:[%s4908_s28 + $0x180] sm:$0xff] %v639_v44  ;;  %648 = vst [vmem:[%s4908_s28 + $0x188] sm:$0xff] %v640_v5 }
0x18ce   : > { %v933_v60 = vpop.permute.xlu1 %932 }
0x18cf   : > { %v944_v1 = vmul.f32 %v3701_v63, %v933_v60  ;;  %v945_v0 = vmul.f32 %v3702_v3, %v933_v60  ;;  %2820 = vrot.lane.b32.xlu1 %v2775_v10, %s3895_s26  ;;  %2825 = vrot.lane.b32.xlu0 %v4901_v21, %s3897_s15  ;;  %v3706_v21 = vld [vmem:[%s4064_s17 + $0xa8] sm:$0xff]  ;;  %s2845_s17 = sshll.u32 %s4908_s28, 4  ;;  %s5056_s17 = int_to_ptr.vmem [resolvable:$true] %s2845_s17 }
0x18d0   : > { %s3801_s16 = scalar_lea.vmem %s5056_s17, 8192  ;;  %p3808_p0 = scmp.lt.s32.totalorder %s5056_s17, %s3806_s27 }
0x18d1   : > { %952 = vst [vmem:[%s4908_s28 + $0x90] sm:$0xff] %v944_v1  ;;  %953 = vst [vmem:[%s4908_s28 + $0x98] sm:$0xff] %v945_v0  ;;  %p3802_p1 = scmp.ne.s32.totalorder %s5056_s17, %s3801_s16  ;;  %p3809_p11 = scmp.lt.s32.totalorder %s3807_s8, %s3801_s16 }
0x18d2   : > { %v941_v6 = vpop.permute.xlu1 %940 }
0x18d3   : > { %v948_v47 = vmul.f32 %v3703_v7, %v941_v6  ;;  %v949_v61 = vmul.f32 %v3704_v22, %v941_v6  ;;  %p3803_p4 = pnand %p3802_p1, %p4030_p5  ;;  %p3810_p2 = por %p3809_p11, %p3808_p0 }
0x18d5   : > { %956 = vst [vmem:[%s4908_s28 + $0x190] sm:$0xff] %v948_v47  ;;  %957 = vst [vmem:[%s4908_s28 + $0x198] sm:$0xff] %v949_v61  ;;  %p3804_p8 = pneg %p3803_p4 }
0x18d6   : > { %v1242_v34 = vpop.permute.xlu1 %1241 }
0x18d7   : > { %v1253_v48 = vmul.f32 %v3705_v40, %v1242_v34  ;;  %v1254_v41 = vmul.f32 %v3706_v21, %v1242_v34  ;;  %p3811_p3 = pnand %p3810_p2, %p3804_p8 }
0x18d9   : > { %1261 = vst [vmem:[%s4908_s28 + $0xa0] sm:$0xff] %v1253_v48  ;;  %1262 = vst [vmem:[%s4908_s28 + $0xa8] sm:$0xff] %v1254_v41 }
0x18da   : > { %v1250_v42 = vpop.permute.xlu1 %1249 }
0x18db   : > { %v1257_v43 = vmul.f32 %v3707_v37, %v1250_v42  ;;  %v1258_v12 = vmul.f32 %v3708_v39, %v1250_v42 }
0x18dd   : > { %1265 = vst [vmem:[%s4908_s28 + $0x1a0] sm:$0xff] %v1257_v43  ;;  %1266 = vst [vmem:[%s4908_s28 + $0x1a8] sm:$0xff] %v1258_v12 }
0x18de   : > { %v1551_v51 = vpop.permute.xlu1 %1550 }
0x18df   : > { %v1562_v53 = vmul.f32 %v3709_v2, %v1551_v51  ;;  %v1563_v11 = vmul.f32 %v3710_v31, %v1551_v51 }
0x18e1   : > { %1570 = vst [vmem:[%s4908_s28 + $0xb0] sm:$0xff] %v1562_v53  ;;  %1571 = vst [vmem:[%s4908_s28 + $0xb8] sm:$0xff] %v1563_v11 }
0x18e2   : > { %v1559_v13 = vpop.permute.xlu1 %1558 }
0x18e3   : > { %v1566_v18 = vmul.f32 %v3711_v49, %v1559_v13  ;;  %v1567_v9 = vmul.f32 %v3712_v58, %v1559_v13 }
0x18e5   : > { %1574 = vst [vmem:[%s4908_s28 + $0x1b0] sm:$0xff] %v1566_v18  ;;  %1575 = vst [vmem:[%s4908_s28 + $0x1b8] sm:$0xff] %v1567_v9 }
0x18e6   : > { %v1860_v15 = vpop.permute.xlu1 %1859 }
0x18e7   : > { %v1871_v54 = vmul.f32 %v3713_v24, %v1860_v15  ;;  %v1872_v27 = vmul.f32 %v3714_v26, %v1860_v15 }
0x18e9   : > { %1879 = vst [vmem:[%s4908_s28 + $0xc0] sm:$0xff] %v1871_v54  ;;  %1880 = vst [vmem:[%s4908_s28 + $0xc8] sm:$0xff] %v1872_v27 }
0x18ea   : > { %v1868_v30 = vpop.permute.xlu1 %1867 }
0x18eb   : > { %v1875_v32 = vmul.f32 %v3715_v28, %v1868_v30  ;;  %v1876_v25 = vmul.f32 %v3716_v29, %v1868_v30 }
0x18ed   : > { %1883 = vst [vmem:[%s4908_s28 + $0x1c0] sm:$0xff] %v1875_v32  ;;  %1884 = vst [vmem:[%s4908_s28 + $0x1c8] sm:$0xff] %v1876_v25 }
0x18ee   : > { %v2169_v10 = vpop.permute.xlu1 %2168 }
0x18ef   : > { %v2180_v55 = vmul.f32 %v3717_v14, %v2169_v10  ;;  %v2181_v38 = vmul.f32 %v3718_v62, %v2169_v10 }
0x18f1   : > { %2188 = vst [vmem:[%s4908_s28 + $0xd0] sm:$0xff] %v2180_v55  ;;  %2189 = vst [vmem:[%s4908_s28 + $0xd8] sm:$0xff] %v2181_v38 }
0x18f2   : > { %v2177_v33 = vpop.permute.xlu1 %2176 }
0x18f3   : > { %v2184_v50 = vmul.f32 %v3719_v36, %v2177_v33  ;;  %v2185_v44 = vmul.f32 %v3720_v8, %v2177_v33 }
0x18f5   : > { %2192 = vst [vmem:[%s4908_s28 + $0x1d0] sm:$0xff] %v2184_v50  ;;  %2193 = vst [vmem:[%s4908_s28 + $0x1d8] sm:$0xff] %v2185_v44 }
0x18f6   : > { %v2478_v59 = vpop.permute.xlu1 %2477 }
0x18f7   : > { %v2489_v5 = vmul.f32 %v2478_v59, %v4659_v52  ;;  %v2490_v60 = vmul.f32 %v2478_v59, %v4662_v23 }
0x18f9   : > { %2497 = vst [vmem:[%s4908_s28 + $0xe0] sm:$0xff] %v2489_v5  ;;  %2498 = vst [vmem:[%s4908_s28 + $0xe8] sm:$0xff] %v2490_v60 }
0x18fa   : > { %v2486_v63 = vpop.permute.xlu1 %2485 }
0x18fb   : > { %v2493_v1 = vmul.f32 %v2486_v63, %v4683_v35  ;;  %v2494_v3 = vmul.f32 %v2486_v63, %v4686_v56 }
0x18fd   : > { %2501 = vst [vmem:[%s4908_s28 + $0x1e0] sm:$0xff] %v2493_v1  ;;  %2502 = vst [vmem:[%s4908_s28 + $0x1e8] sm:$0xff] %v2494_v3 }
0x1939   : > { %v2783_v0 = vpop.permute.xlu0 %2782  ;;  %v2787_v6 = vpop.permute.xlu1 %2786 }
0x193a   : > { %v2796_v52 = vmul.f32 %v2783_v0, %v4763_v4  ;;  %v2797_v7 = vmul.f32 %v2783_v0, %v4766_v57  ;;  %v2798_v23 = vmul.f32 %v2787_v6, %v4785_v46  ;;  %v2799_v47 = vmul.f32 %v2787_v6, %v4788_v20 }
0x193c   : > { %2804 = vst [vmem:[%s4908_s28 + $0x70] sm:$0xff] %v2796_v52  ;;  %2805 = vst [vmem:[%s4908_s28 + $0x78] sm:$0xff] %v2797_v7 }
0x193d   : > { %2806 = vst [vmem:[%s4908_s28 + $0xf0] sm:$0xff] %v2798_v23  ;;  %2807 = vst [vmem:[%s4908_s28 + $0xf8] sm:$0xff] %v2799_v47  ;;  %v2791_v35 = vpop.permute.xlu0 %2790  ;;  %v2795_v56 = vpop.permute.xlu1 %2794 }
0x193e   : > { %v2800_v4 = vmul.f32 %v2791_v35, %v4771_v16  ;;  %v2801_v57 = vmul.f32 %v2791_v35, %v4774_v17  ;;  %v2802_v46 = vmul.f32 %v2795_v56, %v4779_v19  ;;  %v2803_v20 = vmul.f32 %v2795_v56, %v4782_v45 }
0x1940   : > { %2808 = vst [vmem:[%s4908_s28 + $0x170] sm:$0xff] %v2800_v4  ;;  %2809 = vst [vmem:[%s4908_s28 + $0x178] sm:$0xff] %v2801_v57 }
0x1941   : > { %2810 = vst [vmem:[%s4908_s28 + $0x1f0] sm:$0xff] %v2802_v46  ;;  %2811 = vst [vmem:[%s4908_s28 + $0x1f8] sm:$0xff] %v2803_v20  ;;  %v2826_v22 = vpop.permute.xlu0 %2825  ;;  %v2821_v61 = vpop.permute.xlu1 %2820 }
0x1942   : > { %3814 = shalt.err (!%p3811_p3)
}
0x1943   : > { %s3815_s6 = scalar_lea.hbm %s5054_s30, 8192  ;;  %s3819_s14 = scalar_lea.hbm %s5119_s5, 16384 }
0x1944   : > { %p3816_p7 = scmp.ne.s32.totalorder %s5054_s30, %s3815_s6  ;;  %p3820_p9 = scmp.lt.s32.totalorder %s5054_s30, %s5119_s5 }
0x1945   : > { %p3821_p10 = scmp.lt.s32.totalorder %s3819_s14, %s3815_s6 }
0x1946   : > { %p3817_p6 = pnand %p3816_p7, %p4030_p5 }
0x1947   : > { %p3822_p13 = por %p3821_p10, %p3820_p9 }
0x1948   : > { %p3818_p12 = pneg %p3817_p6 }
0x194a   : > { %p3823_p1 = pnand %p3822_p13, %p3818_p12 }
0x194c   : > { %3826 = shalt.err (!%p3823_p1)
}
0x194d   : > { %s3899_s1 = smov 2048   ;;  %s3900_s26 = smov 128   ;;  %2828 = vst.msk [vmem:[#allocation5] sm:$0x1] %vm296_vm0, %v2826_v22  ;;  %2823 = vst.msk [vmem:[#allocation4] sm:$0x1] %vm296_vm0, %v2821_v61 }
0x194e   : > { %3466 = dma.vmem_to_hbm [thread:$0]  (%p4030_p5), %s5056_s17, 8192, %s5054_s30, %s2830_s21, %s3899_s1, %s3899_s1, %s3900_s26  }
0x194f PF: > { %s2860_s12 = sand.u32 1, %s3865_s18   ;;  %p5132_p4 = scmp.ne.s32.totalorder %s5125_s29, 0 }
0x1950   : > { %p5133_p8 = scmp.ge.s32.totalorder %s3885_s23, 2  ;;  %s2861_s16 = scalar_lea.sflag [#allocation8], %s2860_s12 }
0x1952   : > { %p3480_p0 = pnand %p5133_p8, %p5132_p4 }
0x1954   : > { %p3481_p11 = pneg %p3480_p0 }
0x1956   : > { %3860 = dma.done.wait (%p3481_p11), %s2861_s16, 8192  }
0x1957   : > { %3862 = vsyncadd (%p3481_p11), %s2861_s16, 4294959104  ;;  %s22_s23 = sadd.s32 1, %s3885_s23   ;;  %s5134_s18 = smov %s3869_s19 }
0x1958   : > { %p19_p2 = scmp.ge.s32.totalorder %s22_s23, 4   ;;  %s5135_s19 = smov %s3873_s20 }
0x1959   : > { %s5136_s20 = smov %s4039_s13  ;;  %s5137_s21 = smov %s3881_s22 }
0x195a   : > { %s5138_s22 = smov %s5140_s25  ;;  %21 = sbr.rel (!%p19_p2) target bundleno = 9 (0x9), region = 97 }
0x195f   :  { %2866 = vsyncpa [#allocation7], 1 }
0x1960   :  { %2868 = vsyncpa [#allocation7 + $0x1], 1 }
0x1961   :  { %2869 = vsyncpa [#allocation10], 1 }
0x1962   :  { %2870 = vsyncpa [#allocation8], 1 }
0x1963   :  { %2872 = vsyncpa [#allocation8 + $0x1], 1 }

</bundles_post_ra>
